<compile_context>
chip_gen: v6e
topology: v6e:2x2x1
jax: 0.10.0
libtpu: 0.0.40
codegen_flags: <defaults>
</compile_context>

<pallas_src>
import math

import jax
import jax.numpy as jnp
from jax.experimental import pallas as pl
from jax.experimental.pallas import tpu as pltpu


def _round_up(x, m):
    return (x + m - 1) // m * m


# ----------------------------------------------------------------------------
# Fused kernel: full LSTM stack + f_enc/f_actions/f_dec heads, per batch tile.
# ----------------------------------------------------------------------------
def acl_fused_kernel(x_ref, a_ref, w_ih0_ref, w_ihr_ref, w_hh_ref, b_ref,
                     w_enc_ref, w_act_ref, b_h_ref, w_dec_ref, b_dec_ref,
                     enc_ref, h_out_ref, s_out_ref,
                     act_sc, gates_sc):
    """x_ref:     (T, Bt, Dp)     time-major padded input (bf16)
       a_ref:     (T, Bt, Ap)     time-major padded actions (bf16)
       w_ih0_ref: (Dp, 4*Hp)      layer-0 input->gate weights (bf16, gate-padded)
       w_ihr_ref: (Lr, Hp, 4*Hp)  layers 1..L-1 input->gate weights (bf16)
       w_hh_ref:  (L, Hp, 4*Hp)   hidden->gate weights (bf16)
       b_ref:     (L, 1, 4*Hp)    combined LSTM biases (f32)
       w_enc_ref: (Hp, Hp)        f_enc weight (bf16)   w_act_ref: (Ap, Hp)
       b_h_ref:   (1, Hp)         b_enc + b_act (f32)
       w_dec_ref: (Hp, Dp)        f_dec weight (bf16)   b_dec_ref: (1, Dp) (f32)
       enc_ref:   (T, Bt, Hp)     encoded (f32 out)
       h_out_ref: (T, Bt, Hp)     s_next_h (f32 out)
       s_out_ref: (T, Bt, Dp)     s_next   (f32 out)
       act_sc:    (T, Bt, Hp)     inter-layer activations (bf16 scratch)
       gates_sc:  (T, Bt, 4*Hp)   hoisted input-projection gates (f32 scratch)"""
    T, Bt, Dp = x_ref.shape
    L = w_hh_ref.shape[0]
    Hp = enc_ref.shape[2]
    cdt = w_hh_ref.dtype                      # MXU operand dtype (bf16)

    # ------------------------- fused LSTM stack -------------------------
    # NOTE: each gate is padded to a full 128-lane slab (Hp).  For H that is
    # not a multiple of 128 this wastes EUP/MXU work on zero lanes, but keeps
    # every gate slice / activation / store vreg-aligned (no cross-lane moves).
    for l in range(L):                        # static Python loop over layers
        # Hoisted input projection: one big MXU matmul for the whole sequence.
        if l == 0:
            x2d = x_ref[...].reshape(T * Bt, Dp)              # bf16
            w_in = w_ih0_ref[...]                             # (Dp, 4Hp)
        else:
            x2d = act_sc[...].reshape(T * Bt, Hp)             # bf16
            w_in = w_ihr_ref[l - 1]                           # (Hp, 4Hp)
        gx = jnp.dot(x2d, w_in, preferred_element_type=jnp.float32) + b_ref[l]
        gates_sc[...] = gx.reshape(T, Bt, 4 * Hp)

        # Serial recurrence: only h @ W_hh on the critical path; h carried bf16
        # (halves vreg pressure), c carried f32 for exact cell accumulation.
        w_rec = w_hh_ref[l]                                   # (Hp, 4Hp) resident
        last = (l == L - 1)

        def step(t, carry):
            h, c = carry
            g = gates_sc[t] + jnp.dot(h, w_rec, preferred_element_type=jnp.float32)
            # sigmoid(x) = 0.5*tanh(0.5*x)+0.5 : one EUP push instead of two.
            i_g = 0.5 * jnp.tanh(0.5 * g[:, 0 * Hp:1 * Hp]) + 0.5
            f_g = 0.5 * jnp.tanh(0.5 * g[:, 1 * Hp:2 * Hp]) + 0.5
            g_g = jnp.tanh(g[:, 2 * Hp:3 * Hp])
            o_g = 0.5 * jnp.tanh(0.5 * g[:, 3 * Hp:4 * Hp]) + 0.5
            c_n = f_g * c + i_g * g_g
            h_f32 = o_g * jnp.tanh(c_n)
            h_n = h_f32.astype(cdt)
            act_sc[t] = h_n                   # bf16 feed for next layer / head
            if last:
                enc_ref[t] = h_f32            # full-precision encoded output
            return h_n, c_n

        h0 = jnp.zeros((Bt, Hp), cdt)
        c0 = jnp.zeros((Bt, Hp), jnp.float32)
        jax.lax.fori_loop(0, T, step, (h0, c0),
                          unroll=True if T <= 16 else 4)

    # ------------------- fused heads, straight out of VMEM -------------------
    enc2d = act_sc[...].reshape(T * Bt, Hp)                   # bf16 encoded
    a2d = a_ref[...].reshape(T * Bt, Ap := a_ref.shape[2])
    s_h = (jnp.dot(enc2d, w_enc_ref[...], preferred_element_type=jnp.float32)
           + jnp.dot(a2d, w_act_ref[...], preferred_element_type=jnp.float32)
           + b_h_ref[...])
    h_out_ref[...] = s_h.reshape(T, Bt, Hp)
    s_out_ref[...] = (jnp.dot(s_h.astype(cdt), w_dec_ref[...],
                              preferred_element_type=jnp.float32)
                      + b_dec_ref[...]).reshape(T, Bt, Dp)


# ----------------------------------------------------------------------------
# Python wrapper.
# ----------------------------------------------------------------------------
def action_cond_lstm_forward(s, a, packed):
    """s: (B, T, input_size)   a: (B, T, action_size)   packed: see pack_params."""
    B, T, D = s.shape
    A = a.shape[-1]
    H, Hp, Dp, Ap = packed["H"], packed["Hp"], packed["Dp"], packed["Ap"]
    L = packed["L"]
    Lr = packed["w_ihr"].shape[0]
    assert D == packed["D"] and A == packed["A"]

    # Batch tile: multiple of 16 sublanes (keeps bf16 reshapes layout no-ops),
    # capped at 128 rows (full v5e MXU; half of v6e/v7x 256-row MXU); shrink if
    # the dominant scratch (gates_sc) would blow the v7x 64 MiB VMEM budget.
    B_tile = min(_round_up(B, 16), 128)

    def scratch_bytes(bt):
        return T * bt * Hp * 2 + T * bt * 4 * Hp * 4          # act_sc + gates_sc

    while B_tile > 16 and scratch_bytes(B_tile) > 24 * 1024 * 1024:
        B_tile //= 2
    Bp = _round_up(B, B_tile)

    x = jnp.transpose(s, (1, 0, 2))                            # (T, B, D) time-major
    x = jnp.pad(x, ((0, 0), (0, Bp - B), (0, Dp - D))).astype(jnp.bfloat16)
    a_t = jnp.transpose(a, (1, 0, 2))
    a_t = jnp.pad(a_t, ((0, 0), (0, Bp - B), (0, Ap - A))).astype(jnp.bfloat16)

    enc_pad, h_pad, s_pad = pl.pallas_call(
        acl_fused_kernel,
        out_shape=(jax.ShapeDtypeStruct((T, Bp, Hp), jnp.float32),
                   jax.ShapeDtypeStruct((T, Bp, Hp), jnp.float32),
                   jax.ShapeDtypeStruct((T, Bp, Dp), jnp.float32)),
        grid_spec=pltpu.PrefetchScalarGridSpec(
            num_scalar_prefetch=0,
            grid=(Bp // B_tile,),
            in_specs=[
                pl.BlockSpec((T, B_tile, Dp), lambda b: (0, b, 0)),      # x
                pl.BlockSpec((T, B_tile, Ap), lambda b: (0, b, 0)),      # a
                pl.BlockSpec((Dp, 4 * Hp), lambda b: (0, 0)),            # w_ih layer 0
                pl.BlockSpec((Lr, Hp, 4 * Hp), lambda b: (0, 0, 0)),     # w_ih layers 1+
                pl.BlockSpec((L, Hp, 4 * Hp), lambda b: (0, 0, 0)),      # w_hh
                pl.BlockSpec((L, 1, 4 * Hp), lambda b: (0, 0, 0)),       # lstm bias
                pl.BlockSpec((Hp, Hp), lambda b: (0, 0)),                # w_enc
                pl.BlockSpec((Ap, Hp), lambda b: (0, 0)),                # w_act
                pl.BlockSpec((1, Hp), lambda b: (0, 0)),                 # b_enc + b_act
                pl.BlockSpec((Hp, Dp), lambda b: (0, 0)),                # w_dec
                pl.BlockSpec((1, Dp), lambda b: (0, 0)),                 # b_dec
            ],
            out_specs=(pl.BlockSpec((T, B_tile, Hp), lambda b: (0, b, 0)),
                       pl.BlockSpec((T, B_tile, Hp), lambda b: (0, b, 0)),
                       pl.BlockSpec((T, B_tile, Dp), lambda b: (0, b, 0))),
            scratch_shapes=[
                pltpu.VMEM((T, B_tile, Hp), jnp.bfloat16),       # inter-layer acts
                pltpu.VMEM((T, B_tile, 4 * Hp), jnp.float32),    # hoisted gate proj
            ],
        ),
        compiler_params=pltpu.CompilerParams(
            dimension_semantics=("parallel",),          # batch tiles across cores
            vmem_limit_bytes=48 * 1024 * 1024,          # headroom vs v7x 64 MiB
        ),
    )(x, a_t, packed["w_ih0"], packed["w_ihr"], packed["w_hh"], packed["b"],
      packed["w_enc"], packed["w_act"], packed["b_h"],
      packed["w_dec"], packed["b_dec"])

    encoded = jnp.transpose(enc_pad, (1, 0, 2))[:B, :, :H]
    s_next_h = jnp.transpose(h_pad, (1, 0, 2))[:B, :, :H]
    s_next = jnp.transpose(s_pad, (1, 0, 2))[:B, :, :D]
    return s_next, s_next_h, encoded


# ----------------------------------------------------------------------------
# Deterministic parameter init (PyTorch parameter layout) + one-time packing.
# ----------------------------------------------------------------------------
def init_params(key, input_size, action_size, hidden_size, num_layers):
    def uni(k, shape, bound):
        return jax.random.uniform(k, shape, jnp.float32, -bound, bound)

    params = {"lstm": []}
    lstm_bound = 1.0 / math.sqrt(hidden_size)
    for layer in range(num_layers):
        d_in = input_size if layer == 0 else hidden_size
        key, k1, k2, k3, k4 = jax.random.split(key, 5)
        params["lstm"].append({
            "w_ih": uni(k1, (4 * hidden_size, d_in), lstm_bound),
            "w_hh": uni(k2, (4 * hidden_size, hidden_size), lstm_bound),
            "b_ih": uni(k3, (4 * hidden_size,), lstm_bound),
            "b_hh": uni(k4, (4 * hidden_size,), lstm_bound),
        })

    key, k1, k2, k3, k4, k5, k6 = jax.random.split(key, 7)
    b_act = 1.0 / math.sqrt(action_size)
    b_enc = 1.0 / math.sqrt(hidden_size)
    params["w_act"] = uni(k1, (hidden_size, action_size), b_act)
    params["b_act"] = uni(k2, (hidden_size,), b_act)
    params["w_enc"] = uni(k3, (hidden_size, hidden_size), b_enc)
    params["b_enc"] = uni(k4, (hidden_size,), b_enc)
    params["w_dec"] = uni(k5, (input_size, hidden_size), b_enc)
    params["b_dec"] = uni(k6, (input_size,), b_enc)
    return params


def pack_params(params, input_size, action_size, hidden_size,
                compute_dtype=jnp.bfloat16):
    """One-time prep: transpose, combine biases, lane-pad each gate to 128,
    split layer-0 input weights out at their native (Dp, 4Hp) size, stack the
    remaining layers, and cast matmul weights to the MXU operand dtype (bf16)."""
    H = hidden_size
    Hp = _round_up(H, 128)
    Dp = _round_up(input_size, 128)
    Ap = _round_up(action_size, 128)
    L = len(params["lstm"])
    Lr = max(L - 1, 1)

    w_ih0 = jnp.zeros((Dp, 4 * Hp), jnp.float32)
    w_ihr = jnp.zeros((Lr, Hp, 4 * Hp), jnp.float32)
    w_hh_all = jnp.zeros((L, Hp, 4 * Hp), jnp.float32)
    b_all = jnp.zeros((L, 1, 4 * Hp), jnp.float32)
    for l, layer in enumerate(params["lstm"]):
        d_in = layer["w_ih"].shape[1]
        w_ih_t = layer["w_ih"].T                      # (d_in, 4H), gate order i,f,g,o
        w_hh_t = layer["w_hh"].T                      # (H, 4H)
        b = layer["b_ih"] + layer["b_hh"]
        for g in range(4):
            col = slice(g * Hp, g * Hp + H)
            src = w_ih_t[:, g * H:(g + 1) * H]
            if l == 0:
                w_ih0 = w_ih0.at[:d_in, col].set(src)
            else:
                w_ihr = w_ihr.at[l - 1, :d_in, col].set(src)
            w_hh_all = w_hh_all.at[l, :H, col].set(w_hh_t[:, g * H:(g + 1) * H])
            b_all = b_all.at[l, 0, col].set(b[g * H:(g + 1) * H])

    def pad2(w, rp, cp):
        return jnp.zeros((rp, cp), jnp.float32).at[:w.shape[0], :w.shape[1]].set(w)

    return {
        "L": L, "H": H, "Hp": Hp, "Dp": Dp, "Ap": Ap,
        "D": input_size, "A": action_size,
        "w_ih0": w_ih0.astype(compute_dtype),
        "w_ihr": w_ihr.astype(compute_dtype),
        "w_hh": w_hh_all.astype(compute_dtype),
        "b": b_all,                                   # bias stays f32 (post-accumulate)
        "w_enc": pad2(params["w_enc"].T, Hp, Hp).astype(compute_dtype),
        "w_act": pad2(params["w_act"].T, Ap, Hp).astype(compute_dtype),
        "b_h": pad2((params["b_enc"] + params["b_act"]).reshape(1, -1), 1, Hp),
        "w_dec": pad2(params["w_dec"].T, Hp, Dp).astype(compute_dtype),
        "b_dec": pad2(params["b_dec"].reshape(1, -1), 1, Dp),
    }


# ----------------------------------------------------------------------------
# Pure-JAX reference (same math; matmul_dtype lets it mirror bf16 MXU operands).
# ----------------------------------------------------------------------------
def reference_forward(s, a, params, matmul_dtype=jnp.float32):
    def mm(x, w):
        return jnp.dot(x.astype(matmul_dtype), w.astype(matmul_dtype),
                       preferred_element_type=jnp.float32)

    x = s.astype(jnp.float32)
    for layer in params["lstm"]:
        w_ih_t, w_hh_t = layer["w_ih"].T, layer["w_hh"].T
        b = layer["b_ih"] + layer["b_hh"]
        B = x.shape[0]
        H = layer["w_hh"].shape[1]

        def step(carry, x_t):
            h, c = carry
            gates = mm(x_t, w_ih_t) + mm(h, w_hh_t) + b
            i = jax.nn.sigmoid(gates[:, :H])
            f = jax.nn.sigmoid(gates[:, H:2 * H])
            g = jnp.tanh(gates[:, 2 * H:3 * H])
            o = jax.nn.sigmoid(gates[:, 3 * H:])
            c = f * c + i * g
            h = o * jnp.tanh(c)
            return (h, c), h

        carry0 = (jnp.zeros((B, H), jnp.float32), jnp.zeros((B, H), jnp.float32))
        _, hs = jax.lax.scan(step, carry0, jnp.transpose(x, (1, 0, 2)))
        x = jnp.transpose(hs, (1, 0, 2))
    encoded = x
    s_next_h = (mm(encoded, params["w_enc"].T) + params["b_enc"]
                + mm(a.astype(jnp.float32), params["w_act"].T) + params["b_act"])
    s_next = mm(s_next_h, params["w_dec"].T) + params["b_dec"]
    return s_next, s_next_h, encoded


if __name__ == "__main__":
    B, T = 2, 8
    INPUT_SIZE, ACTION_SIZE, HIDDEN_SIZE, NUM_LAYERS = 16, 4, 32, 2

    key = jax.random.PRNGKey(0)
    key, ks, ka, kp = jax.random.split(key, 4)
    s = jax.random.normal(ks, (B, T, INPUT_SIZE), jnp.float32)
    a = jax.random.normal(ka, (B, T, ACTION_SIZE), jnp.float32)
    params = init_params(kp, INPUT_SIZE, ACTION_SIZE, HIDDEN_SIZE, NUM_LAYERS)
    packed = pack_params(params, INPUT_SIZE, ACTION_SIZE, HIDDEN_SIZE)

    s_next, s_next_h, encoded = jax.block_until_ready(
        action_cond_lstm_forward(s, a, packed))

    assert s_next.shape == (B, T, INPUT_SIZE)
    assert s_next_h.shape == (B, T, HIDDEN_SIZE)
    assert encoded.shape == (B, T, HIDDEN_SIZE)

    # Verify against a pure-JAX reference that mirrors the kernel's bf16 MXU
    # operands (f32 accumulation, f32 gate math).
    r_next, r_next_h, r_enc = jax.block_until_ready(
        reference_forward(s, a, params, matmul_dtype=jnp.bfloat16))
    for got, ref in ((s_next, r_next), (s_next_h, r_next_h), (encoded, r_enc)):
        assert jnp.allclose(got, ref, atol=2e-2, rtol=2e-2), "mismatch vs reference"

    print("KERNEL_OK")
</pallas_src>

<mosaic_0001>
module attributes {stable_mosaic.version = 11 : i64} {
  func.func @acl_fused_kernel(%arg0: i32, %arg1: memref<8x16x128xbf16, #tpu.memory_space<vmem>>, %arg2: memref<8x16x128xbf16, #tpu.memory_space<vmem>>, %arg3: memref<128x512xbf16, #tpu.memory_space<vmem>>, %arg4: memref<1x128x512xbf16, #tpu.memory_space<vmem>>, %arg5: memref<2x128x512xbf16, #tpu.memory_space<vmem>>, %arg6: memref<2x1x512xf32, #tpu.memory_space<vmem>>, %arg7: memref<128x128xbf16, #tpu.memory_space<vmem>>, %arg8: memref<128x128xbf16, #tpu.memory_space<vmem>>, %arg9: memref<1x128xf32, #tpu.memory_space<vmem>>, %arg10: memref<128x128xbf16, #tpu.memory_space<vmem>>, %arg11: memref<1x128xf32, #tpu.memory_space<vmem>>, %arg12: memref<8x16x128xf32, #tpu.memory_space<vmem>>, %arg13: memref<8x16x128xf32, #tpu.memory_space<vmem>>, %arg14: memref<8x16x128xf32, #tpu.memory_space<vmem>>, %arg15: memref<8x16x128xbf16, #tpu.memory_space<vmem>>, %arg16: memref<8x16x512xf32, #tpu.memory_space<vmem>>) attributes {dimension_semantics = [#tpu.dimension_semantics<parallel>], iteration_bounds = array<i64: 1>, scalar_prefetch = 0 : i64, scratch_operands = 2 : i64, tpu.core_type = #tpu.core_type<tc>, window_params = [{transform_indices = @transform_0, window_bounds = array<i64: 8, 16, 128>}, {transform_indices = @transform_1, window_bounds = array<i64: 8, 16, 128>}, {pipeline_mode = #tpu.pipeline_mode<synchronous>, transform_indices = @transform_2, window_bounds = array<i64: 128, 512>}, {pipeline_mode = #tpu.pipeline_mode<synchronous>, transform_indices = @transform_3, window_bounds = array<i64: 1, 128, 512>}, {pipeline_mode = #tpu.pipeline_mode<synchronous>, transform_indices = @transform_4, window_bounds = array<i64: 2, 128, 512>}, {pipeline_mode = #tpu.pipeline_mode<synchronous>, transform_indices = @transform_5, window_bounds = array<i64: 2, 1, 512>}, {pipeline_mode = #tpu.pipeline_mode<synchronous>, transform_indices = @transform_6, window_bounds = array<i64: 128, 128>}, {pipeline_mode = #tpu.pipeline_mode<synchronous>, transform_indices = @transform_7, window_bounds = array<i64: 128, 128>}, {pipeline_mode = #tpu.pipeline_mode<synchronous>, transform_indices = @transform_8, window_bounds = array<i64: 1, 128>}, {pipeline_mode = #tpu.pipeline_mode<synchronous>, transform_indices = @transform_9, window_bounds = array<i64: 128, 128>}, {pipeline_mode = #tpu.pipeline_mode<synchronous>, transform_indices = @transform_10, window_bounds = array<i64: 1, 128>}, {transform_indices = @transform_11, window_bounds = array<i64: 8, 16, 128>}, {transform_indices = @transform_12, window_bounds = array<i64: 8, 16, 128>}, {transform_indices = @transform_13, window_bounds = array<i64: 8, 16, 128>}]} {
    %c0 = arith.constant 0 : index
    %c0_0 = arith.constant 0 : index
    %c0_1 = arith.constant 0 : index
    %0 = vector.load %arg1[%c0, %c0_0, %c0_1] : memref<8x16x128xbf16, #tpu.memory_space<vmem>>, vector<8x16x128xbf16>
    %1 = vector.shape_cast %0 : vector<8x16x128xbf16> to vector<128x128xbf16>
    %c0_2 = arith.constant 0 : index
    %c0_3 = arith.constant 0 : index
    %2 = vector.load %arg3[%c0_2, %c0_3] : memref<128x512xbf16, #tpu.memory_space<vmem>>, vector<128x512xbf16>
    %cst = arith.constant dense<0.000000e+00> : vector<128x512xf32>
    %3 = tpu.matmul %1, %2, %cst {dimension_numbers = #tpu.dot_dimension_numbers<[1], [0], [0], [1], [0, 0, 1, 1], [], []>} : vector<128x128xbf16>, vector<128x512xbf16>, vector<128x512xf32> -> vector<128x512xf32>
    %c0_4 = arith.constant 0 : index
    %c0_5 = arith.constant 0 : index
    %c0_6 = arith.constant 0 : index
    %4 = vector.load %arg6[%c0_4, %c0_5, %c0_6] : memref<2x1x512xf32, #tpu.memory_space<vmem>>, vector<1x1x512xf32>
    %5 = vector.shape_cast %4 : vector<1x1x512xf32> to vector<1x512xf32>
    %6 = vector.broadcast %5 : vector<1x512xf32> to vector<128x512xf32>
    %7 = arith.addf %3, %6 : vector<128x512xf32>
    %8 = vector.shape_cast %7 : vector<128x512xf32> to vector<8x16x512xf32>
    %c0_7 = arith.constant 0 : index
    %c0_8 = arith.constant 0 : index
    %c0_9 = arith.constant 0 : index
    %9 = vector.load %arg16[%c0_7, %c0_8, %c0_9] : memref<8x16x512xf32, #tpu.memory_space<vmem>>, vector<8x16x512xf32>
    tpu.vector_store %arg16[%c0_7, %c0_8, %c0_9], %8 {strides = array<i32>} : memref<8x16x512xf32, #tpu.memory_space<vmem>>, vector<8x16x512xf32>,
    %c0_10 = arith.constant 0 : index
    %c0_11 = arith.constant 0 : index
    %c0_12 = arith.constant 0 : index
    %10 = vector.load %arg5[%c0_10, %c0_11, %c0_12] : memref<2x128x512xbf16, #tpu.memory_space<vmem>>, vector<1x128x512xbf16>
    %11 = vector.shape_cast %10 : vector<1x128x512xbf16> to vector<128x512xbf16>
    %cst_13 = arith.constant 0.000000e+00 : bf16
    %12 = vector.broadcast %cst_13 : bf16 to vector<16x128xbf16>
    %cst_14 = arith.constant 0.000000e+00 : f32
    %13 = vector.broadcast %cst_14 : f32 to vector<16x128xf32>
    %c0_i32 = arith.constant 0 : i32
    %14 = arith.index_cast %c0_i32 : i32 to index
    %c0_15 = arith.constant 0 : index
    %c0_16 = arith.constant 0 : index
    %15 = vector.load %arg16[%14, %c0_15, %c0_16] : memref<8x16x512xf32, #tpu.memory_space<vmem>>, vector<1x16x512xf32>
    %16 = vector.shape_cast %15 : vector<1x16x512xf32> to vector<16x512xf32>
    %cst_17 = arith.constant dense<0.000000e+00> : vector<16x512xf32>
    %17 = tpu.matmul %12, %11, %cst_17 {dimension_numbers = #tpu.dot_dimension_numbers<[1], [0], [0], [1], [0, 0, 1, 1], [], []>} : vector<16x128xbf16>, vector<128x512xbf16>, vector<16x512xf32> -> vector<16x512xf32>
    %18 = arith.addf %16, %17 : vector<16x512xf32>
    %19 = vector.extract_strided_slice %18 {offsets = [0, 0], sizes = [16, 128], strides = [1, 1]} : vector<16x512xf32> to vector<16x128xf32>
    %cst_18 = arith.constant 5.000000e-01 : f32
    %20 = vector.broadcast %cst_18 : f32 to vector<16x128xf32>
    %21 = arith.mulf %20, %19 : vector<16x128xf32>
    %22 = math.tanh %21 : vector<16x128xf32>
    %cst_19 = arith.constant 5.000000e-01 : f32
    %23 = vector.broadcast %cst_19 : f32 to vector<16x128xf32>
    %24 = arith.mulf %23, %22 : vector<16x128xf32>
    %cst_20 = arith.constant 5.000000e-01 : f32
    %25 = vector.broadcast %cst_20 : f32 to vector<16x128xf32>
    %26 = arith.addf %24, %25 : vector<16x128xf32>
    %27 = vector.extract_strided_slice %18 {offsets = [0, 128], sizes = [16, 128], strides = [1, 1]} : vector<16x512xf32> to vector<16x128xf32>
    %cst_21 = arith.constant 5.000000e-01 : f32
    %28 = vector.broadcast %cst_21 : f32 to vector<16x128xf32>
    %29 = arith.mulf %28, %27 : vector<16x128xf32>
    %30 = math.tanh %29 : vector<16x128xf32>
    %cst_22 = arith.constant 5.000000e-01 : f32
    %31 = vector.broadcast %cst_22 : f32 to vector<16x128xf32>
    %32 = arith.mulf %31, %30 : vector<16x128xf32>
    %cst_23 = arith.constant 5.000000e-01 : f32
    %33 = vector.broadcast %cst_23 : f32 to vector<16x128xf32>
    %34 = arith.addf %32, %33 : vector<16x128xf32>
    %35 = vector.extract_strided_slice %18 {offsets = [0, 256], sizes = [16, 128], strides = [1, 1]} : vector<16x512xf32> to vector<16x128xf32>
    %36 = math.tanh %35 : vector<16x128xf32>
    %37 = vector.extract_strided_slice %18 {offsets = [0, 384], sizes = [16, 128], strides = [1, 1]} : vector<16x512xf32> to vector<16x128xf32>
    %cst_24 = arith.constant 5.000000e-01 : f32
    %38 = vector.broadcast %cst_24 : f32 to vector<16x128xf32>
    %39 = arith.mulf %38, %37 : vector<16x128xf32>
    %40 = math.tanh %39 : vector<16x128xf32>
    %cst_25 = arith.constant 5.000000e-01 : f32
    %41 = vector.broadcast %cst_25 : f32 to vector<16x128xf32>
    %42 = arith.mulf %41, %40 : vector<16x128xf32>
    %cst_26 = arith.constant 5.000000e-01 : f32
    %43 = vector.broadcast %cst_26 : f32 to vector<16x128xf32>
    %44 = arith.addf %42, %43 : vector<16x128xf32>
    %45 = arith.mulf %34, %13 : vector<16x128xf32>
    %46 = arith.mulf %26, %36 : vector<16x128xf32>
    %47 = arith.addf %45, %46 : vector<16x128xf32>
    %48 = math.tanh %47 : vector<16x128xf32>
    %49 = arith.mulf %44, %48 : vector<16x128xf32>
    %50 = arith.truncf %49 : vector<16x128xf32> to vector<16x128xbf16>
    %51 = arith.index_cast %c0_i32 : i32 to index
    %c0_27 = arith.constant 0 : index
    %c0_28 = arith.constant 0 : index
    %52 = vector.load %arg15[%51, %c0_27, %c0_28] : memref<8x16x128xbf16, #tpu.memory_space<vmem>>, vector<1x16x128xbf16>
    %53 = vector.shape_cast %52 : vector<1x16x128xbf16> to vector<16x128xbf16>
    %54 = vector.shape_cast %50 : vector<16x128xbf16> to vector<1x16x128xbf16>
    tpu.vector_store %arg15[%51, %c0_27, %c0_28], %54 {strides = array<i32>} : memref<8x16x128xbf16, #tpu.memory_space<vmem>>, vector<1x16x128xbf16>,
    %c1_i32 = arith.constant 1 : i32
    %55 = arith.index_cast %c1_i32 : i32 to index
    %c0_29 = arith.constant 0 : index
    %c0_30 = arith.constant 0 : index
    %56 = vector.load %arg16[%55, %c0_29, %c0_30] : memref<8x16x512xf32, #tpu.memory_space<vmem>>, vector<1x16x512xf32>
    %57 = vector.shape_cast %56 : vector<1x16x512xf32> to vector<16x512xf32>
    %cst_31 = arith.constant dense<0.000000e+00> : vector<16x512xf32>
    %58 = tpu.matmul %50, %11, %cst_31 {dimension_numbers = #tpu.dot_dimension_numbers<[1], [0], [0], [1], [0, 0, 1, 1], [], []>} : vector<16x128xbf16>, vector<128x512xbf16>, vector<16x512xf32> -> vector<16x512xf32>
    %59 = arith.addf %57, %58 : vector<16x512xf32>
    %60 = vector.extract_strided_slice %59 {offsets = [0, 0], sizes = [16, 128], strides = [1, 1]} : vector<16x512xf32> to vector<16x128xf32>
    %cst_32 = arith.constant 5.000000e-01 : f32
    %61 = vector.broadcast %cst_32 : f32 to vector<16x128xf32>
    %62 = arith.mulf %61, %60 : vector<16x128xf32>
    %63 = math.tanh %62 : vector<16x128xf32>
    %cst_33 = arith.constant 5.000000e-01 : f32
    %64 = vector.broadcast %cst_33 : f32 to vector<16x128xf32>
    %65 = arith.mulf %64, %63 : vector<16x128xf32>
    %cst_34 = arith.constant 5.000000e-01 : f32
    %66 = vector.broadcast %cst_34 : f32 to vector<16x128xf32>
    %67 = arith.addf %65, %66 : vector<16x128xf32>
    %68 = vector.extract_strided_slice %59 {offsets = [0, 128], sizes = [16, 128], strides = [1, 1]} : vector<16x512xf32> to vector<16x128xf32>
    %cst_35 = arith.constant 5.000000e-01 : f32
    %69 = vector.broadcast %cst_35 : f32 to vector<16x128xf32>
    %70 = arith.mulf %69, %68 : vector<16x128xf32>
    %71 = math.tanh %70 : vector<16x128xf32>
    %cst_36 = arith.constant 5.000000e-01 : f32
    %72 = vector.broadcast %cst_36 : f32 to vector<16x128xf32>
    %73 = arith.mulf %72, %71 : vector<16x128xf32>
    %cst_37 = arith.constant 5.000000e-01 : f32
    %74 = vector.broadcast %cst_37 : f32 to vector<16x128xf32>
    %75 = arith.addf %73, %74 : vector<16x128xf32>
    %76 = vector.extract_strided_slice %59 {offsets = [0, 256], sizes = [16, 128], strides = [1, 1]} : vector<16x512xf32> to vector<16x128xf32>
    %77 = math.tanh %76 : vector<16x128xf32>
    %78 = vector.extract_strided_slice %59 {offsets = [0, 384], sizes = [16, 128], strides = [1, 1]} : vector<16x512xf32> to vector<16x128xf32>
    %cst_38 = arith.constant 5.000000e-01 : f32
    %79 = vector.broadcast %cst_38 : f32 to vector<16x128xf32>
    %80 = arith.mulf %79, %78 : vector<16x128xf32>
    %81 = math.tanh %80 : vector<16x128xf32>
    %cst_39 = arith.constant 5.000000e-01 : f32
    %82 = vector.broadcast %cst_39 : f32 to vector<16x128xf32>
    %83 = arith.mulf %82, %81 : vector<16x128xf32>
    %cst_40 = arith.constant 5.000000e-01 : f32
    %84 = vector.broadcast %cst_40 : f32 to vector<16x128xf32>
    %85 = arith.addf %83, %84 : vector<16x128xf32>
    %86 = arith.mulf %75, %47 : vector<16x128xf32>
    %87 = arith.mulf %67, %77 : vector<16x128xf32>
    %88 = arith.addf %86, %87 : vector<16x128xf32>
    %89 = math.tanh %88 : vector<16x128xf32>
    %90 = arith.mulf %85, %89 : vector<16x128xf32>
    %91 = arith.truncf %90 : vector<16x128xf32> to vector<16x128xbf16>
    %92 = arith.index_cast %c1_i32 : i32 to index
    %c0_41 = arith.constant 0 : index
    %c0_42 = arith.constant 0 : index
    %93 = vector.load %arg15[%92, %c0_41, %c0_42] : memref<8x16x128xbf16, #tpu.memory_space<vmem>>, vector<1x16x128xbf16>
    %94 = vector.shape_cast %93 : vector<1x16x128xbf16> to vector<16x128xbf16>
    %95 = vector.shape_cast %91 : vector<16x128xbf16> to vector<1x16x128xbf16>
    tpu.vector_store %arg15[%92, %c0_41, %c0_42], %95 {strides = array<i32>} : memref<8x16x128xbf16, #tpu.memory_space<vmem>>, vector<1x16x128xbf16>,
    %c2_i32 = arith.constant 2 : i32
    %96 = arith.index_cast %c2_i32 : i32 to index
    %c0_43 = arith.constant 0 : index
    %c0_44 = arith.constant 0 : index
    %97 = vector.load %arg16[%96, %c0_43, %c0_44] : memref<8x16x512xf32, #tpu.memory_space<vmem>>, vector<1x16x512xf32>
    %98 = vector.shape_cast %97 : vector<1x16x512xf32> to vector<16x512xf32>
    %cst_45 = arith.constant dense<0.000000e+00> : vector<16x512xf32>
    %99 = tpu.matmul %91, %11, %cst_45 {dimension_numbers = #tpu.dot_dimension_numbers<[1], [0], [0], [1], [0, 0, 1, 1], [], []>} : vector<16x128xbf16>, vector<128x512xbf16>, vector<16x512xf32> -> vector<16x512xf32>
    %100 = arith.addf %98, %99 : vector<16x512xf32>
    %101 = vector.extract_strided_slice %100 {offsets = [0, 0], sizes = [16, 128], strides = [1, 1]} : vector<16x512xf32> to vector<16x128xf32>
    %cst_46 = arith.constant 5.000000e-01 : f32
    %102 = vector.broadcast %cst_46 : f32 to vector<16x128xf32>
    %103 = arith.mulf %102, %101 : vector<16x128xf32>
    %104 = math.tanh %103 : vector<16x128xf32>
    %cst_47 = arith.constant 5.000000e-01 : f32
    %105 = vector.broadcast %cst_47 : f32 to vector<16x128xf32>
    %106 = arith.mulf %105, %104 : vector<16x128xf32>
    %cst_48 = arith.constant 5.000000e-01 : f32
    %107 = vector.broadcast %cst_48 : f32 to vector<16x128xf32>
    %108 = arith.addf %106, %107 : vector<16x128xf32>
    %109 = vector.extract_strided_slice %100 {offsets = [0, 128], sizes = [16, 128], strides = [1, 1]} : vector<16x512xf32> to vector<16x128xf32>
    %cst_49 = arith.constant 5.000000e-01 : f32
    %110 = vector.broadcast %cst_49 : f32 to vector<16x128xf32>
    %111 = arith.mulf %110, %109 : vector<16x128xf32>
    %112 = math.tanh %111 : vector<16x128xf32>
    %cst_50 = arith.constant 5.000000e-01 : f32
    %113 = vector.broadcast %cst_50 : f32 to vector<16x128xf32>
    %114 = arith.mulf %113, %112 : vector<16x128xf32>
    %cst_51 = arith.constant 5.000000e-01 : f32
    %115 = vector.broadcast %cst_51 : f32 to vector<16x128xf32>
    %116 = arith.addf %114, %115 : vector<16x128xf32>
    %117 = vector.extract_strided_slice %100 {offsets = [0, 256], sizes = [16, 128], strides = [1, 1]} : vector<16x512xf32> to vector<16x128xf32>
    %118 = math.tanh %117 : vector<16x128xf32>
    %119 = vector.extract_strided_slice %100 {offsets = [0, 384], sizes = [16, 128], strides = [1, 1]} : vector<16x512xf32> to vector<16x128xf32>
    %cst_52 = arith.constant 5.000000e-01 : f32
    %120 = vector.broadcast %cst_52 : f32 to vector<16x128xf32>
    %121 = arith.mulf %120, %119 : vector<16x128xf32>
    %122 = math.tanh %121 : vector<16x128xf32>
    %cst_53 = arith.constant 5.000000e-01 : f32
    %123 = vector.broadcast %cst_53 : f32 to vector<16x128xf32>
    %124 = arith.mulf %123, %122 : vector<16x128xf32>
    %cst_54 = arith.constant 5.000000e-01 : f32
    %125 = vector.broadcast %cst_54 : f32 to vector<16x128xf32>
    %126 = arith.addf %124, %125 : vector<16x128xf32>
    %127 = arith.mulf %116, %88 : vector<16x128xf32>
    %128 = arith.mulf %108, %118 : vector<16x128xf32>
    %129 = arith.addf %127, %128 : vector<16x128xf32>
    %130 = math.tanh %129 : vector<16x128xf32>
    %131 = arith.mulf %126, %130 : vector<16x128xf32>
    %132 = arith.truncf %131 : vector<16x128xf32> to vector<16x128xbf16>
    %133 = arith.index_cast %c2_i32 : i32 to index
    %c0_55 = arith.constant 0 : index
    %c0_56 = arith.constant 0 : index
    %134 = vector.load %arg15[%133, %c0_55, %c0_56] : memref<8x16x128xbf16, #tpu.memory_space<vmem>>, vector<1x16x128xbf16>
    %135 = vector.shape_cast %134 : vector<1x16x128xbf16> to vector<16x128xbf16>
    %136 = vector.shape_cast %132 : vector<16x128xbf16> to vector<1x16x128xbf16>
    tpu.vector_store %arg15[%133, %c0_55, %c0_56], %136 {strides = array<i32>} : memref<8x16x128xbf16, #tpu.memory_space<vmem>>, vector<1x16x128xbf16>,
    %c3_i32 = arith.constant 3 : i32
    %137 = arith.index_cast %c3_i32 : i32 to index
    %c0_57 = arith.constant 0 : index
    %c0_58 = arith.constant 0 : index
    %138 = vector.load %arg16[%137, %c0_57, %c0_58] : memref<8x16x512xf32, #tpu.memory_space<vmem>>, vector<1x16x512xf32>
    %139 = vector.shape_cast %138 : vector<1x16x512xf32> to vector<16x512xf32>
    %cst_59 = arith.constant dense<0.000000e+00> : vector<16x512xf32>
    %140 = tpu.matmul %132, %11, %cst_59 {dimension_numbers = #tpu.dot_dimension_numbers<[1], [0], [0], [1], [0, 0, 1, 1], [], []>} : vector<16x128xbf16>, vector<128x512xbf16>, vector<16x512xf32> -> vector<16x512xf32>
    %141 = arith.addf %139, %140 : vector<16x512xf32>
    %142 = vector.extract_strided_slice %141 {offsets = [0, 0], sizes = [16, 128], strides = [1, 1]} : vector<16x512xf32> to vector<16x128xf32>
    %cst_60 = arith.constant 5.000000e-01 : f32
    %143 = vector.broadcast %cst_60 : f32 to vector<16x128xf32>
    %144 = arith.mulf %143, %142 : vector<16x128xf32>
    %145 = math.tanh %144 : vector<16x128xf32>
    %cst_61 = arith.constant 5.000000e-01 : f32
    %146 = vector.broadcast %cst_61 : f32 to vector<16x128xf32>
    %147 = arith.mulf %146, %145 : vector<16x128xf32>
    %cst_62 = arith.constant 5.000000e-01 : f32
    %148 = vector.broadcast %cst_62 : f32 to vector<16x128xf32>
    %149 = arith.addf %147, %148 : vector<16x128xf32>
    %150 = vector.extract_strided_slice %141 {offsets = [0, 128], sizes = [16, 128], strides = [1, 1]} : vector<16x512xf32> to vector<16x128xf32>
    %cst_63 = arith.constant 5.000000e-01 : f32
    %151 = vector.broadcast %cst_63 : f32 to vector<16x128xf32>
    %152 = arith.mulf %151, %150 : vector<16x128xf32>
    %153 = math.tanh %152 : vector<16x128xf32>
    %cst_64 = arith.constant 5.000000e-01 : f32
    %154 = vector.broadcast %cst_64 : f32 to vector<16x128xf32>
    %155 = arith.mulf %154, %153 : vector<16x128xf32>
    %cst_65 = arith.constant 5.000000e-01 : f32
    %156 = vector.broadcast %cst_65 : f32 to vector<16x128xf32>
    %157 = arith.addf %155, %156 : vector<16x128xf32>
    %158 = vector.extract_strided_slice %141 {offsets = [0, 256], sizes = [16, 128], strides = [1, 1]} : vector<16x512xf32> to vector<16x128xf32>
    %159 = math.tanh %158 : vector<16x128xf32>
    %160 = vector.extract_strided_slice %141 {offsets = [0, 384], sizes = [16, 128], strides = [1, 1]} : vector<16x512xf32> to vector<16x128xf32>
    %cst_66 = arith.constant 5.000000e-01 : f32
    %161 = vector.broadcast %cst_66 : f32 to vector<16x128xf32>
    %162 = arith.mulf %161, %160 : vector<16x128xf32>
    %163 = math.tanh %162 : vector<16x128xf32>
    %cst_67 = arith.constant 5.000000e-01 : f32
    %164 = vector.broadcast %cst_67 : f32 to vector<16x128xf32>
    %165 = arith.mulf %164, %163 : vector<16x128xf32>
    %cst_68 = arith.constant 5.000000e-01 : f32
    %166 = vector.broadcast %cst_68 : f32 to vector<16x128xf32>
    %167 = arith.addf %165, %166 : vector<16x128xf32>
    %168 = arith.mulf %157, %129 : vector<16x128xf32>
    %169 = arith.mulf %149, %159 : vector<16x128xf32>
    %170 = arith.addf %168, %169 : vector<16x128xf32>
    %171 = math.tanh %170 : vector<16x128xf32>
    %172 = arith.mulf %167, %171 : vector<16x128xf32>
    %173 = arith.truncf %172 : vector<16x128xf32> to vector<16x128xbf16>
    %174 = arith.index_cast %c3_i32 : i32 to index
    %c0_69 = arith.constant 0 : index
    %c0_70 = arith.constant 0 : index
    %175 = vector.load %arg15[%174, %c0_69, %c0_70] : memref<8x16x128xbf16, #tpu.memory_space<vmem>>, vector<1x16x128xbf16>
    %176 = vector.shape_cast %175 : vector<1x16x128xbf16> to vector<16x128xbf16>
    %177 = vector.shape_cast %173 : vector<16x128xbf16> to vector<1x16x128xbf16>
    tpu.vector_store %arg15[%174, %c0_69, %c0_70], %177 {strides = array<i32>} : memref<8x16x128xbf16, #tpu.memory_space<vmem>>, vector<1x16x128xbf16>,
    %c4_i32 = arith.constant 4 : i32
    %178 = arith.index_cast %c4_i32 : i32 to index
    %c0_71 = arith.constant 0 : index
    %c0_72 = arith.constant 0 : index
    %179 = vector.load %arg16[%178, %c0_71, %c0_72] : memref<8x16x512xf32, #tpu.memory_space<vmem>>, vector<1x16x512xf32>
    %180 = vector.shape_cast %179 : vector<1x16x512xf32> to vector<16x512xf32>
    %cst_73 = arith.constant dense<0.000000e+00> : vector<16x512xf32>
    %181 = tpu.matmul %173, %11, %cst_73 {dimension_numbers = #tpu.dot_dimension_numbers<[1], [0], [0], [1], [0, 0, 1, 1], [], []>} : vector<16x128xbf16>, vector<128x512xbf16>, vector<16x512xf32> -> vector<16x512xf32>
    %182 = arith.addf %180, %181 : vector<16x512xf32>
    %183 = vector.extract_strided_slice %182 {offsets = [0, 0], sizes = [16, 128], strides = [1, 1]} : vector<16x512xf32> to vector<16x128xf32>
    %cst_74 = arith.constant 5.000000e-01 : f32
    %184 = vector.broadcast %cst_74 : f32 to vector<16x128xf32>
    %185 = arith.mulf %184, %183 : vector<16x128xf32>
    %186 = math.tanh %185 : vector<16x128xf32>
    %cst_75 = arith.constant 5.000000e-01 : f32
    %187 = vector.broadcast %cst_75 : f32 to vector<16x128xf32>
    %188 = arith.mulf %187, %186 : vector<16x128xf32>
    %cst_76 = arith.constant 5.000000e-01 : f32
    %189 = vector.broadcast %cst_76 : f32 to vector<16x128xf32>
    %190 = arith.addf %188, %189 : vector<16x128xf32>
    %191 = vector.extract_strided_slice %182 {offsets = [0, 128], sizes = [16, 128], strides = [1, 1]} : vector<16x512xf32> to vector<16x128xf32>
    %cst_77 = arith.constant 5.000000e-01 : f32
    %192 = vector.broadcast %cst_77 : f32 to vector<16x128xf32>
    %193 = arith.mulf %192, %191 : vector<16x128xf32>
    %194 = math.tanh %193 : vector<16x128xf32>
    %cst_78 = arith.constant 5.000000e-01 : f32
    %195 = vector.broadcast %cst_78 : f32 to vector<16x128xf32>
    %196 = arith.mulf %195, %194 : vector<16x128xf32>
    %cst_79 = arith.constant 5.000000e-01 : f32
    %197 = vector.broadcast %cst_79 : f32 to vector<16x128xf32>
    %198 = arith.addf %196, %197 : vector<16x128xf32>
    %199 = vector.extract_strided_slice %182 {offsets = [0, 256], sizes = [16, 128], strides = [1, 1]} : vector<16x512xf32> to vector<16x128xf32>
    %200 = math.tanh %199 : vector<16x128xf32>
    %201 = vector.extract_strided_slice %182 {offsets = [0, 384], sizes = [16, 128], strides = [1, 1]} : vector<16x512xf32> to vector<16x128xf32>
    %cst_80 = arith.constant 5.000000e-01 : f32
    %202 = vector.broadcast %cst_80 : f32 to vector<16x128xf32>
    %203 = arith.mulf %202, %201 : vector<16x128xf32>
    %204 = math.tanh %203 : vector<16x128xf32>
    %cst_81 = arith.constant 5.000000e-01 : f32
    %205 = vector.broadcast %cst_81 : f32 to vector<16x128xf32>
    %206 = arith.mulf %205, %204 : vector<16x128xf32>
    %cst_82 = arith.constant 5.000000e-01 : f32
    %207 = vector.broadcast %cst_82 : f32 to vector<16x128xf32>
    %208 = arith.addf %206, %207 : vector<16x128xf32>
    %209 = arith.mulf %198, %170 : vector<16x128xf32>
    %210 = arith.mulf %190, %200 : vector<16x128xf32>
    %211 = arith.addf %209, %210 : vector<16x128xf32>
    %212 = math.tanh %211 : vector<16x128xf32>
    %213 = arith.mulf %208, %212 : vector<16x128xf32>
    %214 = arith.truncf %213 : vector<16x128xf32> to vector<16x128xbf16>
    %215 = arith.index_cast %c4_i32 : i32 to index
    %c0_83 = arith.constant 0 : index
    %c0_84 = arith.constant 0 : index
    %216 = vector.load %arg15[%215, %c0_83, %c0_84] : memref<8x16x128xbf16, #tpu.memory_space<vmem>>, vector<1x16x128xbf16>
    %217 = vector.shape_cast %216 : vector<1x16x128xbf16> to vector<16x128xbf16>
    %218 = vector.shape_cast %214 : vector<16x128xbf16> to vector<1x16x128xbf16>
    tpu.vector_store %arg15[%215, %c0_83, %c0_84], %218 {strides = array<i32>} : memref<8x16x128xbf16, #tpu.memory_space<vmem>>, vector<1x16x128xbf16>,
    %c5_i32 = arith.constant 5 : i32
    %219 = arith.index_cast %c5_i32 : i32 to index
    %c0_85 = arith.constant 0 : index
    %c0_86 = arith.constant 0 : index
    %220 = vector.load %arg16[%219, %c0_85, %c0_86] : memref<8x16x512xf32, #tpu.memory_space<vmem>>, vector<1x16x512xf32>
    %221 = vector.shape_cast %220 : vector<1x16x512xf32> to vector<16x512xf32>
    %cst_87 = arith.constant dense<0.000000e+00> : vector<16x512xf32>
    %222 = tpu.matmul %214, %11, %cst_87 {dimension_numbers = #tpu.dot_dimension_numbers<[1], [0], [0], [1], [0, 0, 1, 1], [], []>} : vector<16x128xbf16>, vector<128x512xbf16>, vector<16x512xf32> -> vector<16x512xf32>
    %223 = arith.addf %221, %222 : vector<16x512xf32>
    %224 = vector.extract_strided_slice %223 {offsets = [0, 0], sizes = [16, 128], strides = [1, 1]} : vector<16x512xf32> to vector<16x128xf32>
    %cst_88 = arith.constant 5.000000e-01 : f32
    %225 = vector.broadcast %cst_88 : f32 to vector<16x128xf32>
    %226 = arith.mulf %225, %224 : vector<16x128xf32>
    %227 = math.tanh %226 : vector<16x128xf32>
    %cst_89 = arith.constant 5.000000e-01 : f32
    %228 = vector.broadcast %cst_89 : f32 to vector<16x128xf32>
    %229 = arith.mulf %228, %227 : vector<16x128xf32>
    %cst_90 = arith.constant 5.000000e-01 : f32
    %230 = vector.broadcast %cst_90 : f32 to vector<16x128xf32>
    %231 = arith.addf %229, %230 : vector<16x128xf32>
    %232 = vector.extract_strided_slice %223 {offsets = [0, 128], sizes = [16, 128], strides = [1, 1]} : vector<16x512xf32> to vector<16x128xf32>
    %cst_91 = arith.constant 5.000000e-01 : f32
    %233 = vector.broadcast %cst_91 : f32 to vector<16x128xf32>
    %234 = arith.mulf %233, %232 : vector<16x128xf32>
    %235 = math.tanh %234 : vector<16x128xf32>
    %cst_92 = arith.constant 5.000000e-01 : f32
    %236 = vector.broadcast %cst_92 : f32 to vector<16x128xf32>
    %237 = arith.mulf %236, %235 : vector<16x128xf32>
    %cst_93 = arith.constant 5.000000e-01 : f32
    %238 = vector.broadcast %cst_93 : f32 to vector<16x128xf32>
    %239 = arith.addf %237, %238 : vector<16x128xf32>
    %240 = vector.extract_strided_slice %223 {offsets = [0, 256], sizes = [16, 128], strides = [1, 1]} : vector<16x512xf32> to vector<16x128xf32>
    %241 = math.tanh %240 : vector<16x128xf32>
    %242 = vector.extract_strided_slice %223 {offsets = [0, 384], sizes = [16, 128], strides = [1, 1]} : vector<16x512xf32> to vector<16x128xf32>
    %cst_94 = arith.constant 5.000000e-01 : f32
    %243 = vector.broadcast %cst_94 : f32 to vector<16x128xf32>
    %244 = arith.mulf %243, %242 : vector<16x128xf32>
    %245 = math.tanh %244 : vector<16x128xf32>
    %cst_95 = arith.constant 5.000000e-01 : f32
    %246 = vector.broadcast %cst_95 : f32 to vector<16x128xf32>
    %247 = arith.mulf %246, %245 : vector<16x128xf32>
    %cst_96 = arith.constant 5.000000e-01 : f32
    %248 = vector.broadcast %cst_96 : f32 to vector<16x128xf32>
    %249 = arith.addf %247, %248 : vector<16x128xf32>
    %250 = arith.mulf %239, %211 : vector<16x128xf32>
    %251 = arith.mulf %231, %241 : vector<16x128xf32>
    %252 = arith.addf %250, %251 : vector<16x128xf32>
    %253 = math.tanh %252 : vector<16x128xf32>
    %254 = arith.mulf %249, %253 : vector<16x128xf32>
    %255 = arith.truncf %254 : vector<16x128xf32> to vector<16x128xbf16>
    %256 = arith.index_cast %c5_i32 : i32 to index
    %c0_97 = arith.constant 0 : index
    %c0_98 = arith.constant 0 : index
    %257 = vector.load %arg15[%256, %c0_97, %c0_98] : memref<8x16x128xbf16, #tpu.memory_space<vmem>>, vector<1x16x128xbf16>
    %258 = vector.shape_cast %257 : vector<1x16x128xbf16> to vector<16x128xbf16>
    %259 = vector.shape_cast %255 : vector<16x128xbf16> to vector<1x16x128xbf16>
    tpu.vector_store %arg15[%256, %c0_97, %c0_98], %259 {strides = array<i32>} : memref<8x16x128xbf16, #tpu.memory_space<vmem>>, vector<1x16x128xbf16>,
    %c6_i32 = arith.constant 6 : i32
    %260 = arith.index_cast %c6_i32 : i32 to index
    %c0_99 = arith.constant 0 : index
    %c0_100 = arith.constant 0 : index
    %261 = vector.load %arg16[%260, %c0_99, %c0_100] : memref<8x16x512xf32, #tpu.memory_space<vmem>>, vector<1x16x512xf32>
    %262 = vector.shape_cast %261 : vector<1x16x512xf32> to vector<16x512xf32>
    %cst_101 = arith.constant dense<0.000000e+00> : vector<16x512xf32>
    %263 = tpu.matmul %255, %11, %cst_101 {dimension_numbers = #tpu.dot_dimension_numbers<[1], [0], [0], [1], [0, 0, 1, 1], [], []>} : vector<16x128xbf16>, vector<128x512xbf16>, vector<16x512xf32> -> vector<16x512xf32>
    %264 = arith.addf %262, %263 : vector<16x512xf32>
    %265 = vector.extract_strided_slice %264 {offsets = [0, 0], sizes = [16, 128], strides = [1, 1]} : vector<16x512xf32> to vector<16x128xf32>
    %cst_102 = arith.constant 5.000000e-01 : f32
    %266 = vector.broadcast %cst_102 : f32 to vector<16x128xf32>
    %267 = arith.mulf %266, %265 : vector<16x128xf32>
    %268 = math.tanh %267 : vector<16x128xf32>
    %cst_103 = arith.constant 5.000000e-01 : f32
    %269 = vector.broadcast %cst_103 : f32 to vector<16x128xf32>
    %270 = arith.mulf %269, %268 : vector<16x128xf32>
    %cst_104 = arith.constant 5.000000e-01 : f32
    %271 = vector.broadcast %cst_104 : f32 to vector<16x128xf32>
    %272 = arith.addf %270, %271 : vector<16x128xf32>
    %273 = vector.extract_strided_slice %264 {offsets = [0, 128], sizes = [16, 128], strides = [1, 1]} : vector<16x512xf32> to vector<16x128xf32>
    %cst_105 = arith.constant 5.000000e-01 : f32
    %274 = vector.broadcast %cst_105 : f32 to vector<16x128xf32>
    %275 = arith.mulf %274, %273 : vector<16x128xf32>
    %276 = math.tanh %275 : vector<16x128xf32>
    %cst_106 = arith.constant 5.000000e-01 : f32
    %277 = vector.broadcast %cst_106 : f32 to vector<16x128xf32>
    %278 = arith.mulf %277, %276 : vector<16x128xf32>
    %cst_107 = arith.constant 5.000000e-01 : f32
    %279 = vector.broadcast %cst_107 : f32 to vector<16x128xf32>
    %280 = arith.addf %278, %279 : vector<16x128xf32>
    %281 = vector.extract_strided_slice %264 {offsets = [0, 256], sizes = [16, 128], strides = [1, 1]} : vector<16x512xf32> to vector<16x128xf32>
    %282 = math.tanh %281 : vector<16x128xf32>
    %283 = vector.extract_strided_slice %264 {offsets = [0, 384], sizes = [16, 128], strides = [1, 1]} : vector<16x512xf32> to vector<16x128xf32>
    %cst_108 = arith.constant 5.000000e-01 : f32
    %284 = vector.broadcast %cst_108 : f32 to vector<16x128xf32>
    %285 = arith.mulf %284, %283 : vector<16x128xf32>
    %286 = math.tanh %285 : vector<16x128xf32>
    %cst_109 = arith.constant 5.000000e-01 : f32
    %287 = vector.broadcast %cst_109 : f32 to vector<16x128xf32>
    %288 = arith.mulf %287, %286 : vector<16x128xf32>
    %cst_110 = arith.constant 5.000000e-01 : f32
    %289 = vector.broadcast %cst_110 : f32 to vector<16x128xf32>
    %290 = arith.addf %288, %289 : vector<16x128xf32>
    %291 = arith.mulf %280, %252 : vector<16x128xf32>
    %292 = arith.mulf %272, %282 : vector<16x128xf32>
    %293 = arith.addf %291, %292 : vector<16x128xf32>
    %294 = math.tanh %293 : vector<16x128xf32>
    %295 = arith.mulf %290, %294 : vector<16x128xf32>
    %296 = arith.truncf %295 : vector<16x128xf32> to vector<16x128xbf16>
    %297 = arith.index_cast %c6_i32 : i32 to index
    %c0_111 = arith.constant 0 : index
    %c0_112 = arith.constant 0 : index
    %298 = vector.load %arg15[%297, %c0_111, %c0_112] : memref<8x16x128xbf16, #tpu.memory_space<vmem>>, vector<1x16x128xbf16>
    %299 = vector.shape_cast %298 : vector<1x16x128xbf16> to vector<16x128xbf16>
    %300 = vector.shape_cast %296 : vector<16x128xbf16> to vector<1x16x128xbf16>
    tpu.vector_store %arg15[%297, %c0_111, %c0_112], %300 {strides = array<i32>} : memref<8x16x128xbf16, #tpu.memory_space<vmem>>, vector<1x16x128xbf16>,
    %c7_i32 = arith.constant 7 : i32
    %301 = arith.index_cast %c7_i32 : i32 to index
    %c0_113 = arith.constant 0 : index
    %c0_114 = arith.constant 0 : index
    %302 = vector.load %arg16[%301, %c0_113, %c0_114] : memref<8x16x512xf32, #tpu.memory_space<vmem>>, vector<1x16x512xf32>
    %303 = vector.shape_cast %302 : vector<1x16x512xf32> to vector<16x512xf32>
    %cst_115 = arith.constant dense<0.000000e+00> : vector<16x512xf32>
    %304 = tpu.matmul %296, %11, %cst_115 {dimension_numbers = #tpu.dot_dimension_numbers<[1], [0], [0], [1], [0, 0, 1, 1], [], []>} : vector<16x128xbf16>, vector<128x512xbf16>, vector<16x512xf32> -> vector<16x512xf32>
    %305 = arith.addf %303, %304 : vector<16x512xf32>
    %306 = vector.extract_strided_slice %305 {offsets = [0, 0], sizes = [16, 128], strides = [1, 1]} : vector<16x512xf32> to vector<16x128xf32>
    %cst_116 = arith.constant 5.000000e-01 : f32
    %307 = vector.broadcast %cst_116 : f32 to vector<16x128xf32>
    %308 = arith.mulf %307, %306 : vector<16x128xf32>
    %309 = math.tanh %308 : vector<16x128xf32>
    %cst_117 = arith.constant 5.000000e-01 : f32
    %310 = vector.broadcast %cst_117 : f32 to vector<16x128xf32>
    %311 = arith.mulf %310, %309 : vector<16x128xf32>
    %cst_118 = arith.constant 5.000000e-01 : f32
    %312 = vector.broadcast %cst_118 : f32 to vector<16x128xf32>
    %313 = arith.addf %311, %312 : vector<16x128xf32>
    %314 = vector.extract_strided_slice %305 {offsets = [0, 128], sizes = [16, 128], strides = [1, 1]} : vector<16x512xf32> to vector<16x128xf32>
    %cst_119 = arith.constant 5.000000e-01 : f32
    %315 = vector.broadcast %cst_119 : f32 to vector<16x128xf32>
    %316 = arith.mulf %315, %314 : vector<16x128xf32>
    %317 = math.tanh %316 : vector<16x128xf32>
    %cst_120 = arith.constant 5.000000e-01 : f32
    %318 = vector.broadcast %cst_120 : f32 to vector<16x128xf32>
    %319 = arith.mulf %318, %317 : vector<16x128xf32>
    %cst_121 = arith.constant 5.000000e-01 : f32
    %320 = vector.broadcast %cst_121 : f32 to vector<16x128xf32>
    %321 = arith.addf %319, %320 : vector<16x128xf32>
    %322 = vector.extract_strided_slice %305 {offsets = [0, 256], sizes = [16, 128], strides = [1, 1]} : vector<16x512xf32> to vector<16x128xf32>
    %323 = math.tanh %322 : vector<16x128xf32>
    %324 = vector.extract_strided_slice %305 {offsets = [0, 384], sizes = [16, 128], strides = [1, 1]} : vector<16x512xf32> to vector<16x128xf32>
    %cst_122 = arith.constant 5.000000e-01 : f32
    %325 = vector.broadcast %cst_122 : f32 to vector<16x128xf32>
    %326 = arith.mulf %325, %324 : vector<16x128xf32>
    %327 = math.tanh %326 : vector<16x128xf32>
    %cst_123 = arith.constant 5.000000e-01 : f32
    %328 = vector.broadcast %cst_123 : f32 to vector<16x128xf32>
    %329 = arith.mulf %328, %327 : vector<16x128xf32>
    %cst_124 = arith.constant 5.000000e-01 : f32
    %330 = vector.broadcast %cst_124 : f32 to vector<16x128xf32>
    %331 = arith.addf %329, %330 : vector<16x128xf32>
    %332 = arith.mulf %321, %293 : vector<16x128xf32>
    %333 = arith.mulf %313, %323 : vector<16x128xf32>
    %334 = arith.addf %332, %333 : vector<16x128xf32>
    %335 = math.tanh %334 : vector<16x128xf32>
    %336 = arith.mulf %331, %335 : vector<16x128xf32>
    %337 = arith.truncf %336 : vector<16x128xf32> to vector<16x128xbf16>
    %338 = arith.index_cast %c7_i32 : i32 to index
    %c0_125 = arith.constant 0 : index
    %c0_126 = arith.constant 0 : index
    %339 = vector.load %arg15[%338, %c0_125, %c0_126] : memref<8x16x128xbf16, #tpu.memory_space<vmem>>, vector<1x16x128xbf16>
    %340 = vector.shape_cast %339 : vector<1x16x128xbf16> to vector<16x128xbf16>
    %341 = vector.shape_cast %337 : vector<16x128xbf16> to vector<1x16x128xbf16>
    tpu.vector_store %arg15[%338, %c0_125, %c0_126], %341 {strides = array<i32>} : memref<8x16x128xbf16, #tpu.memory_space<vmem>>, vector<1x16x128xbf16>,
    %c8_i32 = arith.constant 8 : i32
    %c0_127 = arith.constant 0 : index
    %c0_128 = arith.constant 0 : index
    %c0_129 = arith.constant 0 : index
    %342 = vector.load %arg15[%c0_127, %c0_128, %c0_129] : memref<8x16x128xbf16, #tpu.memory_space<vmem>>, vector<8x16x128xbf16>
    %343 = vector.shape_cast %342 : vector<8x16x128xbf16> to vector<128x128xbf16>
    %c0_130 = arith.constant 0 : index
    %c0_131 = arith.constant 0 : index
    %c0_132 = arith.constant 0 : index
    %344 = vector.load %arg4[%c0_130, %c0_131, %c0_132] : memref<1x128x512xbf16, #tpu.memory_space<vmem>>, vector<1x128x512xbf16>
    %345 = vector.shape_cast %344 : vector<1x128x512xbf16> to vector<128x512xbf16>
    %cst_133 = arith.constant dense<0.000000e+00> : vector<128x512xf32>
    %346 = tpu.matmul %343, %345, %cst_133 {dimension_numbers = #tpu.dot_dimension_numbers<[1], [0], [0], [1], [0, 0, 1, 1], [], []>} : vector<128x128xbf16>, vector<128x512xbf16>, vector<128x512xf32> -> vector<128x512xf32>
    %c1 = arith.constant 1 : index
    %c0_134 = arith.constant 0 : index
    %c0_135 = arith.constant 0 : index
    %347 = vector.load %arg6[%c1, %c0_134, %c0_135] : memref<2x1x512xf32, #tpu.memory_space<vmem>>, vector<1x1x512xf32>
    %348 = vector.shape_cast %347 : vector<1x1x512xf32> to vector<1x512xf32>
    %349 = vector.broadcast %348 : vector<1x512xf32> to vector<128x512xf32>
    %350 = arith.addf %346, %349 : vector<128x512xf32>
    %351 = vector.shape_cast %350 : vector<128x512xf32> to vector<8x16x512xf32>
    %c0_136 = arith.constant 0 : index
    %c0_137 = arith.constant 0 : index
    %c0_138 = arith.constant 0 : index
    %352 = vector.load %arg16[%c0_136, %c0_137, %c0_138] : memref<8x16x512xf32, #tpu.memory_space<vmem>>, vector<8x16x512xf32>
    tpu.vector_store %arg16[%c0_136, %c0_137, %c0_138], %351 {strides = array<i32>} : memref<8x16x512xf32, #tpu.memory_space<vmem>>, vector<8x16x512xf32>,
    %c1_139 = arith.constant 1 : index
    %c0_140 = arith.constant 0 : index
    %c0_141 = arith.constant 0 : index
    %353 = vector.load %arg5[%c1_139, %c0_140, %c0_141] : memref<2x128x512xbf16, #tpu.memory_space<vmem>>, vector<1x128x512xbf16>
    %354 = vector.shape_cast %353 : vector<1x128x512xbf16> to vector<128x512xbf16>
    %cst_142 = arith.constant 0.000000e+00 : bf16
    %355 = vector.broadcast %cst_142 : bf16 to vector<16x128xbf16>
    %cst_143 = arith.constant 0.000000e+00 : f32
    %356 = vector.broadcast %cst_143 : f32 to vector<16x128xf32>
    %c0_i32_144 = arith.constant 0 : i32
    %357 = arith.index_cast %c0_i32_144 : i32 to index
    %c0_145 = arith.constant 0 : index
    %c0_146 = arith.constant 0 : index
    %358 = vector.load %arg16[%357, %c0_145, %c0_146] : memref<8x16x512xf32, #tpu.memory_space<vmem>>, vector<1x16x512xf32>
    %359 = vector.shape_cast %358 : vector<1x16x512xf32> to vector<16x512xf32>
    %cst_147 = arith.constant dense<0.000000e+00> : vector<16x512xf32>
    %360 = tpu.matmul %355, %354, %cst_147 {dimension_numbers = #tpu.dot_dimension_numbers<[1], [0], [0], [1], [0, 0, 1, 1], [], []>} : vector<16x128xbf16>, vector<128x512xbf16>, vector<16x512xf32> -> vector<16x512xf32>
    %361 = arith.addf %359, %360 : vector<16x512xf32>
    %362 = vector.extract_strided_slice %361 {offsets = [0, 0], sizes = [16, 128], strides = [1, 1]} : vector<16x512xf32> to vector<16x128xf32>
    %cst_148 = arith.constant 5.000000e-01 : f32
    %363 = vector.broadcast %cst_148 : f32 to vector<16x128xf32>
    %364 = arith.mulf %363, %362 : vector<16x128xf32>
    %365 = math.tanh %364 : vector<16x128xf32>
    %cst_149 = arith.constant 5.000000e-01 : f32
    %366 = vector.broadcast %cst_149 : f32 to vector<16x128xf32>
    %367 = arith.mulf %366, %365 : vector<16x128xf32>
    %cst_150 = arith.constant 5.000000e-01 : f32
    %368 = vector.broadcast %cst_150 : f32 to vector<16x128xf32>
    %369 = arith.addf %367, %368 : vector<16x128xf32>
    %370 = vector.extract_strided_slice %361 {offsets = [0, 128], sizes = [16, 128], strides = [1, 1]} : vector<16x512xf32> to vector<16x128xf32>
    %cst_151 = arith.constant 5.000000e-01 : f32
    %371 = vector.broadcast %cst_151 : f32 to vector<16x128xf32>
    %372 = arith.mulf %371, %370 : vector<16x128xf32>
    %373 = math.tanh %372 : vector<16x128xf32>
    %cst_152 = arith.constant 5.000000e-01 : f32
    %374 = vector.broadcast %cst_152 : f32 to vector<16x128xf32>
    %375 = arith.mulf %374, %373 : vector<16x128xf32>
    %cst_153 = arith.constant 5.000000e-01 : f32
    %376 = vector.broadcast %cst_153 : f32 to vector<16x128xf32>
    %377 = arith.addf %375, %376 : vector<16x128xf32>
    %378 = vector.extract_strided_slice %361 {offsets = [0, 256], sizes = [16, 128], strides = [1, 1]} : vector<16x512xf32> to vector<16x128xf32>
    %379 = math.tanh %378 : vector<16x128xf32>
    %380 = vector.extract_strided_slice %361 {offsets = [0, 384], sizes = [16, 128], strides = [1, 1]} : vector<16x512xf32> to vector<16x128xf32>
    %cst_154 = arith.constant 5.000000e-01 : f32
    %381 = vector.broadcast %cst_154 : f32 to vector<16x128xf32>
    %382 = arith.mulf %381, %380 : vector<16x128xf32>
    %383 = math.tanh %382 : vector<16x128xf32>
    %cst_155 = arith.constant 5.000000e-01 : f32
    %384 = vector.broadcast %cst_155 : f32 to vector<16x128xf32>
    %385 = arith.mulf %384, %383 : vector<16x128xf32>
    %cst_156 = arith.constant 5.000000e-01 : f32
    %386 = vector.broadcast %cst_156 : f32 to vector<16x128xf32>
    %387 = arith.addf %385, %386 : vector<16x128xf32>
    %388 = arith.mulf %377, %356 : vector<16x128xf32>
    %389 = arith.mulf %369, %379 : vector<16x128xf32>
    %390 = arith.addf %388, %389 : vector<16x128xf32>
    %391 = math.tanh %390 : vector<16x128xf32>
    %392 = arith.mulf %387, %391 : vector<16x128xf32>
    %393 = arith.truncf %392 : vector<16x128xf32> to vector<16x128xbf16>
    %394 = arith.index_cast %c0_i32_144 : i32 to index
    %c0_157 = arith.constant 0 : index
    %c0_158 = arith.constant 0 : index
    %395 = vector.load %arg15[%394, %c0_157, %c0_158] : memref<8x16x128xbf16, #tpu.memory_space<vmem>>, vector<1x16x128xbf16>
    %396 = vector.shape_cast %395 : vector<1x16x128xbf16> to vector<16x128xbf16>
    %397 = vector.shape_cast %393 : vector<16x128xbf16> to vector<1x16x128xbf16>
    tpu.vector_store %arg15[%394, %c0_157, %c0_158], %397 {strides = array<i32>} : memref<8x16x128xbf16, #tpu.memory_space<vmem>>, vector<1x16x128xbf16>,
    %398 = arith.index_cast %c0_i32_144 : i32 to index
    %c0_159 = arith.constant 0 : index
    %c0_160 = arith.constant 0 : index
    %399 = vector.load %arg12[%398, %c0_159, %c0_160] : memref<8x16x128xf32, #tpu.memory_space<vmem>>, vector<1x16x128xf32>
    %400 = vector.shape_cast %399 : vector<1x16x128xf32> to vector<16x128xf32>
    %401 = vector.shape_cast %392 : vector<16x128xf32> to vector<1x16x128xf32>
    tpu.vector_store %arg12[%398, %c0_159, %c0_160], %401 {strides = array<i32>} : memref<8x16x128xf32, #tpu.memory_space<vmem>>, vector<1x16x128xf32>,
    %c1_i32_161 = arith.constant 1 : i32
    %402 = arith.index_cast %c1_i32_161 : i32 to index
    %c0_162 = arith.constant 0 : index
    %c0_163 = arith.constant 0 : index
    %403 = vector.load %arg16[%402, %c0_162, %c0_163] : memref<8x16x512xf32, #tpu.memory_space<vmem>>, vector<1x16x512xf32>
    %404 = vector.shape_cast %403 : vector<1x16x512xf32> to vector<16x512xf32>
    %cst_164 = arith.constant dense<0.000000e+00> : vector<16x512xf32>
    %405 = tpu.matmul %393, %354, %cst_164 {dimension_numbers = #tpu.dot_dimension_numbers<[1], [0], [0], [1], [0, 0, 1, 1], [], []>} : vector<16x128xbf16>, vector<128x512xbf16>, vector<16x512xf32> -> vector<16x512xf32>
    %406 = arith.addf %404, %405 : vector<16x512xf32>
    %407 = vector.extract_strided_slice %406 {offsets = [0, 0], sizes = [16, 128], strides = [1, 1]} : vector<16x512xf32> to vector<16x128xf32>
    %cst_165 = arith.constant 5.000000e-01 : f32
    %408 = vector.broadcast %cst_165 : f32 to vector<16x128xf32>
    %409 = arith.mulf %408, %407 : vector<16x128xf32>
    %410 = math.tanh %409 : vector<16x128xf32>
    %cst_166 = arith.constant 5.000000e-01 : f32
    %411 = vector.broadcast %cst_166 : f32 to vector<16x128xf32>
    %412 = arith.mulf %411, %410 : vector<16x128xf32>
    %cst_167 = arith.constant 5.000000e-01 : f32
    %413 = vector.broadcast %cst_167 : f32 to vector<16x128xf32>
    %414 = arith.addf %412, %413 : vector<16x128xf32>
    %415 = vector.extract_strided_slice %406 {offsets = [0, 128], sizes = [16, 128], strides = [1, 1]} : vector<16x512xf32> to vector<16x128xf32>
    %cst_168 = arith.constant 5.000000e-01 : f32
    %416 = vector.broadcast %cst_168 : f32 to vector<16x128xf32>
    %417 = arith.mulf %416, %415 : vector<16x128xf32>
    %418 = math.tanh %417 : vector<16x128xf32>
    %cst_169 = arith.constant 5.000000e-01 : f32
    %419 = vector.broadcast %cst_169 : f32 to vector<16x128xf32>
    %420 = arith.mulf %419, %418 : vector<16x128xf32>
    %cst_170 = arith.constant 5.000000e-01 : f32
    %421 = vector.broadcast %cst_170 : f32 to vector<16x128xf32>
    %422 = arith.addf %420, %421 : vector<16x128xf32>
    %423 = vector.extract_strided_slice %406 {offsets = [0, 256], sizes = [16, 128], strides = [1, 1]} : vector<16x512xf32> to vector<16x128xf32>
    %424 = math.tanh %423 : vector<16x128xf32>
    %425 = vector.extract_strided_slice %406 {offsets = [0, 384], sizes = [16, 128], strides = [1, 1]} : vector<16x512xf32> to vector<16x128xf32>
    %cst_171 = arith.constant 5.000000e-01 : f32
    %426 = vector.broadcast %cst_171 : f32 to vector<16x128xf32>
    %427 = arith.mulf %426, %425 : vector<16x128xf32>
    %428 = math.tanh %427 : vector<16x128xf32>
    %cst_172 = arith.constant 5.000000e-01 : f32
    %429 = vector.broadcast %cst_172 : f32 to vector<16x128xf32>
    %430 = arith.mulf %429, %428 : vector<16x128xf32>
    %cst_173 = arith.constant 5.000000e-01 : f32
    %431 = vector.broadcast %cst_173 : f32 to vector<16x128xf32>
    %432 = arith.addf %430, %431 : vector<16x128xf32>
    %433 = arith.mulf %422, %390 : vector<16x128xf32>
    %434 = arith.mulf %414, %424 : vector<16x128xf32>
    %435 = arith.addf %433, %434 : vector<16x128xf32>
    %436 = math.tanh %435 : vector<16x128xf32>
    %437 = arith.mulf %432, %436 : vector<16x128xf32>
    %438 = arith.truncf %437 : vector<16x128xf32> to vector<16x128xbf16>
    %439 = arith.index_cast %c1_i32_161 : i32 to index
    %c0_174 = arith.constant 0 : index
    %c0_175 = arith.constant 0 : index
    %440 = vector.load %arg15[%439, %c0_174, %c0_175] : memref<8x16x128xbf16, #tpu.memory_space<vmem>>, vector<1x16x128xbf16>
    %441 = vector.shape_cast %440 : vector<1x16x128xbf16> to vector<16x128xbf16>
    %442 = vector.shape_cast %438 : vector<16x128xbf16> to vector<1x16x128xbf16>
    tpu.vector_store %arg15[%439, %c0_174, %c0_175], %442 {strides = array<i32>} : memref<8x16x128xbf16, #tpu.memory_space<vmem>>, vector<1x16x128xbf16>,
    %443 = arith.index_cast %c1_i32_161 : i32 to index
    %c0_176 = arith.constant 0 : index
    %c0_177 = arith.constant 0 : index
    %444 = vector.load %arg12[%443, %c0_176, %c0_177] : memref<8x16x128xf32, #tpu.memory_space<vmem>>, vector<1x16x128xf32>
    %445 = vector.shape_cast %444 : vector<1x16x128xf32> to vector<16x128xf32>
    %446 = vector.shape_cast %437 : vector<16x128xf32> to vector<1x16x128xf32>
    tpu.vector_store %arg12[%443, %c0_176, %c0_177], %446 {strides = array<i32>} : memref<8x16x128xf32, #tpu.memory_space<vmem>>, vector<1x16x128xf32>,
    %c2_i32_178 = arith.constant 2 : i32
    %447 = arith.index_cast %c2_i32_178 : i32 to index
    %c0_179 = arith.constant 0 : index
    %c0_180 = arith.constant 0 : index
    %448 = vector.load %arg16[%447, %c0_179, %c0_180] : memref<8x16x512xf32, #tpu.memory_space<vmem>>, vector<1x16x512xf32>
    %449 = vector.shape_cast %448 : vector<1x16x512xf32> to vector<16x512xf32>
    %cst_181 = arith.constant dense<0.000000e+00> : vector<16x512xf32>
    %450 = tpu.matmul %438, %354, %cst_181 {dimension_numbers = #tpu.dot_dimension_numbers<[1], [0], [0], [1], [0, 0, 1, 1], [], []>} : vector<16x128xbf16>, vector<128x512xbf16>, vector<16x512xf32> -> vector<16x512xf32>
    %451 = arith.addf %449, %450 : vector<16x512xf32>
    %452 = vector.extract_strided_slice %451 {offsets = [0, 0], sizes = [16, 128], strides = [1, 1]} : vector<16x512xf32> to vector<16x128xf32>
    %cst_182 = arith.constant 5.000000e-01 : f32
    %453 = vector.broadcast %cst_182 : f32 to vector<16x128xf32>
    %454 = arith.mulf %453, %452 : vector<16x128xf32>
    %455 = math.tanh %454 : vector<16x128xf32>
    %cst_183 = arith.constant 5.000000e-01 : f32
    %456 = vector.broadcast %cst_183 : f32 to vector<16x128xf32>
    %457 = arith.mulf %456, %455 : vector<16x128xf32>
    %cst_184 = arith.constant 5.000000e-01 : f32
    %458 = vector.broadcast %cst_184 : f32 to vector<16x128xf32>
    %459 = arith.addf %457, %458 : vector<16x128xf32>
    %460 = vector.extract_strided_slice %451 {offsets = [0, 128], sizes = [16, 128], strides = [1, 1]} : vector<16x512xf32> to vector<16x128xf32>
    %cst_185 = arith.constant 5.000000e-01 : f32
    %461 = vector.broadcast %cst_185 : f32 to vector<16x128xf32>
    %462 = arith.mulf %461, %460 : vector<16x128xf32>
    %463 = math.tanh %462 : vector<16x128xf32>
    %cst_186 = arith.constant 5.000000e-01 : f32
    %464 = vector.broadcast %cst_186 : f32 to vector<16x128xf32>
    %465 = arith.mulf %464, %463 : vector<16x128xf32>
    %cst_187 = arith.constant 5.000000e-01 : f32
    %466 = vector.broadcast %cst_187 : f32 to vector<16x128xf32>
    %467 = arith.addf %465, %466 : vector<16x128xf32>
    %468 = vector.extract_strided_slice %451 {offsets = [0, 256], sizes = [16, 128], strides = [1, 1]} : vector<16x512xf32> to vector<16x128xf32>
    %469 = math.tanh %468 : vector<16x128xf32>
    %470 = vector.extract_strided_slice %451 {offsets = [0, 384], sizes = [16, 128], strides = [1, 1]} : vector<16x512xf32> to vector<16x128xf32>
    %cst_188 = arith.constant 5.000000e-01 : f32
    %471 = vector.broadcast %cst_188 : f32 to vector<16x128xf32>
    %472 = arith.mulf %471, %470 : vector<16x128xf32>
    %473 = math.tanh %472 : vector<16x128xf32>
    %cst_189 = arith.constant 5.000000e-01 : f32
    %474 = vector.broadcast %cst_189 : f32 to vector<16x128xf32>
    %475 = arith.mulf %474, %473 : vector<16x128xf32>
    %cst_190 = arith.constant 5.000000e-01 : f32
    %476 = vector.broadcast %cst_190 : f32 to vector<16x128xf32>
    %477 = arith.addf %475, %476 : vector<16x128xf32>
    %478 = arith.mulf %467, %435 : vector<16x128xf32>
    %479 = arith.mulf %459, %469 : vector<16x128xf32>
    %480 = arith.addf %478, %479 : vector<16x128xf32>
    %481 = math.tanh %480 : vector<16x128xf32>
    %482 = arith.mulf %477, %481 : vector<16x128xf32>
    %483 = arith.truncf %482 : vector<16x128xf32> to vector<16x128xbf16>
    %484 = arith.index_cast %c2_i32_178 : i32 to index
    %c0_191 = arith.constant 0 : index
    %c0_192 = arith.constant 0 : index
    %485 = vector.load %arg15[%484, %c0_191, %c0_192] : memref<8x16x128xbf16, #tpu.memory_space<vmem>>, vector<1x16x128xbf16>
    %486 = vector.shape_cast %485 : vector<1x16x128xbf16> to vector<16x128xbf16>
    %487 = vector.shape_cast %483 : vector<16x128xbf16> to vector<1x16x128xbf16>
    tpu.vector_store %arg15[%484, %c0_191, %c0_192], %487 {strides = array<i32>} : memref<8x16x128xbf16, #tpu.memory_space<vmem>>, vector<1x16x128xbf16>,
    %488 = arith.index_cast %c2_i32_178 : i32 to index
    %c0_193 = arith.constant 0 : index
    %c0_194 = arith.constant 0 : index
    %489 = vector.load %arg12[%488, %c0_193, %c0_194] : memref<8x16x128xf32, #tpu.memory_space<vmem>>, vector<1x16x128xf32>
    %490 = vector.shape_cast %489 : vector<1x16x128xf32> to vector<16x128xf32>
    %491 = vector.shape_cast %482 : vector<16x128xf32> to vector<1x16x128xf32>
    tpu.vector_store %arg12[%488, %c0_193, %c0_194], %491 {strides = array<i32>} : memref<8x16x128xf32, #tpu.memory_space<vmem>>, vector<1x16x128xf32>,
    %c3_i32_195 = arith.constant 3 : i32
    %492 = arith.index_cast %c3_i32_195 : i32 to index
    %c0_196 = arith.constant 0 : index
    %c0_197 = arith.constant 0 : index
    %493 = vector.load %arg16[%492, %c0_196, %c0_197] : memref<8x16x512xf32, #tpu.memory_space<vmem>>, vector<1x16x512xf32>
    %494 = vector.shape_cast %493 : vector<1x16x512xf32> to vector<16x512xf32>
    %cst_198 = arith.constant dense<0.000000e+00> : vector<16x512xf32>
    %495 = tpu.matmul %483, %354, %cst_198 {dimension_numbers = #tpu.dot_dimension_numbers<[1], [0], [0], [1], [0, 0, 1, 1], [], []>} : vector<16x128xbf16>, vector<128x512xbf16>, vector<16x512xf32> -> vector<16x512xf32>
    %496 = arith.addf %494, %495 : vector<16x512xf32>
    %497 = vector.extract_strided_slice %496 {offsets = [0, 0], sizes = [16, 128], strides = [1, 1]} : vector<16x512xf32> to vector<16x128xf32>
    %cst_199 = arith.constant 5.000000e-01 : f32
    %498 = vector.broadcast %cst_199 : f32 to vector<16x128xf32>
    %499 = arith.mulf %498, %497 : vector<16x128xf32>
    %500 = math.tanh %499 : vector<16x128xf32>
    %cst_200 = arith.constant 5.000000e-01 : f32
    %501 = vector.broadcast %cst_200 : f32 to vector<16x128xf32>
    %502 = arith.mulf %501, %500 : vector<16x128xf32>
    %cst_201 = arith.constant 5.000000e-01 : f32
    %503 = vector.broadcast %cst_201 : f32 to vector<16x128xf32>
    %504 = arith.addf %502, %503 : vector<16x128xf32>
    %505 = vector.extract_strided_slice %496 {offsets = [0, 128], sizes = [16, 128], strides = [1, 1]} : vector<16x512xf32> to vector<16x128xf32>
    %cst_202 = arith.constant 5.000000e-01 : f32
    %506 = vector.broadcast %cst_202 : f32 to vector<16x128xf32>
    %507 = arith.mulf %506, %505 : vector<16x128xf32>
    %508 = math.tanh %507 : vector<16x128xf32>
    %cst_203 = arith.constant 5.000000e-01 : f32
    %509 = vector.broadcast %cst_203 : f32 to vector<16x128xf32>
    %510 = arith.mulf %509, %508 : vector<16x128xf32>
    %cst_204 = arith.constant 5.000000e-01 : f32
    %511 = vector.broadcast %cst_204 : f32 to vector<16x128xf32>
    %512 = arith.addf %510, %511 : vector<16x128xf32>
    %513 = vector.extract_strided_slice %496 {offsets = [0, 256], sizes = [16, 128], strides = [1, 1]} : vector<16x512xf32> to vector<16x128xf32>
    %514 = math.tanh %513 : vector<16x128xf32>
    %515 = vector.extract_strided_slice %496 {offsets = [0, 384], sizes = [16, 128], strides = [1, 1]} : vector<16x512xf32> to vector<16x128xf32>
    %cst_205 = arith.constant 5.000000e-01 : f32
    %516 = vector.broadcast %cst_205 : f32 to vector<16x128xf32>
    %517 = arith.mulf %516, %515 : vector<16x128xf32>
    %518 = math.tanh %517 : vector<16x128xf32>
    %cst_206 = arith.constant 5.000000e-01 : f32
    %519 = vector.broadcast %cst_206 : f32 to vector<16x128xf32>
    %520 = arith.mulf %519, %518 : vector<16x128xf32>
    %cst_207 = arith.constant 5.000000e-01 : f32
    %521 = vector.broadcast %cst_207 : f32 to vector<16x128xf32>
    %522 = arith.addf %520, %521 : vector<16x128xf32>
    %523 = arith.mulf %512, %480 : vector<16x128xf32>
    %524 = arith.mulf %504, %514 : vector<16x128xf32>
    %525 = arith.addf %523, %524 : vector<16x128xf32>
    %526 = math.tanh %525 : vector<16x128xf32>
    %527 = arith.mulf %522, %526 : vector<16x128xf32>
    %528 = arith.truncf %527 : vector<16x128xf32> to vector<16x128xbf16>
    %529 = arith.index_cast %c3_i32_195 : i32 to index
    %c0_208 = arith.constant 0 : index
    %c0_209 = arith.constant 0 : index
    %530 = vector.load %arg15[%529, %c0_208, %c0_209] : memref<8x16x128xbf16, #tpu.memory_space<vmem>>, vector<1x16x128xbf16>
    %531 = vector.shape_cast %530 : vector<1x16x128xbf16> to vector<16x128xbf16>
    %532 = vector.shape_cast %528 : vector<16x128xbf16> to vector<1x16x128xbf16>
    tpu.vector_store %arg15[%529, %c0_208, %c0_209], %532 {strides = array<i32>} : memref<8x16x128xbf16, #tpu.memory_space<vmem>>, vector<1x16x128xbf16>,
    %533 = arith.index_cast %c3_i32_195 : i32 to index
    %c0_210 = arith.constant 0 : index
    %c0_211 = arith.constant 0 : index
    %534 = vector.load %arg12[%533, %c0_210, %c0_211] : memref<8x16x128xf32, #tpu.memory_space<vmem>>, vector<1x16x128xf32>
    %535 = vector.shape_cast %534 : vector<1x16x128xf32> to vector<16x128xf32>
    %536 = vector.shape_cast %527 : vector<16x128xf32> to vector<1x16x128xf32>
    tpu.vector_store %arg12[%533, %c0_210, %c0_211], %536 {strides = array<i32>} : memref<8x16x128xf32, #tpu.memory_space<vmem>>, vector<1x16x128xf32>,
    %c4_i32_212 = arith.constant 4 : i32
    %537 = arith.index_cast %c4_i32_212 : i32 to index
    %c0_213 = arith.constant 0 : index
    %c0_214 = arith.constant 0 : index
    %538 = vector.load %arg16[%537, %c0_213, %c0_214] : memref<8x16x512xf32, #tpu.memory_space<vmem>>, vector<1x16x512xf32>
    %539 = vector.shape_cast %538 : vector<1x16x512xf32> to vector<16x512xf32>
    %cst_215 = arith.constant dense<0.000000e+00> : vector<16x512xf32>
    %540 = tpu.matmul %528, %354, %cst_215 {dimension_numbers = #tpu.dot_dimension_numbers<[1], [0], [0], [1], [0, 0, 1, 1], [], []>} : vector<16x128xbf16>, vector<128x512xbf16>, vector<16x512xf32> -> vector<16x512xf32>
    %541 = arith.addf %539, %540 : vector<16x512xf32>
    %542 = vector.extract_strided_slice %541 {offsets = [0, 0], sizes = [16, 128], strides = [1, 1]} : vector<16x512xf32> to vector<16x128xf32>
    %cst_216 = arith.constant 5.000000e-01 : f32
    %543 = vector.broadcast %cst_216 : f32 to vector<16x128xf32>
    %544 = arith.mulf %543, %542 : vector<16x128xf32>
    %545 = math.tanh %544 : vector<16x128xf32>
    %cst_217 = arith.constant 5.000000e-01 : f32
    %546 = vector.broadcast %cst_217 : f32 to vector<16x128xf32>
    %547 = arith.mulf %546, %545 : vector<16x128xf32>
    %cst_218 = arith.constant 5.000000e-01 : f32
    %548 = vector.broadcast %cst_218 : f32 to vector<16x128xf32>
    %549 = arith.addf %547, %548 : vector<16x128xf32>
    %550 = vector.extract_strided_slice %541 {offsets = [0, 128], sizes = [16, 128], strides = [1, 1]} : vector<16x512xf32> to vector<16x128xf32>
    %cst_219 = arith.constant 5.000000e-01 : f32
    %551 = vector.broadcast %cst_219 : f32 to vector<16x128xf32>
    %552 = arith.mulf %551, %550 : vector<16x128xf32>
    %553 = math.tanh %552 : vector<16x128xf32>
    %cst_220 = arith.constant 5.000000e-01 : f32
    %554 = vector.broadcast %cst_220 : f32 to vector<16x128xf32>
    %555 = arith.mulf %554, %553 : vector<16x128xf32>
    %cst_221 = arith.constant 5.000000e-01 : f32
    %556 = vector.broadcast %cst_221 : f32 to vector<16x128xf32>
    %557 = arith.addf %555, %556 : vector<16x128xf32>
    %558 = vector.extract_strided_slice %541 {offsets = [0, 256], sizes = [16, 128], strides = [1, 1]} : vector<16x512xf32> to vector<16x128xf32>
    %559 = math.tanh %558 : vector<16x128xf32>
    %560 = vector.extract_strided_slice %541 {offsets = [0, 384], sizes = [16, 128], strides = [1, 1]} : vector<16x512xf32> to vector<16x128xf32>
    %cst_222 = arith.constant 5.000000e-01 : f32
    %561 = vector.broadcast %cst_222 : f32 to vector<16x128xf32>
    %562 = arith.mulf %561, %560 : vector<16x128xf32>
    %563 = math.tanh %562 : vector<16x128xf32>
    %cst_223 = arith.constant 5.000000e-01 : f32
    %564 = vector.broadcast %cst_223 : f32 to vector<16x128xf32>
    %565 = arith.mulf %564, %563 : vector<16x128xf32>
    %cst_224 = arith.constant 5.000000e-01 : f32
    %566 = vector.broadcast %cst_224 : f32 to vector<16x128xf32>
    %567 = arith.addf %565, %566 : vector<16x128xf32>
    %568 = arith.mulf %557, %525 : vector<16x128xf32>
    %569 = arith.mulf %549, %559 : vector<16x128xf32>
    %570 = arith.addf %568, %569 : vector<16x128xf32>
    %571 = math.tanh %570 : vector<16x128xf32>
    %572 = arith.mulf %567, %571 : vector<16x128xf32>
    %573 = arith.truncf %572 : vector<16x128xf32> to vector<16x128xbf16>
    %574 = arith.index_cast %c4_i32_212 : i32 to index
    %c0_225 = arith.constant 0 : index
    %c0_226 = arith.constant 0 : index
    %575 = vector.load %arg15[%574, %c0_225, %c0_226] : memref<8x16x128xbf16, #tpu.memory_space<vmem>>, vector<1x16x128xbf16>
    %576 = vector.shape_cast %575 : vector<1x16x128xbf16> to vector<16x128xbf16>
    %577 = vector.shape_cast %573 : vector<16x128xbf16> to vector<1x16x128xbf16>
    tpu.vector_store %arg15[%574, %c0_225, %c0_226], %577 {strides = array<i32>} : memref<8x16x128xbf16, #tpu.memory_space<vmem>>, vector<1x16x128xbf16>,
    %578 = arith.index_cast %c4_i32_212 : i32 to index
    %c0_227 = arith.constant 0 : index
    %c0_228 = arith.constant 0 : index
    %579 = vector.load %arg12[%578, %c0_227, %c0_228] : memref<8x16x128xf32, #tpu.memory_space<vmem>>, vector<1x16x128xf32>
    %580 = vector.shape_cast %579 : vector<1x16x128xf32> to vector<16x128xf32>
    %581 = vector.shape_cast %572 : vector<16x128xf32> to vector<1x16x128xf32>
    tpu.vector_store %arg12[%578, %c0_227, %c0_228], %581 {strides = array<i32>} : memref<8x16x128xf32, #tpu.memory_space<vmem>>, vector<1x16x128xf32>,
    %c5_i32_229 = arith.constant 5 : i32
    %582 = arith.index_cast %c5_i32_229 : i32 to index
    %c0_230 = arith.constant 0 : index
    %c0_231 = arith.constant 0 : index
    %583 = vector.load %arg16[%582, %c0_230, %c0_231] : memref<8x16x512xf32, #tpu.memory_space<vmem>>, vector<1x16x512xf32>
    %584 = vector.shape_cast %583 : vector<1x16x512xf32> to vector<16x512xf32>
    %cst_232 = arith.constant dense<0.000000e+00> : vector<16x512xf32>
    %585 = tpu.matmul %573, %354, %cst_232 {dimension_numbers = #tpu.dot_dimension_numbers<[1], [0], [0], [1], [0, 0, 1, 1], [], []>} : vector<16x128xbf16>, vector<128x512xbf16>, vector<16x512xf32> -> vector<16x512xf32>
    %586 = arith.addf %584, %585 : vector<16x512xf32>
    %587 = vector.extract_strided_slice %586 {offsets = [0, 0], sizes = [16, 128], strides = [1, 1]} : vector<16x512xf32> to vector<16x128xf32>
    %cst_233 = arith.constant 5.000000e-01 : f32
    %588 = vector.broadcast %cst_233 : f32 to vector<16x128xf32>
    %589 = arith.mulf %588, %587 : vector<16x128xf32>
    %590 = math.tanh %589 : vector<16x128xf32>
    %cst_234 = arith.constant 5.000000e-01 : f32
    %591 = vector.broadcast %cst_234 : f32 to vector<16x128xf32>
    %592 = arith.mulf %591, %590 : vector<16x128xf32>
    %cst_235 = arith.constant 5.000000e-01 : f32
    %593 = vector.broadcast %cst_235 : f32 to vector<16x128xf32>
    %594 = arith.addf %592, %593 : vector<16x128xf32>
    %595 = vector.extract_strided_slice %586 {offsets = [0, 128], sizes = [16, 128], strides = [1, 1]} : vector<16x512xf32> to vector<16x128xf32>
    %cst_236 = arith.constant 5.000000e-01 : f32
    %596 = vector.broadcast %cst_236 : f32 to vector<16x128xf32>
    %597 = arith.mulf %596, %595 : vector<16x128xf32>
    %598 = math.tanh %597 : vector<16x128xf32>
    %cst_237 = arith.constant 5.000000e-01 : f32
    %599 = vector.broadcast %cst_237 : f32 to vector<16x128xf32>
    %600 = arith.mulf %599, %598 : vector<16x128xf32>
    %cst_238 = arith.constant 5.000000e-01 : f32
    %601 = vector.broadcast %cst_238 : f32 to vector<16x128xf32>
    %602 = arith.addf %600, %601 : vector<16x128xf32>
    %603 = vector.extract_strided_slice %586 {offsets = [0, 256], sizes = [16, 128], strides = [1, 1]} : vector<16x512xf32> to vector<16x128xf32>
    %604 = math.tanh %603 : vector<16x128xf32>
    %605 = vector.extract_strided_slice %586 {offsets = [0, 384], sizes = [16, 128], strides = [1, 1]} : vector<16x512xf32> to vector<16x128xf32>
    %cst_239 = arith.constant 5.000000e-01 : f32
    %606 = vector.broadcast %cst_239 : f32 to vector<16x128xf32>
    %607 = arith.mulf %606, %605 : vector<16x128xf32>
    %608 = math.tanh %607 : vector<16x128xf32>
    %cst_240 = arith.constant 5.000000e-01 : f32
    %609 = vector.broadcast %cst_240 : f32 to vector<16x128xf32>
    %610 = arith.mulf %609, %608 : vector<16x128xf32>
    %cst_241 = arith.constant 5.000000e-01 : f32
    %611 = vector.broadcast %cst_241 : f32 to vector<16x128xf32>
    %612 = arith.addf %610, %611 : vector<16x128xf32>
    %613 = arith.mulf %602, %570 : vector<16x128xf32>
    %614 = arith.mulf %594, %604 : vector<16x128xf32>
    %615 = arith.addf %613, %614 : vector<16x128xf32>
    %616 = math.tanh %615 : vector<16x128xf32>
    %617 = arith.mulf %612, %616 : vector<16x128xf32>
    %618 = arith.truncf %617 : vector<16x128xf32> to vector<16x128xbf16>
    %619 = arith.index_cast %c5_i32_229 : i32 to index
    %c0_242 = arith.constant 0 : index
    %c0_243 = arith.constant 0 : index
    %620 = vector.load %arg15[%619, %c0_242, %c0_243] : memref<8x16x128xbf16, #tpu.memory_space<vmem>>, vector<1x16x128xbf16>
    %621 = vector.shape_cast %620 : vector<1x16x128xbf16> to vector<16x128xbf16>
    %622 = vector.shape_cast %618 : vector<16x128xbf16> to vector<1x16x128xbf16>
    tpu.vector_store %arg15[%619, %c0_242, %c0_243], %622 {strides = array<i32>} : memref<8x16x128xbf16, #tpu.memory_space<vmem>>, vector<1x16x128xbf16>,
    %623 = arith.index_cast %c5_i32_229 : i32 to index
    %c0_244 = arith.constant 0 : index
    %c0_245 = arith.constant 0 : index
    %624 = vector.load %arg12[%623, %c0_244, %c0_245] : memref<8x16x128xf32, #tpu.memory_space<vmem>>, vector<1x16x128xf32>
    %625 = vector.shape_cast %624 : vector<1x16x128xf32> to vector<16x128xf32>
    %626 = vector.shape_cast %617 : vector<16x128xf32> to vector<1x16x128xf32>
    tpu.vector_store %arg12[%623, %c0_244, %c0_245], %626 {strides = array<i32>} : memref<8x16x128xf32, #tpu.memory_space<vmem>>, vector<1x16x128xf32>,
    %c6_i32_246 = arith.constant 6 : i32
    %627 = arith.index_cast %c6_i32_246 : i32 to index
    %c0_247 = arith.constant 0 : index
    %c0_248 = arith.constant 0 : index
    %628 = vector.load %arg16[%627, %c0_247, %c0_248] : memref<8x16x512xf32, #tpu.memory_space<vmem>>, vector<1x16x512xf32>
    %629 = vector.shape_cast %628 : vector<1x16x512xf32> to vector<16x512xf32>
    %cst_249 = arith.constant dense<0.000000e+00> : vector<16x512xf32>
    %630 = tpu.matmul %618, %354, %cst_249 {dimension_numbers = #tpu.dot_dimension_numbers<[1], [0], [0], [1], [0, 0, 1, 1], [], []>} : vector<16x128xbf16>, vector<128x512xbf16>, vector<16x512xf32> -> vector<16x512xf32>
    %631 = arith.addf %629, %630 : vector<16x512xf32>
    %632 = vector.extract_strided_slice %631 {offsets = [0, 0], sizes = [16, 128], strides = [1, 1]} : vector<16x512xf32> to vector<16x128xf32>
    %cst_250 = arith.constant 5.000000e-01 : f32
    %633 = vector.broadcast %cst_250 : f32 to vector<16x128xf32>
    %634 = arith.mulf %633, %632 : vector<16x128xf32>
    %635 = math.tanh %634 : vector<16x128xf32>
    %cst_251 = arith.constant 5.000000e-01 : f32
    %636 = vector.broadcast %cst_251 : f32 to vector<16x128xf32>
    %637 = arith.mulf %636, %635 : vector<16x128xf32>
    %cst_252 = arith.constant 5.000000e-01 : f32
    %638 = vector.broadcast %cst_252 : f32 to vector<16x128xf32>
    %639 = arith.addf %637, %638 : vector<16x128xf32>
    %640 = vector.extract_strided_slice %631 {offsets = [0, 128], sizes = [16, 128], strides = [1, 1]} : vector<16x512xf32> to vector<16x128xf32>
    %cst_253 = arith.constant 5.000000e-01 : f32
    %641 = vector.broadcast %cst_253 : f32 to vector<16x128xf32>
    %642 = arith.mulf %641, %640 : vector<16x128xf32>
    %643 = math.tanh %642 : vector<16x128xf32>
    %cst_254 = arith.constant 5.000000e-01 : f32
    %644 = vector.broadcast %cst_254 : f32 to vector<16x128xf32>
    %645 = arith.mulf %644, %643 : vector<16x128xf32>
    %cst_255 = arith.constant 5.000000e-01 : f32
    %646 = vector.broadcast %cst_255 : f32 to vector<16x128xf32>
    %647 = arith.addf %645, %646 : vector<16x128xf32>
    %648 = vector.extract_strided_slice %631 {offsets = [0, 256], sizes = [16, 128], strides = [1, 1]} : vector<16x512xf32> to vector<16x128xf32>
    %649 = math.tanh %648 : vector<16x128xf32>
    %650 = vector.extract_strided_slice %631 {offsets = [0, 384], sizes = [16, 128], strides = [1, 1]} : vector<16x512xf32> to vector<16x128xf32>
    %cst_256 = arith.constant 5.000000e-01 : f32
    %651 = vector.broadcast %cst_256 : f32 to vector<16x128xf32>
    %652 = arith.mulf %651, %650 : vector<16x128xf32>
    %653 = math.tanh %652 : vector<16x128xf32>
    %cst_257 = arith.constant 5.000000e-01 : f32
    %654 = vector.broadcast %cst_257 : f32 to vector<16x128xf32>
    %655 = arith.mulf %654, %653 : vector<16x128xf32>
    %cst_258 = arith.constant 5.000000e-01 : f32
    %656 = vector.broadcast %cst_258 : f32 to vector<16x128xf32>
    %657 = arith.addf %655, %656 : vector<16x128xf32>
    %658 = arith.mulf %647, %615 : vector<16x128xf32>
    %659 = arith.mulf %639, %649 : vector<16x128xf32>
    %660 = arith.addf %658, %659 : vector<16x128xf32>
    %661 = math.tanh %660 : vector<16x128xf32>
    %662 = arith.mulf %657, %661 : vector<16x128xf32>
    %663 = arith.truncf %662 : vector<16x128xf32> to vector<16x128xbf16>
    %664 = arith.index_cast %c6_i32_246 : i32 to index
    %c0_259 = arith.constant 0 : index
    %c0_260 = arith.constant 0 : index
    %665 = vector.load %arg15[%664, %c0_259, %c0_260] : memref<8x16x128xbf16, #tpu.memory_space<vmem>>, vector<1x16x128xbf16>
    %666 = vector.shape_cast %665 : vector<1x16x128xbf16> to vector<16x128xbf16>
    %667 = vector.shape_cast %663 : vector<16x128xbf16> to vector<1x16x128xbf16>
    tpu.vector_store %arg15[%664, %c0_259, %c0_260], %667 {strides = array<i32>} : memref<8x16x128xbf16, #tpu.memory_space<vmem>>, vector<1x16x128xbf16>,
    %668 = arith.index_cast %c6_i32_246 : i32 to index
    %c0_261 = arith.constant 0 : index
    %c0_262 = arith.constant 0 : index
    %669 = vector.load %arg12[%668, %c0_261, %c0_262] : memref<8x16x128xf32, #tpu.memory_space<vmem>>, vector<1x16x128xf32>
    %670 = vector.shape_cast %669 : vector<1x16x128xf32> to vector<16x128xf32>
    %671 = vector.shape_cast %662 : vector<16x128xf32> to vector<1x16x128xf32>
    tpu.vector_store %arg12[%668, %c0_261, %c0_262], %671 {strides = array<i32>} : memref<8x16x128xf32, #tpu.memory_space<vmem>>, vector<1x16x128xf32>,
    %c7_i32_263 = arith.constant 7 : i32
    %672 = arith.index_cast %c7_i32_263 : i32 to index
    %c0_264 = arith.constant 0 : index
    %c0_265 = arith.constant 0 : index
    %673 = vector.load %arg16[%672, %c0_264, %c0_265] : memref<8x16x512xf32, #tpu.memory_space<vmem>>, vector<1x16x512xf32>
    %674 = vector.shape_cast %673 : vector<1x16x512xf32> to vector<16x512xf32>
    %cst_266 = arith.constant dense<0.000000e+00> : vector<16x512xf32>
    %675 = tpu.matmul %663, %354, %cst_266 {dimension_numbers = #tpu.dot_dimension_numbers<[1], [0], [0], [1], [0, 0, 1, 1], [], []>} : vector<16x128xbf16>, vector<128x512xbf16>, vector<16x512xf32> -> vector<16x512xf32>
    %676 = arith.addf %674, %675 : vector<16x512xf32>
    %677 = vector.extract_strided_slice %676 {offsets = [0, 0], sizes = [16, 128], strides = [1, 1]} : vector<16x512xf32> to vector<16x128xf32>
    %cst_267 = arith.constant 5.000000e-01 : f32
    %678 = vector.broadcast %cst_267 : f32 to vector<16x128xf32>
    %679 = arith.mulf %678, %677 : vector<16x128xf32>
    %680 = math.tanh %679 : vector<16x128xf32>
    %cst_268 = arith.constant 5.000000e-01 : f32
    %681 = vector.broadcast %cst_268 : f32 to vector<16x128xf32>
    %682 = arith.mulf %681, %680 : vector<16x128xf32>
    %cst_269 = arith.constant 5.000000e-01 : f32
    %683 = vector.broadcast %cst_269 : f32 to vector<16x128xf32>
    %684 = arith.addf %682, %683 : vector<16x128xf32>
    %685 = vector.extract_strided_slice %676 {offsets = [0, 128], sizes = [16, 128], strides = [1, 1]} : vector<16x512xf32> to vector<16x128xf32>
    %cst_270 = arith.constant 5.000000e-01 : f32
    %686 = vector.broadcast %cst_270 : f32 to vector<16x128xf32>
    %687 = arith.mulf %686, %685 : vector<16x128xf32>
    %688 = math.tanh %687 : vector<16x128xf32>
    %cst_271 = arith.constant 5.000000e-01 : f32
    %689 = vector.broadcast %cst_271 : f32 to vector<16x128xf32>
    %690 = arith.mulf %689, %688 : vector<16x128xf32>
    %cst_272 = arith.constant 5.000000e-01 : f32
    %691 = vector.broadcast %cst_272 : f32 to vector<16x128xf32>
    %692 = arith.addf %690, %691 : vector<16x128xf32>
    %693 = vector.extract_strided_slice %676 {offsets = [0, 256], sizes = [16, 128], strides = [1, 1]} : vector<16x512xf32> to vector<16x128xf32>
    %694 = math.tanh %693 : vector<16x128xf32>
    %695 = vector.extract_strided_slice %676 {offsets = [0, 384], sizes = [16, 128], strides = [1, 1]} : vector<16x512xf32> to vector<16x128xf32>
    %cst_273 = arith.constant 5.000000e-01 : f32
    %696 = vector.broadcast %cst_273 : f32 to vector<16x128xf32>
    %697 = arith.mulf %696, %695 : vector<16x128xf32>
    %698 = math.tanh %697 : vector<16x128xf32>
    %cst_274 = arith.constant 5.000000e-01 : f32
    %699 = vector.broadcast %cst_274 : f32 to vector<16x128xf32>
    %700 = arith.mulf %699, %698 : vector<16x128xf32>
    %cst_275 = arith.constant 5.000000e-01 : f32
    %701 = vector.broadcast %cst_275 : f32 to vector<16x128xf32>
    %702 = arith.addf %700, %701 : vector<16x128xf32>
    %703 = arith.mulf %692, %660 : vector<16x128xf32>
    %704 = arith.mulf %684, %694 : vector<16x128xf32>
    %705 = arith.addf %703, %704 : vector<16x128xf32>
    %706 = math.tanh %705 : vector<16x128xf32>
    %707 = arith.mulf %702, %706 : vector<16x128xf32>
    %708 = arith.truncf %707 : vector<16x128xf32> to vector<16x128xbf16>
    %709 = arith.index_cast %c7_i32_263 : i32 to index
    %c0_276 = arith.constant 0 : index
    %c0_277 = arith.constant 0 : index
    %710 = vector.load %arg15[%709, %c0_276, %c0_277] : memref<8x16x128xbf16, #tpu.memory_space<vmem>>, vector<1x16x128xbf16>
    %711 = vector.shape_cast %710 : vector<1x16x128xbf16> to vector<16x128xbf16>
    %712 = vector.shape_cast %708 : vector<16x128xbf16> to vector<1x16x128xbf16>
    tpu.vector_store %arg15[%709, %c0_276, %c0_277], %712 {strides = array<i32>} : memref<8x16x128xbf16, #tpu.memory_space<vmem>>, vector<1x16x128xbf16>,
    %713 = arith.index_cast %c7_i32_263 : i32 to index
    %c0_278 = arith.constant 0 : index
    %c0_279 = arith.constant 0 : index
    %714 = vector.load %arg12[%713, %c0_278, %c0_279] : memref<8x16x128xf32, #tpu.memory_space<vmem>>, vector<1x16x128xf32>
    %715 = vector.shape_cast %714 : vector<1x16x128xf32> to vector<16x128xf32>
    %716 = vector.shape_cast %707 : vector<16x128xf32> to vector<1x16x128xf32>
    tpu.vector_store %arg12[%713, %c0_278, %c0_279], %716 {strides = array<i32>} : memref<8x16x128xf32, #tpu.memory_space<vmem>>, vector<1x16x128xf32>,
    %c8_i32_280 = arith.constant 8 : i32
    %c0_281 = arith.constant 0 : index
    %c0_282 = arith.constant 0 : index
    %c0_283 = arith.constant 0 : index
    %717 = vector.load %arg15[%c0_281, %c0_282, %c0_283] : memref<8x16x128xbf16, #tpu.memory_space<vmem>>, vector<8x16x128xbf16>
    %718 = vector.shape_cast %717 : vector<8x16x128xbf16> to vector<128x128xbf16>
    %c0_284 = arith.constant 0 : index
    %c0_285 = arith.constant 0 : index
    %c0_286 = arith.constant 0 : index
    %719 = vector.load %arg2[%c0_284, %c0_285, %c0_286] : memref<8x16x128xbf16, #tpu.memory_space<vmem>>, vector<8x16x128xbf16>
    %720 = vector.shape_cast %719 : vector<8x16x128xbf16> to vector<128x128xbf16>
    %c0_287 = arith.constant 0 : index
    %c0_288 = arith.constant 0 : index
    %721 = vector.load %arg7[%c0_287, %c0_288] : memref<128x128xbf16, #tpu.memory_space<vmem>>, vector<128x128xbf16>
    %cst_289 = arith.constant dense<0.000000e+00> : vector<128x128xf32>
    %722 = tpu.matmul %718, %721, %cst_289 {dimension_numbers = #tpu.dot_dimension_numbers<[1], [0], [0], [1], [0, 0, 1, 1], [], []>} : vector<128x128xbf16>, vector<128x128xbf16>, vector<128x128xf32> -> vector<128x128xf32>
    %c0_290 = arith.constant 0 : index
    %c0_291 = arith.constant 0 : index
    %723 = vector.load %arg8[%c0_290, %c0_291] : memref<128x128xbf16, #tpu.memory_space<vmem>>, vector<128x128xbf16>
    %cst_292 = arith.constant dense<0.000000e+00> : vector<128x128xf32>
    %724 = tpu.matmul %720, %723, %cst_292 {dimension_numbers = #tpu.dot_dimension_numbers<[1], [0], [0], [1], [0, 0, 1, 1], [], []>} : vector<128x128xbf16>, vector<128x128xbf16>, vector<128x128xf32> -> vector<128x128xf32>
    %725 = arith.addf %722, %724 : vector<128x128xf32>
    %c0_293 = arith.constant 0 : index
    %c0_294 = arith.constant 0 : index
    %726 = vector.load %arg9[%c0_293, %c0_294] : memref<1x128xf32, #tpu.memory_space<vmem>>, vector<1x128xf32>
    %727 = vector.broadcast %726 : vector<1x128xf32> to vector<128x128xf32>
    %728 = arith.addf %725, %727 : vector<128x128xf32>
    %729 = vector.shape_cast %728 : vector<128x128xf32> to vector<8x16x128xf32>
    %c0_295 = arith.constant 0 : index
    %c0_296 = arith.constant 0 : index
    %c0_297 = arith.constant 0 : index
    %730 = vector.load %arg13[%c0_295, %c0_296, %c0_297] : memref<8x16x128xf32, #tpu.memory_space<vmem>>, vector<8x16x128xf32>
    tpu.vector_store %arg13[%c0_295, %c0_296, %c0_297], %729 {strides = array<i32>} : memref<8x16x128xf32, #tpu.memory_space<vmem>>, vector<8x16x128xf32>,
    %731 = arith.truncf %728 : vector<128x128xf32> to vector<128x128xbf16>
    %c0_298 = arith.constant 0 : index
    %c0_299 = arith.constant 0 : index
    %732 = vector.load %arg10[%c0_298, %c0_299] : memref<128x128xbf16, #tpu.memory_space<vmem>>, vector<128x128xbf16>
    %cst_300 = arith.constant dense<0.000000e+00> : vector<128x128xf32>
    %733 = tpu.matmul %731, %732, %cst_300 {dimension_numbers = #tpu.dot_dimension_numbers<[1], [0], [0], [1], [0, 0, 1, 1], [], []>} : vector<128x128xbf16>, vector<128x128xbf16>, vector<128x128xf32> -> vector<128x128xf32>
    %c0_301 = arith.constant 0 : index
    %c0_302 = arith.constant 0 : index
    %734 = vector.load %arg11[%c0_301, %c0_302] : memref<1x128xf32, #tpu.memory_space<vmem>>, vector<1x128xf32>
    %735 = vector.broadcast %734 : vector<1x128xf32> to vector<128x128xf32>
    %736 = arith.addf %733, %735 : vector<128x128xf32>
    %737 = vector.shape_cast %736 : vector<128x128xf32> to vector<8x16x128xf32>
    %c0_303 = arith.constant 0 : index
    %c0_304 = arith.constant 0 : index
    %c0_305 = arith.constant 0 : index
    %738 = vector.load %arg14[%c0_303, %c0_304, %c0_305] : memref<8x16x128xf32, #tpu.memory_space<vmem>>, vector<8x16x128xf32>
    tpu.vector_store %arg14[%c0_303, %c0_304, %c0_305], %737 {strides = array<i32>} : memref<8x16x128xf32, #tpu.memory_space<vmem>>, vector<8x16x128xf32>,
    return
  }
  func.func @transform_0(%arg0: i32) -> (i32, i32, i32) {
    %c0_i32 = arith.constant 0 : i32
    %c0_i32_0 = arith.constant 0 : i32
    %c0_i32_1 = arith.constant 0 : i32
    return %c0_i32, %arg0, %c0_i32_0 : i32, i32, i32
  }
  func.func @transform_1(%arg0: i32) -> (i32, i32, i32) {
    %c0_i32 = arith.constant 0 : i32
    %c0_i32_0 = arith.constant 0 : i32
    %c0_i32_1 = arith.constant 0 : i32
    return %c0_i32, %arg0, %c0_i32_0 : i32, i32, i32
  }
  func.func @transform_2(%arg0: i32) -> (i32, i32) {
    %c0_i32 = arith.constant 0 : i32
    %c0_i32_0 = arith.constant 0 : i32
    %c0_i32_1 = arith.constant 0 : i32
    return %c0_i32, %c0_i32_0 : i32, i32
  }
  func.func @transform_3(%arg0: i32) -> (i32, i32, i32) {
    %c0_i32 = arith.constant 0 : i32
    %c0_i32_0 = arith.constant 0 : i32
    %c0_i32_1 = arith.constant 0 : i32
    %c0_i32_2 = arith.constant 0 : i32
    return %c0_i32, %c0_i32_0, %c0_i32_1 : i32, i32, i32
  }
  func.func @transform_4(%arg0: i32) -> (i32, i32, i32) {
    %c0_i32 = arith.constant 0 : i32
    %c0_i32_0 = arith.constant 0 : i32
    %c0_i32_1 = arith.constant 0 : i32
    %c0_i32_2 = arith.constant 0 : i32
    return %c0_i32, %c0_i32_0, %c0_i32_1 : i32, i32, i32
  }
  func.func @transform_5(%arg0: i32) -> (i32, i32, i32) {
    %c0_i32 = arith.constant 0 : i32
    %c0_i32_0 = arith.constant 0 : i32
    %c0_i32_1 = arith.constant 0 : i32
    %c0_i32_2 = arith.constant 0 : i32
    return %c0_i32, %c0_i32_0, %c0_i32_1 : i32, i32, i32
  }
  func.func @transform_6(%arg0: i32) -> (i32, i32) {
    %c0_i32 = arith.constant 0 : i32
    %c0_i32_0 = arith.constant 0 : i32
    %c0_i32_1 = arith.constant 0 : i32
    return %c0_i32, %c0_i32_0 : i32, i32
  }
  func.func @transform_7(%arg0: i32) -> (i32, i32) {
    %c0_i32 = arith.constant 0 : i32
    %c0_i32_0 = arith.constant 0 : i32
    %c0_i32_1 = arith.constant 0 : i32
    return %c0_i32, %c0_i32_0 : i32, i32
  }
  func.func @transform_8(%arg0: i32) -> (i32, i32) {
    %c0_i32 = arith.constant 0 : i32
    %c0_i32_0 = arith.constant 0 : i32
    %c0_i32_1 = arith.constant 0 : i32
    return %c0_i32, %c0_i32_0 : i32, i32
  }
  func.func @transform_9(%arg0: i32) -> (i32, i32) {
    %c0_i32 = arith.constant 0 : i32
    %c0_i32_0 = arith.constant 0 : i32
    %c0_i32_1 = arith.constant 0 : i32
    return %c0_i32, %c0_i32_0 : i32, i32
  }
  func.func @transform_10(%arg0: i32) -> (i32, i32) {
    %c0_i32 = arith.constant 0 : i32
    %c0_i32_0 = arith.constant 0 : i32
    %c0_i32_1 = arith.constant 0 : i32
    return %c0_i32, %c0_i32_0 : i32, i32
  }
  func.func @transform_11(%arg0: i32) -> (i32, i32, i32) {
    %c0_i32 = arith.constant 0 : i32
    %c0_i32_0 = arith.constant 0 : i32
    %c0_i32_1 = arith.constant 0 : i32
    return %c0_i32, %arg0, %c0_i32_0 : i32, i32, i32
  }
  func.func @transform_12(%arg0: i32) -> (i32, i32, i32) {
    %c0_i32 = arith.constant 0 : i32
    %c0_i32_0 = arith.constant 0 : i32
    %c0_i32_1 = arith.constant 0 : i32
    return %c0_i32, %arg0, %c0_i32_0 : i32, i32, i32
  }
  func.func @transform_13(%arg0: i32) -> (i32, i32, i32) {
    %c0_i32 = arith.constant 0 : i32
    %c0_i32_0 = arith.constant 0 : i32
    %c0_i32_1 = arith.constant 0 : i32
    return %c0_i32, %arg0, %c0_i32_0 : i32, i32, i32
  }
}

</mosaic_0001>

<bundles_post_ra>
// kernel: tpu_custom_call.1
= control target key start
LH: loop header
LB: loop body
LE: loop exit
PB: predicated region body
PF: predicated region fallthrough
CT: control target
= control target key end

     0   :  { %19 = vsyncpa [#allocation5], 0  ;;  %s7896_s0 = inlined_call_operand.hbm [shape: bf16[8,16,128], index: 0, kind: input, shape index: {}]   ;;  %s7897_s1 = inlined_call_operand.hbm [shape: bf16[8,16,128], index: 1, kind: input, shape index: {}]   ;;  %s7898_s2 = inlined_call_operand.hbm [shape: bf16[128,512], index: 2, kind: input, shape index: {}]   ;;  %s7899_s3 = inlined_call_operand.hbm [shape: bf16[1,128,512], index: 3, kind: input, shape index: {}]   ;;  %s7900_s4 = inlined_call_operand.hbm [shape: bf16[2,128,512], index: 4, kind: input, shape index: {}]   ;;  %s7901_s5 = inlined_call_operand.vmem [shape: f32[2,1,512], index: 5, kind: input, shape index: {}]   ;;  %s7902_s6 = inlined_call_operand.hbm [shape: bf16[128,128], index: 6, kind: input, shape index: {}]   ;;  %s7903_s7 = inlined_call_operand.hbm [shape: bf16[128,128], index: 7, kind: input, shape index: {}]   ;;  %s7904_s8 = inlined_call_operand.vmem [shape: f32[1,128], index: 8, kind: input, shape index: {}]   ;;  %s7905_s9 = inlined_call_operand.hbm [shape: bf16[128,128], index: 9, kind: input, shape index: {}]   ;;  %s7906_s10 = inlined_call_operand.vmem [shape: f32[1,128], index: 10, kind: input, shape index: {}]   ;;  %s7907_s11 = inlined_call_operand.hbm [shape: f32[8,16,128], index: 11, kind: output, shape index: {0}]   ;;  %s7908_s12 = inlined_call_operand.hbm [shape: f32[8,16,128], index: 12, kind: output, shape index: {1}]   ;;  %s7909_s13 = inlined_call_operand.hbm [shape: f32[8,16,128], index: 13, kind: output, shape index: {2}]  }
   0x1   :  { %20 = vsyncpa [#allocation8], 0 }
   0x2   :  { %21 = vsyncpa [#allocation11], 0 }
   0x3   :  { %22 = vsyncpa [#allocation14], 0 }
   0x4   :  { %23 = vsyncpa [#allocation17], 0 }
   0x5   :  { %24 = vsyncpa [#allocation6], 0 }
   0x6   :  { %25 = vsyncpa [#allocation20], 0  ;;  %s6188_s25 = smov [#allocation7]  }
   0x7   :  { %s43_s26 = sshll.u32 %s6188_s25, 4  ;;  %s44_s26 = int_to_ptr.vmem [resolvable:$true] %s43_s26 }
   0x8   :  { %s5962_s27 = scalar_lea.vmem %s44_s26, 1024  ;;  %p5967_p1 = scmp.lt.s32.totalorder %s44_s26, %s44_s26 }
   0x9   :  { %p5963_p0 = scmp.ne.s32.totalorder %s44_s26, %s5962_s27  ;;  %p5968_p2 = scmp.lt.s32.totalorder %s5962_s27, %s5962_s27 }
   0xb   :  { %p5969_p3 = por %p5968_p2, %p5967_p1 }
   0xd   :  { %p5970_p4 = pnand %p5969_p3, %p5963_p0 }
   0xf   :  { %5973 = shalt.err (!%p5970_p4)
}
  0x10   :  { %s6189_s28 = smov 64   ;;  %s6190_s29 = smov 4  }
  0x11   :  { %49 = dma.hbm_to_vmem [thread:$0]  %s7897_s1, 1024, %s44_s26, [#allocation8], %s6189_s28, %s6189_s28, %s6190_s29  }
  0x12   :  { %s6191_s15 = smov [#allocation10]   ;;  %s6192_s17 = smov [#allocation13]  }
  0x13   :  { %s67_s16 = sshll.u32 %s6191_s15, 4  ;;  %s93_s18 = sshll.u32 %s6192_s17, 4  ;;  %s68_s16 = int_to_ptr.vmem [resolvable:$true] %s67_s16  ;;  %s94_s18 = int_to_ptr.vmem [resolvable:$true] %s93_s18 }
  0x14   :  { %s5982_s19 = scalar_lea.vmem %s68_s16, 4096  ;;  %p5987_p6 = scmp.lt.s32.totalorder %s68_s16, %s68_s16 }
  0x15   :  { %p5983_p5 = scmp.ne.s32.totalorder %s68_s16, %s5982_s19  ;;  %p5988_p7 = scmp.lt.s32.totalorder %s5982_s19, %s5982_s19 }
  0x17   :  { %p5989_p8 = por %p5988_p7, %p5987_p6 }
  0x19   :  { %p5990_p9 = pnand %p5989_p8, %p5983_p5 }
  0x1b   :  { %5993 = shalt.err (!%p5990_p9)
}
  0x1c   :  { %s6193_s20 = smov 256   ;;  %s6194_s21 = smov 16  }
  0x1d   :  { %73 = dma.hbm_to_vmem [thread:$0]  %s7899_s3, 4096, %s68_s16, [#allocation11], %s6193_s20, %s6193_s20, %s6194_s21  }
  0x1e   :  { %s6002_s1 = scalar_lea.vmem %s94_s18, 1024  ;;  %p6007_p11 = scmp.lt.s32.totalorder %s94_s18, %s94_s18 }
  0x1f   :  { %p6003_p10 = scmp.ne.s32.totalorder %s94_s18, %s6002_s1  ;;  %p6008_p12 = scmp.lt.s32.totalorder %s6002_s1, %s6002_s1 }
  0x21   :  { %p6009_p13 = por %p6008_p12, %p6007_p11 }
  0x23   :  { %p6010_p0 = pnand %p6009_p13, %p6003_p10 }
  0x25   :  { %6013 = shalt.err (!%p6010_p0)
}
  0x26   :  { %99 = dma.hbm_to_vmem [thread:$0]  %s7902_s6, 1024, %s94_s18, [#allocation14], %s6189_s28, %s6189_s28, %s6190_s29  }
  0x27   :  { %s6195_s26 = smov [#allocation4]   ;;  %s6196_s30 = smov [#allocation9]  }
  0x28   :  { %s31_s27 = sshll.u32 %s6195_s26, 4  ;;  %s55_s3 = sshll.u32 %s6196_s30, 4  ;;  %s32_s27 = int_to_ptr.vmem [resolvable:$true] %s31_s27  ;;  %s56_s3 = int_to_ptr.vmem [resolvable:$true] %s55_s3 }
  0x29   :  { %s6022_s14 = scalar_lea.vmem %s32_s27, 1024  ;;  %p6027_p2 = scmp.lt.s32.totalorder %s32_s27, %s32_s27 }
  0x2a   :  { %p6023_p1 = scmp.ne.s32.totalorder %s32_s27, %s6022_s14  ;;  %p6028_p3 = scmp.lt.s32.totalorder %s6022_s14, %s6022_s14 }
  0x2c   :  { %p6029_p4 = por %p6028_p3, %p6027_p2 }
  0x2e   :  { %p6030_p5 = pnand %p6029_p4, %p6023_p1 }
  0x30   :  { %6033 = shalt.err (!%p6030_p5)
}
  0x31   :  { %37 = dma.hbm_to_vmem [thread:$0]  %s7896_s0, 1024, %s32_s27, [#allocation5], %s6189_s28, %s6189_s28, %s6190_s29  }
  0x32   :  { %s6042_s6 = scalar_lea.vmem %s56_s3, 4096  ;;  %p6047_p7 = scmp.lt.s32.totalorder %s56_s3, %s56_s3 }
  0x33   :  { %p6043_p6 = scmp.ne.s32.totalorder %s56_s3, %s6042_s6  ;;  %p6048_p8 = scmp.lt.s32.totalorder %s6042_s6, %s6042_s6 }
  0x35   :  { %p6049_p9 = por %p6048_p8, %p6047_p7 }
  0x37   :  { %p6050_p10 = pnand %p6049_p9, %p6043_p6 }
  0x39   :  { %6053 = shalt.err (!%p6050_p10)
}
  0x3a   :  { %61 = dma.hbm_to_vmem [thread:$0]  %s7898_s2, 4096, %s56_s3, [#allocation8], %s6193_s20, %s6193_s20, %s6194_s21  }
  0x3b   :  { %s6197_s19 = smov [#allocation12]   ;;  %s6198_s23 = smov [#allocation15]  }
  0x3c   :  { %s79_s22 = sshll.u32 %s6197_s19, 4  ;;  %s105_s0 = sshll.u32 %s6198_s23, 4  ;;  %s80_s22 = int_to_ptr.vmem [resolvable:$true] %s79_s22  ;;  %s106_s0 = int_to_ptr.vmem [resolvable:$true] %s105_s0 }
  0x3d   :  { %s6062_s1 = scalar_lea.vmem %s80_s22, 8192  ;;  %p6067_p12 = scmp.lt.s32.totalorder %s80_s22, %s80_s22 }
  0x3e   :  { %p6063_p11 = scmp.ne.s32.totalorder %s80_s22, %s6062_s1  ;;  %p6068_p13 = scmp.lt.s32.totalorder %s6062_s1, %s6062_s1 }
  0x40   :  { %p6069_p0 = por %p6068_p13, %p6067_p12 }
  0x42   :  { %p6070_p1 = pnand %p6069_p0, %p6063_p11 }
  0x44   :  { %6073 = shalt.err (!%p6070_p1)
}
  0x45   :  { %85 = dma.hbm_to_vmem [thread:$0]  %s7900_s4, 8192, %s80_s22, [#allocation11], %s6193_s20, %s6193_s20, %s6194_s21  }
  0x46   :  { %s6082_s2 = scalar_lea.vmem %s106_s0, 1024  ;;  %p6087_p3 = scmp.lt.s32.totalorder %s106_s0, %s106_s0 }
  0x47   :  { %p6083_p2 = scmp.ne.s32.totalorder %s106_s0, %s6082_s2  ;;  %p6088_p4 = scmp.lt.s32.totalorder %s6082_s2, %s6082_s2 }
  0x49   :  { %p6089_p5 = por %p6088_p4, %p6087_p3 }
  0x4b   :  { %p6090_p6 = pnand %p6089_p5, %p6083_p2 }
  0x4d   :  { %6093 = shalt.err (!%p6090_p6)
}
  0x4e   :  { %111 = dma.hbm_to_vmem [thread:$0]  %s7903_s7, 1024, %s106_s0, [#allocation14], %s6189_s28, %s6189_s28, %s6190_s29  }
  0x4f   :  { %s6199_s30 = smov [#allocation16]  }
  0x50   :  { %s119_s3 = sshll.u32 %s6199_s30, 4  ;;  %s120_s3 = int_to_ptr.vmem [resolvable:$true] %s119_s3 }
  0x51   :  { %s6102_s14 = scalar_lea.vmem %s120_s3, 1024  ;;  %p6107_p8 = scmp.lt.s32.totalorder %s120_s3, %s120_s3 }
  0x52   :  { %p6103_p7 = scmp.ne.s32.totalorder %s120_s3, %s6102_s14  ;;  %p6108_p9 = scmp.lt.s32.totalorder %s6102_s14, %s6102_s14 }
  0x54   :  { %p6109_p10 = por %p6108_p9, %p6107_p8 }
  0x56   :  { %p6110_p11 = pnand %p6109_p10, %p6103_p7 }
  0x58   :  { %6113 = shalt.err (!%p6110_p11)
}
  0x59   :  { %125 = dma.hbm_to_vmem [thread:$0]  %s7905_s9, 1024, %s120_s3, [#allocation17], %s6189_s28, %s6189_s28, %s6190_s29  }
  0x5a   :  { %6174 = dma.done.wait [#allocation5], 1024  }
  0x5b   :  { %6175 = vsyncadd [#allocation5], 4294966272 }
  0x5c   :  { %6176 = dma.done.wait [#allocation8], 5120  }
  0x5d   :  { %6177 = vsyncadd [#allocation8], 4294962176 }
  0x5e   :  { %6178 = dma.done.wait [#allocation11], 12288  }
  0x5f   :  { %6179 = vsyncadd [#allocation11], 4294955008 }
  0x60   :  { %6180 = dma.done.wait [#allocation14], 2048  }
  0x61   :  { %6181 = vsyncadd [#allocation14], 4294965248 }
  0x62   :  { %6182 = dma.done.wait [#allocation17], 1024  }
  0x63   :  { %6183 = vsyncadd [#allocation17], 4294966272  ;;  %v7914_v0 = vmov 0   ;;  %v5322_v1 = vld [vmem:[#allocation9 + $0xe4] ss:$16 sps:$4 sm:$0xff]   ;;  %v5374_v43 = vld [vmem:[#allocation4 + $0x8] sm:$0xff]  }
  0x64   :  { %463 = vmatprep.mubr.bf16.mxu0 %v7914_v0  ;;  %576 = vmatprep.mubr.bf16.mxu1 %v7914_v0  ;;  %v5324_v2 = vld [vmem:[#allocation9 + $0xec] ss:$16 sps:$4 sm:$0xff]   ;;  %v5326_v3 = vld [vmem:[#allocation9 + $0xe0] ss:$16 sps:$4 sm:$0xff]   ;;  %v5327_v4 = vld [vmem:[#allocation9 + $0xe8] ss:$16 sps:$4 sm:$0xff]  }
  0x65   :  { %431 = vmatprep.subr.bf16.mxu0 %v5322_v1  ;;  %544 = vmatprep.subr.bf16.mxu1 %v5324_v2  ;;  %v5328_v5 = vld [vmem:[#allocation9 + $0xc4] ss:$16 sps:$4 sm:$0xff]   ;;  %v5330_v6 = vld [vmem:[#allocation9 + $0xcc] ss:$16 sps:$4 sm:$0xff]   ;;  %v5332_v7 = vld [vmem:[#allocation9 + $0xc0] ss:$16 sps:$4 sm:$0xff]  }
  0x66   :  { %432 = vmatpush1.bf16.msra.mxu0 %v5326_v3  ;;  %545 = vmatpush1.bf16.msra.mxu1 %v5327_v4  ;;  %v5333_v8 = vld [vmem:[#allocation9 + $0xc8] ss:$16 sps:$4 sm:$0xff]   ;;  %v5334_v9 = vld [vmem:[#allocation9 + $0xa4] ss:$16 sps:$4 sm:$0xff]   ;;  %v5336_v10 = vld [vmem:[#allocation9 + $0xac] ss:$16 sps:$4 sm:$0xff]  }
  0x67   :  { %433 = vmatprep.subr.bf16.mxu0 %v5328_v5  ;;  %546 = vmatprep.subr.bf16.mxu1 %v5330_v6  ;;  %v5338_v11 = vld [vmem:[#allocation9 + $0xa0] ss:$16 sps:$4 sm:$0xff]   ;;  %v5339_v12 = vld [vmem:[#allocation9 + $0xa8] ss:$16 sps:$4 sm:$0xff]   ;;  %v5340_v13 = vld [vmem:[#allocation9 + $0x84] ss:$16 sps:$4 sm:$0xff]  }
  0x68   :  { %v5342_v14 = vld [vmem:[#allocation9 + $0x8c] ss:$16 sps:$4 sm:$0xff]   ;;  %v5344_v15 = vld [vmem:[#allocation9 + $0x80] ss:$16 sps:$4 sm:$0xff]   ;;  %v5345_v16 = vld [vmem:[#allocation9 + $0x88] ss:$16 sps:$4 sm:$0xff]  }
  0x69   :  { %v5346_v17 = vld [vmem:[#allocation9 + $0x64] ss:$16 sps:$4 sm:$0xff]   ;;  %v5348_v18 = vld [vmem:[#allocation9 + $0x6c] ss:$16 sps:$4 sm:$0xff]   ;;  %v5350_v19 = vld [vmem:[#allocation9 + $0x60] ss:$16 sps:$4 sm:$0xff]  }
  0x6a   :  { %434 = vmatpush1.bf16.msra.mxu0 %v5332_v7  ;;  %547 = vmatpush1.bf16.msra.mxu1 %v5333_v8  ;;  %v5351_v20 = vld [vmem:[#allocation9 + $0x68] ss:$16 sps:$4 sm:$0xff]   ;;  %v5352_v21 = vld [vmem:[#allocation9 + $0x44] ss:$16 sps:$4 sm:$0xff]   ;;  %v5354_v22 = vld [vmem:[#allocation9 + $0x4c] ss:$16 sps:$4 sm:$0xff]  }
  0x6b   :  { %435 = vmatprep.subr.bf16.mxu0 %v5334_v9  ;;  %548 = vmatprep.subr.bf16.mxu1 %v5336_v10  ;;  %v5356_v23 = vld [vmem:[#allocation9 + $0x40] ss:$16 sps:$4 sm:$0xff]   ;;  %v5357_v24 = vld [vmem:[#allocation9 + $0x48] ss:$16 sps:$4 sm:$0xff]   ;;  %v5358_v25 = vld [vmem:[#allocation9 + $0x24] ss:$16 sps:$4 sm:$0xff]   ;;  %v203_v10 = vlaneseq }
  0x6c   :  { %v5360_v26 = vld [vmem:[#allocation9 + $0x2c] ss:$16 sps:$4 sm:$0xff]   ;;  %v5362_v27 = vld [vmem:[#allocation9 + $0x20] ss:$16 sps:$4 sm:$0xff]   ;;  %v5363_v28 = vld [vmem:[#allocation9 + $0x28] ss:$16 sps:$4 sm:$0xff]  }
  0x6d   :  { %v5364_v29 = vld [vmem:[#allocation9 + $0x4] ss:$16 sps:$4 sm:$0xff]   ;;  %v5366_v30 = vld [vmem:[#allocation9 + $0xc] ss:$16 sps:$4 sm:$0xff]   ;;  %v5368_v31 = vld [vmem:[#allocation9] ss:$16 sps:$4 sm:$0xff]  }
  0x6e   :  { %436 = vmatpush1.bf16.msra.mxu0 %v5338_v11  ;;  %549 = vmatpush1.bf16.msra.mxu1 %v5339_v12  ;;  %v5369_v32 = vld [vmem:[#allocation9 + $0x8] ss:$16 sps:$4 sm:$0xff]   ;;  %v6326_v33 = vld [vmem:[#allocation12 + $0xe4] ss:$16 sps:$4 sm:$0xff]   ;;  %v6328_v34 = vld [vmem:[#allocation12 + $0xec] ss:$16 sps:$4 sm:$0xff]  }
  0x6f   :  { %437 = vmatprep.subr.bf16.mxu0 %v5340_v13  ;;  %550 = vmatprep.subr.bf16.mxu1 %v5342_v14  ;;  %v5370_v35 = vld [vmem:[#allocation4] sm:$0xff]   ;;  %v6336_v38 = vld [vmem:[#allocation12 + $0xe8] ss:$16 sps:$4 sm:$0xff]   ;;  %v6338_v39 = vld [vmem:[#allocation12 + $0xcc] ss:$16 sps:$4 sm:$0xff]   ;;  %v6476_v11 = vshrl.u32 %v203_v10, 7 }
  0x70   :  { %v6330_v36 = vld [vmem:[#allocation12 + $0xe0] ss:$16 sps:$4 sm:$0xff]   ;;  %v6333_v37 = vld [vmem:[#allocation12 + $0xc4] ss:$16 sps:$4 sm:$0xff]   ;;  %v6349_v42 = vld [vmem:[#allocation12 + $0xc8] ss:$16 sps:$4 sm:$0xff]  }
  0x71   :  { %v6342_v40 = vld [vmem:[#allocation12 + $0xc0] ss:$16 sps:$4 sm:$0xff]   ;;  %v6346_v41 = vld [vmem:[#allocation12 + $0xa4] ss:$16 sps:$4 sm:$0xff]   ;;  %v6358_v46 = vld [vmem:[#allocation12 + $0xac] ss:$16 sps:$4 sm:$0xff]  }
  0x72   :  { %438 = vmatpush1.bf16.msra.mxu0 %v5344_v15  ;;  %551 = vmatpush1.bf16.msra.mxu1 %v5345_v16  ;;  %v6354_v44 = vld [vmem:[#allocation12 + $0xa0] ss:$16 sps:$4 sm:$0xff]   ;;  %v6356_v45 = vld [vmem:[#allocation12 + $0x84] ss:$16 sps:$4 sm:$0xff]   ;;  %v6361_v47 = vld [vmem:[#allocation12 + $0xa8] ss:$16 sps:$4 sm:$0xff]  }
  0x73   :  { %439 = vmatprep.subr.bf16.mxu0 %v5346_v17  ;;  %552 = vmatprep.subr.bf16.mxu1 %v5348_v18  ;;  %v6363_v48 = vld [vmem:[#allocation12 + $0x8c] ss:$16 sps:$4 sm:$0xff]   ;;  %v6369_v49 = vld [vmem:[#allocation12 + $0x80] ss:$16 sps:$4 sm:$0xff]   ;;  %v6371_v50 = vld [vmem:[#allocation12 + $0x64] ss:$16 sps:$4 sm:$0xff]  }
  0x74   :  { %v6375_v51 = vld [vmem:[#allocation12 + $0x88] ss:$16 sps:$4 sm:$0xff]   ;;  %v5381_v52 = vld [vmem:[#allocation4 + $0x10] sm:$0xff]   ;;  %v6381_v54 = vld [vmem:[#allocation12 + $0x6c] ss:$16 sps:$4 sm:$0xff]   ;;  %7918 = vst [vmem:[#allocation29_spill] sm:$0xff] %v6476_v11 }
  0x75   :  { %v6378_v53 = vld [vmem:[#allocation12 + $0x60] ss:$16 sps:$4 sm:$0xff]   ;;  %v6385_v55 = vld [vmem:[#allocation12 + $0x44] ss:$16 sps:$4 sm:$0xff]   ;;  %v6387_v56 = vld [vmem:[#allocation12 + $0x68] ss:$16 sps:$4 sm:$0xff]  }
  0x76   :  { %440 = vmatpush1.bf16.msra.mxu0 %v5350_v19  ;;  %553 = vmatpush1.bf16.msra.mxu1 %v5351_v20  ;;  %v6389_v57 = vld [vmem:[#allocation12 + $0x4c] ss:$16 sps:$4 sm:$0xff]   ;;  %v6391_v58 = vld [vmem:[#allocation12 + $0x40] ss:$16 sps:$4 sm:$0xff]   ;;  %v6395_v59 = vld [vmem:[#allocation12 + $0x24] ss:$16 sps:$4 sm:$0xff]  }
  0x77   :  { %441 = vmatprep.subr.bf16.mxu0 %v5352_v21  ;;  %554 = vmatprep.subr.bf16.mxu1 %v5354_v22  ;;  %v6397_v60 = vld [vmem:[#allocation12 + $0x48] ss:$16 sps:$4 sm:$0xff]   ;;  %v6404_v62 = vld [vmem:[#allocation12 + $0x20] ss:$16 sps:$4 sm:$0xff]   ;;  %v6406_v63 = vld [vmem:[#allocation12 + $0x2c] ss:$16 sps:$4 sm:$0xff]  }
  0x78   :  { %v5388_v61 = vld [vmem:[#allocation4 + $0x18] sm:$0xff]   ;;  %v6408_v1 = vld [vmem:[#allocation12 + $0x4] ss:$16 sps:$4 sm:$0xff]   ;;  %v6417_v4 = vld [vmem:[#allocation12] ss:$16 sps:$4 sm:$0xff]   ;;  %v7913_v16 = vsub.s32 0, %v6476_v11 }
  0x79   :  { %v6410_v2 = vld [vmem:[#allocation12 + $0x28] ss:$16 sps:$4 sm:$0xff]   ;;  %v6413_v3 = vld [vmem:[#allocation12 + $0xc] ss:$16 sps:$4 sm:$0xff]   ;;  %v5395_v6 = vld [vmem:[#allocation4 + $0x20] sm:$0xff]   ;;  %v7911_v17 = vsub.s32 2, %v6476_v11 }
  0x7a   :  { %442 = vmatpush1.bf16.msra.mxu0 %v5356_v23  ;;  %555 = vmatpush1.bf16.msra.mxu1 %v5357_v24  ;;  %v6421_v5 = vld [vmem:[#allocation12 + $0x8] ss:$16 sps:$4 sm:$0xff]   ;;  %v5409_v8 = vld [vmem:[#allocation4 + $0x30] sm:$0xff]   ;;  %v201_v18 = vld [vmem:[%s7901_s5] sm:$0xf]  ;;  %v7912_v21 = vsub.s32 1, %v6476_v11 }
  0x7b   :  { %443 = vmatprep.subr.bf16.mxu0 %v5358_v25  ;;  %556 = vmatprep.subr.bf16.mxu1 %v5360_v26  ;;  %v5402_v7 = vld [vmem:[#allocation4 + $0x28] sm:$0xff]   ;;  %v5416_v9 = vld [vmem:[#allocation4 + $0x38] sm:$0xff]   ;;  %v7910_v22 = vsub.s32 3, %v6476_v11  ;;  %v6503_v25 = vrot.slane %v201_v18, %v7913_v16  ;;  %v6507_v26 = vrot.slane %v201_v18, %v7911_v17  ;;  %s6202_s6 = smov [#allocation18]  }
  0x7c   :  { %s4766_s17 = sshll.u32 %s6202_s6, 4  ;;  %s4767_s17 = int_to_ptr.vmem [resolvable:$true] %s4766_s17 }
  0x7e   :  { %444 = vmatpush1.bf16.msra.mxu0 %v5362_v27  ;;  %557 = vmatpush1.bf16.msra.mxu1 %v5363_v28 }
  0x7f   :  { %445 = vmatprep.subr.bf16.mxu0 %v5364_v29  ;;  %558 = vmatprep.subr.bf16.mxu1 %v5366_v30  ;;  %v6511_v29 = vrot.slane %v201_v18, %v7912_v21  ;;  %v6515_v30 = vrot.slane %v201_v18, %v7910_v22 }
  0x82   :  { %446 = vmatpush1.bf16.msra.mxu0 %v5368_v31  ;;  %559 = vmatpush1.bf16.msra.mxu1 %v5369_v32 }
  0x83   :  { %921 = vmatprep.subr.bf16.mxu0 %v6326_v33  ;;  %964 = vmatprep.subr.bf16.mxu1 %v6328_v34 }
  0x85   :  { %464 = vmatmul.mubr.bf16.vlgmr.msra.gmra.mxu0 %v5370_v35  ;;  %577 = vmatmul.mubr.bf16.vlgmr.msra.gmra.mxu1 %v5370_v35 }
  0x86   :  { %922 = vmatpush1.bf16.msra.mxu0 %v6330_v36  ;;  %473 = vmatprep.mubr.bf16.mxu0 %v7914_v0 }
  0x87   :  { %586 = vmatprep.mubr.bf16.mxu1 %v7914_v0  ;;  %923 = vmatprep.subr.bf16.mxu0 %v6333_v37 }
  0x88   :  { %965 = vmatpush1.bf16.msra.mxu1 %v6336_v38 }
  0x89   :  { %966 = vmatprep.subr.bf16.mxu1 %v6338_v39 }
  0x8a   :  { %924 = vmatpush1.bf16.msra.mxu0 %v6342_v40 }
  0x8b   :  { %925 = vmatprep.subr.bf16.mxu0 %v6346_v41 }
  0x8c   :  { %967 = vmatpush1.bf16.msra.mxu1 %v6349_v42 }
  0x8d   :  { %474 = vmatmul.mubr.bf16.gmra.mxu0 %v5374_v43  ;;  %587 = vmatmul.mubr.bf16.gmra.mxu1 %v5374_v43 }
  0x8e   :  { %483 = vmatprep.mubr.bf16.mxu0 %v7914_v0  ;;  %596 = vmatprep.mubr.bf16.mxu1 %v7914_v0 }
  0x8f   :  { %926 = vmatpush1.bf16.msra.mxu0 %v6354_v44  ;;  %968 = vmatprep.subr.bf16.mxu1 %v6358_v46 }
  0x90   :  { %927 = vmatprep.subr.bf16.mxu0 %v6356_v45  ;;  %969 = vmatpush1.bf16.msra.mxu1 %v6361_v47 }
  0x91   :  { %970 = vmatprep.subr.bf16.mxu1 %v6363_v48 }
  0x93   :  { %928 = vmatpush1.bf16.msra.mxu0 %v6369_v49 }
  0x94   :  { %929 = vmatprep.subr.bf16.mxu0 %v6371_v50  ;;  %971 = vmatpush1.bf16.msra.mxu1 %v6375_v51 }
  0x95   :  { %484 = vmatmul.mubr.bf16.gmra.mxu0 %v5381_v52  ;;  %597 = vmatmul.mubr.bf16.gmra.mxu1 %v5381_v52 }
  0x96   :  { %493 = vmatprep.mubr.bf16.mxu0 %v7914_v0  ;;  %606 = vmatprep.mubr.bf16.mxu1 %v7914_v0 }
  0x97   :  { %930 = vmatpush1.bf16.msra.mxu0 %v6378_v53  ;;  %972 = vmatprep.subr.bf16.mxu1 %v6381_v54 }
  0x98   :  { %931 = vmatprep.subr.bf16.mxu0 %v6385_v55  ;;  %973 = vmatpush1.bf16.msra.mxu1 %v6387_v56 }
  0x99   :  { %974 = vmatprep.subr.bf16.mxu1 %v6389_v57 }
  0x9b   :  { %932 = vmatpush1.bf16.msra.mxu0 %v6391_v58 }
  0x9c   :  { %933 = vmatprep.subr.bf16.mxu0 %v6395_v59  ;;  %975 = vmatpush1.bf16.msra.mxu1 %v6397_v60 }
  0x9d   :  { %494 = vmatmul.mubr.bf16.gmra.mxu0 %v5388_v61  ;;  %607 = vmatmul.mubr.bf16.gmra.mxu1 %v5388_v61 }
  0x9e   :  { %503 = vmatprep.mubr.bf16.mxu0 %v7914_v0  ;;  %616 = vmatprep.mubr.bf16.mxu1 %v7914_v0 }
  0x9f   :  { %934 = vmatpush1.bf16.msra.mxu0 %v6404_v62  ;;  %976 = vmatprep.subr.bf16.mxu1 %v6406_v63 }
  0xa0   :  { %935 = vmatprep.subr.bf16.mxu0 %v6408_v1  ;;  %977 = vmatpush1.bf16.msra.mxu1 %v6410_v2 }
  0xa1   :  { %978 = vmatprep.subr.bf16.mxu1 %v6413_v3 }
  0xa3   :  { %936 = vmatpush1.bf16.msra.mxu0 %v6417_v4 }
  0xa4   :  { %979 = vmatpush1.bf16.msra.mxu1 %v6421_v5  ;;  %1070 = vmatprep.subr.bf16.mxu0 %v6326_v33 }
  0xa5   :  { %504 = vmatmul.mubr.bf16.gmra.mxu0 %v5395_v6  ;;  %617 = vmatmul.mubr.bf16.gmra.mxu1 %v5395_v6 }
  0xa6   :  { %513 = vmatprep.mubr.bf16.mxu0 %v7914_v0  ;;  %626 = vmatprep.mubr.bf16.mxu1 %v7914_v0 }
  0xa7   :  { %1113 = vmatprep.subr.bf16.mxu1 %v6328_v34 }
  0xad   :  { %514 = vmatmul.mubr.bf16.gmra.mxu0 %v5402_v7  ;;  %627 = vmatmul.mubr.bf16.gmra.mxu1 %v5402_v7 }
  0xae   :  { %523 = vmatprep.mubr.bf16.mxu0 %v7914_v0  ;;  %636 = vmatprep.mubr.bf16.mxu1 %v7914_v0 }
  0xb5   :  { %524 = vmatmul.mubr.bf16.gmra.mxu0 %v5409_v8  ;;  %637 = vmatmul.mubr.bf16.gmra.mxu1 %v5409_v8 }
  0xb6   :  { %533 = vmatprep.mubr.bf16.mxu0 %v7914_v0  ;;  %646 = vmatprep.mubr.bf16.mxu1 %v7914_v0 }
  0xbd   :  { %534 = vmatmul.mubr.bf16.gmra.mxu0 %v5416_v9  ;;  %647 = vmatmul.mubr.bf16.gmra.mxu1 %v5416_v9 }
  0xbe   :  { %953 = vmatprep.mubr.bf16.mxu0 %v7914_v0  ;;  %996 = vmatprep.mubr.bf16.mxu1 %v7914_v0 }
  0xc5   :  { %954 = vmatmul.mubr.bf16.vlgmr.msra.gmra.mxu0 %v7914_v0  ;;  %997 = vmatmul.mubr.bf16.vlgmr.msra.gmra.mxu1 %v7914_v0 }
  0xc6   :  { %1071 = vmatpush1.bf16.msra.mxu0 %v6330_v36  ;;  %1114 = vmatpush1.bf16.msra.mxu1 %v6336_v38 }
  0xc7   :  { %1072 = vmatprep.subr.bf16.mxu0 %v6333_v37  ;;  %1115 = vmatprep.subr.bf16.mxu1 %v6338_v39 }
  0xc8   :  { %1102 = vmatprep.mubr.bf16.mxu0 %v7914_v0  ;;  %1145 = vmatprep.mubr.bf16.mxu1 %v7914_v0 }
  0xca   :  { %1073 = vmatpush1.bf16.msra.mxu0 %v6342_v40  ;;  %1116 = vmatpush1.bf16.msra.mxu1 %v6349_v42 }
  0xcb   :  { %1074 = vmatprep.subr.bf16.mxu0 %v6346_v41  ;;  %1117 = vmatprep.subr.bf16.mxu1 %v6358_v46 }
  0xce   :  { %1075 = vmatpush1.bf16.msra.mxu0 %v6354_v44  ;;  %1118 = vmatpush1.bf16.msra.mxu1 %v6361_v47 }
  0xcf   :  { %1076 = vmatprep.subr.bf16.mxu0 %v6356_v45  ;;  %1119 = vmatprep.subr.bf16.mxu1 %v6363_v48 }
  0xd2   :  { %1077 = vmatpush1.bf16.msra.mxu0 %v6369_v49  ;;  %1120 = vmatpush1.bf16.msra.mxu1 %v6375_v51 }
  0xd3   :  { %1078 = vmatprep.subr.bf16.mxu0 %v6371_v50  ;;  %1121 = vmatprep.subr.bf16.mxu1 %v6381_v54 }
  0xd6   :  { %1079 = vmatpush1.bf16.msra.mxu0 %v6378_v53  ;;  %1122 = vmatpush1.bf16.msra.mxu1 %v6387_v56 }
  0xd7   :  { %1080 = vmatprep.subr.bf16.mxu0 %v6385_v55  ;;  %1123 = vmatprep.subr.bf16.mxu1 %v6389_v57 }
  0xda   :  { %1081 = vmatpush1.bf16.msra.mxu0 %v6391_v58  ;;  %1124 = vmatpush1.bf16.msra.mxu1 %v6397_v60 }
  0xdb   :  { %1082 = vmatprep.subr.bf16.mxu0 %v6395_v59  ;;  %1125 = vmatprep.subr.bf16.mxu1 %v6406_v63 }
  0xde   :  { %1083 = vmatpush1.bf16.msra.mxu0 %v6404_v62  ;;  %1126 = vmatpush1.bf16.msra.mxu1 %v6410_v2 }
  0xdf   :  { %1084 = vmatprep.subr.bf16.mxu0 %v6408_v1  ;;  %1127 = vmatprep.subr.bf16.mxu1 %v6413_v3 }
  0xe2   :  { %1085 = vmatpush1.bf16.msra.mxu0 %v6417_v4  ;;  %1128 = vmatpush1.bf16.msra.mxu1 %v6421_v5 }
  0xe3   :  { %1220 = vmatprep.subr.bf16.mxu0 %v6326_v33  ;;  %1263 = vmatprep.subr.bf16.mxu1 %v6328_v34 }
 0x145   :  { %v6478_v12 = vpop.f32.mrf.mxu0  ;;  %v6480_v13 = vpop.f32.mrf.mxu1 }
 0x147   :  { %v6482_v14 = vpop.f32.mrf.mxu0  ;;  %v6484_v15 = vpop.f32.mrf.mxu1 }
 0x149   :  { %v6491_v19 = vpop.f32.mrf.mxu0  ;;  %v6493_v20 = vpop.f32.mrf.mxu1 }
 0x14b   :  { %v6497_v23 = vpop.f32.mrf.mxu0  ;;  %v6499_v24 = vpop.f32.mrf.mxu1 }
 0x14d   :  { %v475_v27 = vpop.f32.mrf.mxu0  ;;  %v588_v28 = vpop.f32.mrf.mxu1 }
 0x14e   :  { %v6518_v31 = vadd.f32 %v475_v27, %v6503_v25  ;;  %v6521_v32 = vadd.f32 %v588_v28, %v6507_v26 }
 0x14f   :  { %v477_v33 = vpop.f32.mrf.mxu0  ;;  %v590_v34 = vpop.f32.mrf.mxu1 }
 0x150   :  { %v6524_v35 = vadd.f32 %v477_v33, %v6511_v29  ;;  %v6527_v43 = vadd.f32 %v590_v34, %v6515_v30 }
 0x151   :  { %v479_v52 = vpop.f32.mrf.mxu0  ;;  %v592_v61 = vpop.f32.mrf.mxu1 }
 0x152   :  { %7919 = vst [vmem:[#allocation30_spill] sm:$0xff] %v6527_v43  ;;  %v6530_v6 = vadd.f32 %v479_v52, %v6503_v25  ;;  %v6533_v7 = vadd.f32 %v592_v61, %v6507_v26 }
 0x153   :  { %v6535_v8 = vpop.f32.mrf.mxu0  ;;  %v6537_v9 = vpop.f32.mrf.mxu1 }
 0x155   :  { %v485_v10 = vpop.f32.mrf.mxu0  ;;  %v598_v18 = vpop.f32.mrf.mxu1 }
 0x156   :  { %v6540_v27 = vadd.f32 %v485_v10, %v6503_v25  ;;  %v6543_v28 = vadd.f32 %v598_v18, %v6507_v26 }
 0x157   :  { %v487_v33 = vpop.f32.mrf.mxu0  ;;  %v600_v34 = vpop.f32.mrf.mxu1 }
 0x158   :  { %7920 = vst [vmem:[#allocation31_spill] sm:$0xff] %v6540_v27  ;;  %7921 = vst [vmem:[#allocation32_spill] sm:$0xff] %v6543_v28  ;;  %v6546_v52 = vadd.f32 %v487_v33, %v6511_v29  ;;  %v6549_v61 = vadd.f32 %v600_v34, %v6515_v30 }
 0x159   :  { %v489_v22 = vpop.f32.mrf.mxu0  ;;  %v602_v17 = vpop.f32.mrf.mxu1 }
 0x15a   :  { %7922 = vst [vmem:[#allocation33_spill] sm:$0xff] %v6546_v52  ;;  %7923 = vst [vmem:[#allocation34_spill] sm:$0xff] %v6549_v61  ;;  %v6552_v21 = vadd.f32 %v489_v22, %v6503_v25  ;;  %v6555_v16 = vadd.f32 %v602_v17, %v6507_v26 }
 0x15b   :  { %v6557_v10 = vpop.f32.mrf.mxu0  ;;  %v6559_v18 = vpop.f32.mrf.mxu1 }
 0x15c   :  { %7924 = vst [vmem:[#allocation35_spill] sm:$0xff] %v6552_v21  ;;  %7925 = vst [vmem:[#allocation36_spill] sm:$0xff] %v6555_v16 }
 0x15d   :  { %7926 = vst [vmem:[#allocation37_spill] sm:$0xff] %v6557_v10  ;;  %7927 = vst [vmem:[#allocation38_spill] sm:$0xff] %v6559_v18  ;;  %v495_v0 = vpop.f32.mrf.mxu0  ;;  %v608_v11 = vpop.f32.mrf.mxu1 }
 0x15e   :  { %v6562_v33 = vadd.f32 %v495_v0, %v6503_v25  ;;  %v6565_v34 = vadd.f32 %v608_v11, %v6507_v26 }
 0x15f   :  { %v497_v61 = vpop.f32.mrf.mxu0  ;;  %v610_v28 = vpop.f32.mrf.mxu1 }
 0x160   :  { %7928 = vst [vmem:[#allocation39_spill] sm:$0xff] %v6562_v33  ;;  %7929 = vst [vmem:[#allocation40_spill] sm:$0xff] %v6565_v34  ;;  %v6568_v22 = vadd.f32 %v497_v61, %v6511_v29  ;;  %v6571_v17 = vadd.f32 %v610_v28, %v6515_v30 }
 0x161   :  { %v499_v16 = vpop.f32.mrf.mxu0  ;;  %v612_v21 = vpop.f32.mrf.mxu1 }
 0x162   :  { %7930 = vst [vmem:[#allocation41_spill] sm:$0xff] %v6568_v22  ;;  %7931 = vst [vmem:[#allocation42_spill] sm:$0xff] %v6571_v17  ;;  %v6574_v18 = vadd.f32 %v499_v16, %v6503_v25  ;;  %v6577_v10 = vadd.f32 %v612_v21, %v6507_v26 }
 0x163   :  { %v6579_v0 = vpop.f32.mrf.mxu0  ;;  %v6581_v11 = vpop.f32.mrf.mxu1 }
 0x164   :  { %7932 = vst [vmem:[#allocation43_spill] sm:$0xff] %v6574_v18  ;;  %7933 = vst [vmem:[#allocation44_spill] sm:$0xff] %v6577_v10 }
 0x165   :  { %7934 = vst [vmem:[#allocation45_spill] sm:$0xff] %v6579_v0  ;;  %7935 = vst [vmem:[#allocation46_spill] sm:$0xff] %v6581_v11  ;;  %v505_v34 = vpop.f32.mrf.mxu0  ;;  %v618_v33 = vpop.f32.mrf.mxu1 }
 0x166   :  { %v6584_v61 = vadd.f32 %v505_v34, %v6503_v25  ;;  %v6587_v28 = vadd.f32 %v618_v33, %v6507_v26 }
 0x167   :  { %v507_v17 = vpop.f32.mrf.mxu0  ;;  %v620_v22 = vpop.f32.mrf.mxu1 }
 0x168   :  { %7936 = vst [vmem:[#allocation47_spill] sm:$0xff] %v6584_v61  ;;  %7937 = vst [vmem:[#allocation48_spill] sm:$0xff] %v6587_v28  ;;  %v6590_v16 = vadd.f32 %v507_v17, %v6511_v29  ;;  %v6593_v21 = vadd.f32 %v620_v22, %v6515_v30 }
 0x169   :  { %v509_v10 = vpop.f32.mrf.mxu0  ;;  %v622_v18 = vpop.f32.mrf.mxu1 }
 0x16a   :  { %7938 = vst [vmem:[#allocation49_spill] sm:$0xff] %v6590_v16  ;;  %7939 = vst [vmem:[#allocation50_spill] sm:$0xff] %v6593_v21  ;;  %v6596_v11 = vadd.f32 %v509_v10, %v6503_v25  ;;  %v6599_v0 = vadd.f32 %v622_v18, %v6507_v26 }
 0x16b   :  { %v6601_v34 = vpop.f32.mrf.mxu0  ;;  %v6603_v33 = vpop.f32.mrf.mxu1 }
 0x16c   :  { %7940 = vst [vmem:[#allocation51_spill] sm:$0xff] %v6596_v11  ;;  %7941 = vst [vmem:[#allocation52_spill] sm:$0xff] %v6599_v0 }
 0x16d   :  { %7942 = vst [vmem:[#allocation53_spill] sm:$0xff] %v6601_v34  ;;  %7943 = vst [vmem:[#allocation54_spill] sm:$0xff] %v6603_v33  ;;  %v515_v28 = vpop.f32.mrf.mxu0  ;;  %v628_v61 = vpop.f32.mrf.mxu1 }
 0x16e   :  { %v6606_v17 = vadd.f32 %v515_v28, %v6503_v25  ;;  %v6609_v22 = vadd.f32 %v628_v61, %v6507_v26 }
 0x16f   :  { %v517_v21 = vpop.f32.mrf.mxu0  ;;  %v630_v16 = vpop.f32.mrf.mxu1 }
 0x170   :  { %7944 = vst [vmem:[#allocation55_spill] sm:$0xff] %v6606_v17  ;;  %7945 = vst [vmem:[#allocation56_spill] sm:$0xff] %v6609_v22  ;;  %v6612_v10 = vadd.f32 %v517_v21, %v6511_v29  ;;  %v6615_v18 = vadd.f32 %v630_v16, %v6515_v30 }
 0x171   :  { %v519_v0 = vpop.f32.mrf.mxu0  ;;  %v632_v11 = vpop.f32.mrf.mxu1 }
 0x172   :  { %7946 = vst [vmem:[#allocation57_spill] sm:$0xff] %v6612_v10  ;;  %7947 = vst [vmem:[#allocation58_spill] sm:$0xff] %v6615_v18  ;;  %v6618_v33 = vadd.f32 %v519_v0, %v6503_v25  ;;  %v6621_v34 = vadd.f32 %v632_v11, %v6507_v26 }
 0x173   :  { %v6623_v28 = vpop.f32.mrf.mxu0  ;;  %v6625_v61 = vpop.f32.mrf.mxu1 }
 0x174   :  { %7948 = vst [vmem:[#allocation59_spill] sm:$0xff] %v6618_v33  ;;  %7949 = vst [vmem:[#allocation60_spill] sm:$0xff] %v6621_v34 }
 0x175   :  { %7950 = vst [vmem:[#allocation61_spill] sm:$0xff] %v6623_v28  ;;  %7951 = vst [vmem:[#allocation62_spill] sm:$0xff] %v6625_v61  ;;  %v525_v22 = vpop.f32.mrf.mxu0  ;;  %v638_v17 = vpop.f32.mrf.mxu1 }
 0x176   :  { %v6628_v21 = vadd.f32 %v525_v22, %v6503_v25  ;;  %v6631_v16 = vadd.f32 %v638_v17, %v6507_v26 }
 0x177   :  { %v527_v18 = vpop.f32.mrf.mxu0  ;;  %v640_v10 = vpop.f32.mrf.mxu1 }
 0x178   :  { %7952 = vst [vmem:[#allocation63_spill] sm:$0xff] %v6628_v21  ;;  %7953 = vst [vmem:[#allocation64_spill] sm:$0xff] %v6631_v16  ;;  %v6634_v0 = vadd.f32 %v527_v18, %v6511_v29  ;;  %v6637_v11 = vadd.f32 %v640_v10, %v6515_v30 }
 0x179   :  { %v529_v34 = vpop.f32.mrf.mxu0  ;;  %v642_v33 = vpop.f32.mrf.mxu1 }
 0x17a   :  { %7954 = vst [vmem:[#allocation65_spill] sm:$0xff] %v6634_v0  ;;  %7955 = vst [vmem:[#allocation66_spill] sm:$0xff] %v6637_v11  ;;  %v6640_v61 = vadd.f32 %v529_v34, %v6503_v25  ;;  %v6643_v28 = vadd.f32 %v642_v33, %v6507_v26 }
 0x17b   :  { %v6645_v22 = vpop.f32.mrf.mxu0  ;;  %v6647_v17 = vpop.f32.mrf.mxu1 }
 0x17c   :  { %7956 = vst [vmem:[#allocation67_spill] sm:$0xff] %v6640_v61  ;;  %7957 = vst [vmem:[#allocation68_spill] sm:$0xff] %v6643_v28 }
 0x17d   :  { %7958 = vst [vmem:[#allocation69_spill] sm:$0xff] %v6645_v22  ;;  %7959 = vst [vmem:[#allocation70_spill] sm:$0xff] %v6647_v17  ;;  %v535_v16 = vpop.f32.mrf.mxu0  ;;  %v648_v21 = vpop.f32.mrf.mxu1 }
 0x17e   :  { %v6650_v18 = vadd.f32 %v535_v16, %v6503_v25  ;;  %v6653_v10 = vadd.f32 %v648_v21, %v6507_v26 }
 0x17f   :  { %v537_v11 = vpop.f32.mrf.mxu0  ;;  %v650_v0 = vpop.f32.mrf.mxu1 }
 0x180   :  { %7960 = vst [vmem:[#allocation71_spill] sm:$0xff] %v6650_v18  ;;  %7961 = vst [vmem:[#allocation72_spill] sm:$0xff] %v6653_v10  ;;  %v6656_v34 = vadd.f32 %v537_v11, %v6511_v29  ;;  %v6659_v33 = vadd.f32 %v650_v0, %v6515_v30  ;;  %v466_v10 = vadd.f32 %v6478_v12, %v6503_v25 }
 0x181   :  { %v539_v28 = vpop.f32.mrf.mxu0  ;;  %v652_v61 = vpop.f32.mrf.mxu1  ;;  %v468_v0 = vadd.f32 %v6482_v14, %v6511_v29  ;;  %v472_v12 = vadd.f32 %v6497_v23, %v6511_v29 }
 0x182   :  { %7962 = vst [vmem:[#allocation73_spill] sm:$0xff] %v6656_v34  ;;  %7963 = vst [vmem:[#allocation74_spill] sm:$0xff] %v6659_v33  ;;  %v6662_v17 = vadd.f32 %v539_v28, %v6503_v25  ;;  %v6665_v22 = vadd.f32 %v652_v61, %v6507_v26  ;;  %v579_v28 = vadd.f32 %v6480_v13, %v6507_v26 }
 0x183   :  { %v6667_v16 = vpop.f32.mrf.mxu0  ;;  %v6669_v21 = vpop.f32.mrf.mxu1  ;;  %v470_v61 = vadd.f32 %v6491_v19, %v6503_v25  ;;  %v583_v19 = vadd.f32 %v6493_v20, %v6507_v26 }
 0x184   :  { %7964 = vst [vmem:[#allocation75_spill] sm:$0xff] %v6662_v17  ;;  %7965 = vst [vmem:[#allocation76_spill] sm:$0xff] %v6665_v22 }
 0x185   :  { %7966 = vst [vmem:[#allocation77_spill] sm:$0xff] %v6667_v16  ;;  %7967 = vst [vmem:[#allocation78_spill] sm:$0xff] %v6669_v21  ;;  %v955_v11 = vpop.f32.mrf.mxu0  ;;  %v998_v34 = vpop.f32.mrf.mxu1 }
 0x186   :  { %v1007_v33 = vadd.f32 %v955_v11, %v466_v10  ;;  %v1009_v18 = vadd.f32 %v998_v34, %v579_v28  ;;  %v581_v34 = vadd.f32 %v6484_v15, %v6515_v30 }
 0x187   :  { %v957_v17 = vpop.f32.mrf.mxu0  ;;  %v1000_v21 = vpop.f32.mrf.mxu1 }
 0x188   :  { %v1015_v22 = vmul.f32 0.5, %v1007_v33  ;;  %v1008_v16 = vadd.f32 %v957_v17, %v468_v0 }
 0x189   :  { %v959_v52 = vpop.f32.mrf.mxu0  ;;  %v1002_v13 = vpop.f32.mrf.mxu1 }
 0x18a   :  { %5570 = vtanh.f32 %v1015_v22  ;;  %v1023_v27 = vmul.f32 0.5, %v1008_v16  ;;  %v1011_v43 = vadd.f32 %v959_v52, %v470_v61  ;;  %v1013_v17 = vadd.f32 %v1002_v13, %v583_v19 }
 0x18b   :  { %v961_v14 = vpop.f32.mrf.mxu0  ;;  %v1004_v23 = vpop.f32.mrf.mxu1  ;;  %v585_v52 = vadd.f32 %v6499_v24, %v6515_v30 }
 0x18c   :  { %5572 = vtanh.f32 %v1023_v27  ;;  %v1016_v10 = vmul.f32 0.5, %v1011_v43  ;;  %v1012_v11 = vadd.f32 %v961_v14, %v472_v12  ;;  %v1010_v27 = vadd.f32 %v1000_v21, %v581_v34 }
 0x18d   :  { %5574 = vtanh.f32 %v1009_v18  ;;  %v1014_v43 = vadd.f32 %v1004_v23, %v585_v52 }
 0x18e   :  { %5576 = vtanh.f32 %v1016_v10  ;;  %v1024_v25 = vmul.f32 0.5, %v1012_v11  ;;  %v1033_v16 = vmul.f32 0.5, %v1010_v27 }
 0x18f   :  { %v1034_v28 = vmul.f32 0.5, %v1014_v43 }
 0x190   :  { %5578 = vtanh.f32 %v1024_v25 }
 0x191   :  { %5580 = vtanh.f32 %v1013_v17 }
 0x192   :  { %5582 = vtanh.f32 %v1033_v16 }
 0x193   :  { %5584 = vtanh.f32 %v1034_v28 }
 0x197   :  { %v5571_v22 = vpop.eup %5570 }
 0x198   :  { %v1019_v18 = vmul.f32 0.5, %v5571_v22 }
 0x199   :  { %v5573_v33 = vpop.eup %5572 }
 0x19a   :  { %v5575_v0 = vpop.eup %5574  ;;  %v1021_v20 = vadd.f32 0.5, %v1019_v18  ;;  %v1027_v26 = vmul.f32 0.5, %v5573_v33 }
 0x19b   :  { %v5577_v61 = vpop.eup %5576 }
 0x19c   :  { %v1029_v12 = vadd.f32 0.5, %v1027_v26  ;;  %v1043_v14 = vmul.f32 %v5575_v0, %v1021_v20  ;;  %v1020_v10 = vmul.f32 0.5, %v5577_v61  ;;  %v7968_v61 = vmov 0  }
 0x19d   :  { %v5579_v15 = vpop.eup %5578 }
 0x19e   :  { %v1041_v11 = vmul.f32 0.0, %v1029_v12  ;;  %v1022_v13 = vadd.f32 0.5, %v1020_v10  ;;  %v1028_v24 = vmul.f32 0.5, %v5579_v15  ;;  %v5581_v25 = vpop.eup %5580 }
 0x19f   :  { %v5583_v52 = vpop.eup %5582 }
 0x1a0   :  { %v6687_v21 = vadd.f32 %v1043_v14, %v1041_v11  ;;  %v1030_v19 = vadd.f32 0.5, %v1028_v24  ;;  %v1044_v34 = vmul.f32 %v5581_v25, %v1022_v13  ;;  %v5585_v27 = vpop.eup %5584  ;;  %v1037_v43 = vmul.f32 0.5, %v5583_v52 }
 0x1a1   :  { %v1038_v22 = vmul.f32 0.5, %v5585_v27 }
 0x1a2   :  { %v1042_v17 = vmul.f32 0.0, %v1030_v19  ;;  %5586 = vtanh.f32 %v6687_v21  ;;  %v1039_v33 = vadd.f32 0.5, %v1037_v43 }
 0x1a3   :  { %v1040_v16 = vadd.f32 0.5, %v1038_v22 }
 0x1a4   :  { %v6690_v23 = vadd.f32 %v1044_v34, %v1042_v17 }
 0x1a6   :  { %5588 = vtanh.f32 %v6690_v23 }
 0x1af   :  { %v5587_v18 = vpop.eup %5586 }
 0x1b0   :  { %v1049_v20 = vmul.f32 %v5587_v18, %v1039_v33 }
 0x1b3   :  { %v5589_v0 = vpop.eup %5588 }
 0x1b4   :  { %v1050_v26 = vmul.f32 %v5589_v0, %v1040_v16 }
 0x1b6   :  { %v1051_v28 = vpack.c.bf16 %v1050_v26, %v1049_v20 }
 0x1b8   :  { %5068 = vst [vmem:[#allocation2] sm:$0xff] %v1051_v28   ;;  %1103 = vmatmul.mubr.bf16.vlgmr.msra.gmra.mxu0 %v1051_v28  ;;  %1146 = vmatmul.mubr.bf16.vlgmr.msra.gmra.mxu1 %v1051_v28 }
 0x1b9   :  { %1221 = vmatpush1.bf16.msra.mxu0 %v6330_v36  ;;  %1264 = vmatpush1.bf16.msra.mxu1 %v6336_v38  ;;  %v6725_v36 = vld [vmem:[#allocation12 + $0xe4] ss:$16 sps:$4 sm:$0xff]  }
 0x1ba   :  { %1222 = vmatprep.subr.bf16.mxu0 %v6333_v37  ;;  %1265 = vmatprep.subr.bf16.mxu1 %v6338_v39  ;;  %v6728_v37 = vld [vmem:[#allocation12 + $0xec] ss:$16 sps:$4 sm:$0xff]  }
 0x1bb   :  { %1252 = vmatprep.mubr.bf16.mxu0 %v7968_v61  ;;  %1295 = vmatprep.mubr.bf16.mxu1 %v7968_v61 }
 0x1bd   :  { %1223 = vmatpush1.bf16.msra.mxu0 %v6342_v40  ;;  %1266 = vmatpush1.bf16.msra.mxu1 %v6349_v42 }
 0x1be   :  { %1224 = vmatprep.subr.bf16.mxu0 %v6346_v41  ;;  %1267 = vmatprep.subr.bf16.mxu1 %v6358_v46 }
 0x1c1   :  { %1225 = vmatpush1.bf16.msra.mxu0 %v6354_v44  ;;  %1268 = vmatpush1.bf16.msra.mxu1 %v6361_v47 }
 0x1c2   :  { %1226 = vmatprep.subr.bf16.mxu0 %v6356_v45  ;;  %1269 = vmatprep.subr.bf16.mxu1 %v6363_v48  ;;  %v482_v48 = vadd.f32 %v6535_v8, %v6511_v29 }
 0x1c5   :  { %1227 = vmatpush1.bf16.msra.mxu0 %v6369_v49  ;;  %1270 = vmatpush1.bf16.msra.mxu1 %v6375_v51 }
 0x1c6   :  { %1228 = vmatprep.subr.bf16.mxu0 %v6371_v50  ;;  %1271 = vmatprep.subr.bf16.mxu1 %v6381_v54 }
 0x1c9   :  { %1229 = vmatpush1.bf16.msra.mxu0 %v6378_v53  ;;  %1272 = vmatpush1.bf16.msra.mxu1 %v6387_v56 }
 0x1ca   :  { %1230 = vmatprep.subr.bf16.mxu0 %v6385_v55  ;;  %1273 = vmatprep.subr.bf16.mxu1 %v6389_v57 }
 0x1cd   :  { %1231 = vmatpush1.bf16.msra.mxu0 %v6391_v58  ;;  %1274 = vmatpush1.bf16.msra.mxu1 %v6397_v60  ;;  %v7969_v60 = vld [vmem:[#allocation30_spill] sm:$0xff] }
 0x1ce   :  { %1232 = vmatprep.subr.bf16.mxu0 %v6395_v59  ;;  %1275 = vmatprep.subr.bf16.mxu1 %v6406_v63  ;;  %v595_v59 = vadd.f32 %v6537_v9, %v6515_v30 }
 0x1d1   :  { %1233 = vmatpush1.bf16.msra.mxu0 %v6404_v62  ;;  %1276 = vmatpush1.bf16.msra.mxu1 %v6410_v2 }
 0x1d2   :  { %1234 = vmatprep.subr.bf16.mxu0 %v6408_v1  ;;  %1277 = vmatprep.subr.bf16.mxu1 %v6413_v3 }
 0x1d5   :  { %1235 = vmatpush1.bf16.msra.mxu0 %v6417_v4  ;;  %1278 = vmatpush1.bf16.msra.mxu1 %v6421_v5 }
 0x1d6   :  { %1370 = vmatprep.subr.bf16.mxu0 %v6725_v36  ;;  %1413 = vmatprep.subr.bf16.mxu1 %v6728_v37 }
 0x278   :  { %v1104_v38 = vpop.f32.mrf.mxu0  ;;  %v1147_v39 = vpop.f32.mrf.mxu1 }
 0x279   :  { %v1156_v40 = vadd.f32 %v1104_v38, %v6518_v31  ;;  %v1158_v46 = vadd.f32 %v1147_v39, %v6521_v32  ;;  %v6752_v39 = vld [vmem:[#allocation12 + $0xe8] ss:$16 sps:$4 sm:$0xff]  }
 0x27a   :  { %v1106_v41 = vpop.f32.mrf.mxu0  ;;  %v1149_v42 = vpop.f32.mrf.mxu1 }
 0x27b   :  { %v1164_v44 = vmul.f32 0.5, %v1156_v40  ;;  %v1157_v45 = vadd.f32 %v1106_v41, %v6524_v35  ;;  %v1159_v62 = vadd.f32 %v1149_v42, %v7969_v60  ;;  %v6755_v40 = vld [vmem:[#allocation12 + $0xc4] ss:$16 sps:$4 sm:$0xff]   ;;  %v6758_v41 = vld [vmem:[#allocation12 + $0xcc] ss:$16 sps:$4 sm:$0xff]  }
 0x27c   :  { %v1108_v47 = vpop.f32.mrf.mxu0  ;;  %v1151_v51 = vpop.f32.mrf.mxu1  ;;  %v6763_v42 = vld [vmem:[#allocation12 + $0xc0] ss:$16 sps:$4 sm:$0xff]  }
 0x27d   :  { %5590 = vtanh.f32 %v1164_v44  ;;  %v1172_v49 = vmul.f32 0.5, %v1157_v45  ;;  %v1160_v50 = vadd.f32 %v1108_v47, %v6530_v6  ;;  %v1162_v56 = vadd.f32 %v1151_v51, %v6533_v7  ;;  %v6766_v44 = vld [vmem:[#allocation12 + $0xc8] ss:$16 sps:$4 sm:$0xff]   ;;  %v6769_v45 = vld [vmem:[#allocation12 + $0xa4] ss:$16 sps:$4 sm:$0xff]  }
 0x27e   :  { %v1110_v53 = vpop.f32.mrf.mxu0  ;;  %v1153_v58 = vpop.f32.mrf.mxu1  ;;  %v1182_v32 = vmul.f32 0.5, %v1159_v62  ;;  %v6775_v47 = vld [vmem:[#allocation12 + $0xa0] ss:$16 sps:$4 sm:$0xff]   ;;  %v6814_v62 = vld [vmem:[#allocation12 + $0x48] ss:$16 sps:$4 sm:$0xff]  }
 0x27f   :  { %5592 = vtanh.f32 %v1172_v49  ;;  %v1165_v54 = vmul.f32 0.5, %v1160_v50  ;;  %v1161_v55 = vadd.f32 %v1110_v53, %v482_v48  ;;  %v1163_v63 = vadd.f32 %v1153_v58, %v595_v59  ;;  %v6778_v48 = vld [vmem:[#allocation12 + $0xa8] ss:$16 sps:$4 sm:$0xff]   ;;  %v6781_v49 = vld [vmem:[#allocation12 + $0x84] ss:$16 sps:$4 sm:$0xff]  }
 0x280   :  { %5594 = vtanh.f32 %v1158_v46  ;;  %v6772_v46 = vld [vmem:[#allocation12 + $0xac] ss:$16 sps:$4 sm:$0xff]   ;;  %v6787_v51 = vld [vmem:[#allocation12 + $0x80] ss:$16 sps:$4 sm:$0xff]   ;;  %v6790_v53 = vld [vmem:[#allocation12 + $0x88] ss:$16 sps:$4 sm:$0xff]  }
 0x281   :  { %5596 = vtanh.f32 %v1165_v54  ;;  %v1173_v57 = vmul.f32 0.5, %v1161_v55  ;;  %v1183_v12 = vmul.f32 0.5, %v1163_v63  ;;  %v6784_v50 = vld [vmem:[#allocation12 + $0x8c] ss:$16 sps:$4 sm:$0xff]   ;;  %v6793_v54 = vld [vmem:[#allocation12 + $0x64] ss:$16 sps:$4 sm:$0xff]  }
 0x282   :  { %v6796_v55 = vld [vmem:[#allocation12 + $0x6c] ss:$16 sps:$4 sm:$0xff]   ;;  %v6805_v58 = vld [vmem:[#allocation12 + $0x44] ss:$16 sps:$4 sm:$0xff]   ;;  %v6811_v60 = vld [vmem:[#allocation12 + $0x40] ss:$16 sps:$4 sm:$0xff]  }
 0x283   :  { %5598 = vtanh.f32 %v1173_v57  ;;  %v6802_v57 = vld [vmem:[#allocation12 + $0x68] ss:$16 sps:$4 sm:$0xff]   ;;  %v6808_v59 = vld [vmem:[#allocation12 + $0x4c] ss:$16 sps:$4 sm:$0xff]   ;;  %v6817_v63 = vld [vmem:[#allocation12 + $0x24] ss:$16 sps:$4 sm:$0xff]  }
 0x284   :  { %5600 = vtanh.f32 %v1162_v56  ;;  %v6799_v56 = vld [vmem:[#allocation12 + $0x60] ss:$16 sps:$4 sm:$0xff]  }
 0x285   :  { %5602 = vtanh.f32 %v1182_v32  ;;  %v6829_v32 = vld [vmem:[#allocation12 + $0x4] ss:$16 sps:$4 sm:$0xff]  }
 0x286   :  { %5604 = vtanh.f32 %v1183_v12 }
 0x28a   :  { %v5591_v1 = vpop.eup %5590 }
 0x28b   :  { %v1168_v2 = vmul.f32 0.5, %v5591_v1  ;;  %v6820_v1 = vld [vmem:[#allocation12 + $0x2c] ss:$16 sps:$4 sm:$0xff]  }
 0x28c   :  { %v5593_v31 = vpop.eup %5592 }
 0x28d   :  { %v5595_v35 = vpop.eup %5594  ;;  %v1170_v6 = vadd.f32 0.5, %v1168_v2  ;;  %v1176_v8 = vmul.f32 0.5, %v5593_v31  ;;  %v6823_v2 = vld [vmem:[#allocation12 + $0x20] ss:$16 sps:$4 sm:$0xff]   ;;  %v6826_v31 = vld [vmem:[#allocation12 + $0x28] ss:$16 sps:$4 sm:$0xff]  }
 0x28e   :  { %v5597_v14 = vpop.eup %5596 }
 0x28f   :  { %v1178_v7 = vadd.f32 0.5, %v1176_v8  ;;  %v1192_v10 = vmul.f32 %v5595_v35, %v1170_v6  ;;  %v1169_v15 = vmul.f32 0.5, %v5597_v14  ;;  %v7970_v8 = vld [vmem:[#allocation31_spill] sm:$0xff] }
 0x290   :  { %v5599_v11 = vpop.eup %5598 }
 0x291   :  { %v1190_v13 = vmul.f32 %v1178_v7, %v6687_v21  ;;  %v1171_v9 = vadd.f32 0.5, %v1169_v15  ;;  %v1177_v24 = vmul.f32 0.5, %v5599_v11  ;;  %v5601_v19 = vpop.eup %5600  ;;  %v7971_v15 = vld [vmem:[#allocation33_spill] sm:$0xff] }
 0x292   :  { %v5603_v43 = vpop.eup %5602 }
 0x293   :  { %v6742_v25 = vadd.f32 %v1192_v10, %v1190_v13  ;;  %v1179_v17 = vadd.f32 0.5, %v1177_v24  ;;  %v1193_v34 = vmul.f32 %v5601_v19, %v1171_v9  ;;  %v5605_v22 = vpop.eup %5604  ;;  %v1186_v18 = vmul.f32 0.5, %v5603_v43  ;;  %v7972_v13 = vld [vmem:[#allocation32_spill] sm:$0xff]  ;;  %v7974_v19 = vld [vmem:[#allocation35_spill] sm:$0xff] }
 0x294   :  { %v1187_v21 = vmul.f32 0.5, %v5605_v22 }
 0x295   :  { %v1191_v52 = vmul.f32 %v1179_v17, %v6690_v23  ;;  %5606 = vtanh.f32 %v6742_v25  ;;  %v1188_v16 = vadd.f32 0.5, %v1186_v18  ;;  %v6749_v23 = vld [vmem:[#allocation12 + $0xe0] ss:$16 sps:$4 sm:$0xff]   ;;  %v7975_v18 = vld [vmem:[#allocation36_spill] sm:$0xff] }
 0x296   :  { %v1189_v0 = vadd.f32 0.5, %v1187_v21 }
 0x297   :  { %v6746_v27 = vadd.f32 %v1193_v34, %v1191_v52 }
 0x299   :  { %5608 = vtanh.f32 %v6746_v27 }
 0x2a2   :  { %v5607_v33 = vpop.eup %5606 }
 0x2a3   :  { %v1198_v26 = vmul.f32 %v5607_v33, %v1188_v16 }
 0x2a6   :  { %v5609_v20 = vpop.eup %5608 }
 0x2a7   :  { %v1199_v28 = vmul.f32 %v5609_v20, %v1189_v0  ;;  %v7976_v0 = vld [vmem:[#allocation38_spill] sm:$0xff] }
 0x2a8   :  { %v605_v20 = vadd.f32 %v7976_v0, %v6515_v30 }
 0x2a9   :  { %v1200_v38 = vpack.c.bf16 %v1199_v28, %v1198_v26  ;;  %v7977_v26 = vld [vmem:[#allocation34_spill] sm:$0xff] }
 0x2ab   :  { %5073 = vst [vmem:[#allocation2 + $0x8] sm:$0xff] %v1200_v38   ;;  %1253 = vmatmul.mubr.bf16.vlgmr.msra.gmra.mxu0 %v1200_v38  ;;  %1296 = vmatmul.mubr.bf16.vlgmr.msra.gmra.mxu1 %v1200_v38 }
 0x2ac   :  { %1371 = vmatpush1.bf16.msra.mxu0 %v6749_v23  ;;  %1414 = vmatpush1.bf16.msra.mxu1 %v6752_v39 }
 0x2ad   :  { %1372 = vmatprep.subr.bf16.mxu0 %v6755_v40  ;;  %1415 = vmatprep.subr.bf16.mxu1 %v6758_v41 }
 0x2ae   :  { %1402 = vmatprep.mubr.bf16.mxu0 %v7968_v61  ;;  %1445 = vmatprep.mubr.bf16.mxu1 %v7968_v61 }
 0x2b0   :  { %1373 = vmatpush1.bf16.msra.mxu0 %v6763_v42  ;;  %1416 = vmatpush1.bf16.msra.mxu1 %v6766_v44 }
 0x2b1   :  { %1374 = vmatprep.subr.bf16.mxu0 %v6769_v45  ;;  %1417 = vmatprep.subr.bf16.mxu1 %v6772_v46 }
 0x2b4   :  { %1375 = vmatpush1.bf16.msra.mxu0 %v6775_v47  ;;  %1418 = vmatpush1.bf16.msra.mxu1 %v6778_v48 }
 0x2b5   :  { %1376 = vmatprep.subr.bf16.mxu0 %v6781_v49  ;;  %1419 = vmatprep.subr.bf16.mxu1 %v6784_v50 }
 0x2b8   :  { %1377 = vmatpush1.bf16.msra.mxu0 %v6787_v51  ;;  %1420 = vmatpush1.bf16.msra.mxu1 %v6790_v53 }
 0x2b9   :  { %1378 = vmatprep.subr.bf16.mxu0 %v6793_v54  ;;  %1421 = vmatprep.subr.bf16.mxu1 %v6796_v55 }
 0x2bc   :  { %1379 = vmatpush1.bf16.msra.mxu0 %v6799_v56  ;;  %1422 = vmatpush1.bf16.msra.mxu1 %v6802_v57 }
 0x2bd   :  { %1380 = vmatprep.subr.bf16.mxu0 %v6805_v58  ;;  %1423 = vmatprep.subr.bf16.mxu1 %v6808_v59 }
 0x2c0   :  { %1381 = vmatpush1.bf16.msra.mxu0 %v6811_v60  ;;  %1424 = vmatpush1.bf16.msra.mxu1 %v6814_v62 }
 0x2c1   :  { %1382 = vmatprep.subr.bf16.mxu0 %v6817_v63  ;;  %1425 = vmatprep.subr.bf16.mxu1 %v6820_v1 }
 0x2c4   :  { %1383 = vmatpush1.bf16.msra.mxu0 %v6823_v2  ;;  %1426 = vmatpush1.bf16.msra.mxu1 %v6826_v31 }
 0x2c5   :  { %1384 = vmatprep.subr.bf16.mxu0 %v6829_v32  ;;  %1427 = vmatprep.subr.bf16.mxu1 %v6413_v3 }
 0x2c8   :  { %1385 = vmatpush1.bf16.msra.mxu0 %v6417_v4  ;;  %1428 = vmatpush1.bf16.msra.mxu1 %v6421_v5  ;;  %v7973_v4 = vld [vmem:[#allocation37_spill] sm:$0xff] }
 0x2c9   :  { %1520 = vmatprep.subr.bf16.mxu0 %v6725_v36  ;;  %1563 = vmatprep.subr.bf16.mxu1 %v6728_v37  ;;  %v492_v24 = vadd.f32 %v7973_v4, %v6511_v29 }
 0x36b   :  { %v1254_v35 = vpop.f32.mrf.mxu0  ;;  %v1297_v6 = vpop.f32.mrf.mxu1 }
 0x36c   :  { %v1306_v12 = vadd.f32 %v1254_v35, %v7970_v8  ;;  %v1308_v9 = vadd.f32 %v1297_v6, %v7972_v13 }
 0x36d   :  { %v1256_v14 = vpop.f32.mrf.mxu0  ;;  %v1299_v7 = vpop.f32.mrf.mxu1 }
 0x36e   :  { %v1314_v10 = vmul.f32 0.5, %v1306_v12  ;;  %v1307_v11 = vadd.f32 %v1256_v14, %v7971_v15  ;;  %v1309_v28 = vadd.f32 %v1299_v7, %v7977_v26 }
 0x36f   :  { %v1258_v3 = vpop.f32.mrf.mxu0  ;;  %v1301_v34 = vpop.f32.mrf.mxu1 }
 0x370   :  { %5610 = vtanh.f32 %v1314_v10  ;;  %v1322_v5 = vmul.f32 0.5, %v1307_v11  ;;  %v1310_v17 = vadd.f32 %v1258_v3, %v7974_v19  ;;  %v1312_v21 = vadd.f32 %v1301_v34, %v7975_v18 }
 0x371   :  { %v1260_v52 = vpop.f32.mrf.mxu0  ;;  %v1303_v16 = vpop.f32.mrf.mxu1  ;;  %v1332_v12 = vmul.f32 0.5, %v1309_v28 }
 0x372   :  { %5612 = vtanh.f32 %v1322_v5  ;;  %v1315_v43 = vmul.f32 0.5, %v1310_v17  ;;  %v1311_v22 = vadd.f32 %v1260_v52, %v492_v24  ;;  %v1313_v38 = vadd.f32 %v1303_v16, %v605_v20 }
 0x373   :  { %5614 = vtanh.f32 %v1308_v9 }
 0x374   :  { %5616 = vtanh.f32 %v1315_v43  ;;  %v1323_v33 = vmul.f32 0.5, %v1311_v22  ;;  %v1333_v11 = vmul.f32 0.5, %v1313_v38 }
 0x376   :  { %5618 = vtanh.f32 %v1323_v33 }
 0x377   :  { %5620 = vtanh.f32 %v1312_v21 }
 0x378   :  { %5622 = vtanh.f32 %v1332_v12  ;;  %v6890_v12 = vld [vmem:[#allocation12 + $0x8] ss:$16 sps:$4 sm:$0xff]  }
 0x379   :  { %5624 = vtanh.f32 %v1333_v11 }
 0x37d   :  { %v5611_v35 = vpop.eup %5610 }
 0x37e   :  { %v1318_v6 = vmul.f32 0.5, %v5611_v35 }
 0x37f   :  { %v5613_v8 = vpop.eup %5612 }
 0x380   :  { %v5615_v14 = vpop.eup %5614  ;;  %v1320_v10 = vadd.f32 0.5, %v1318_v6  ;;  %v1326_v15 = vmul.f32 0.5, %v5613_v8  ;;  %v6887_v8 = vld [vmem:[#allocation12] ss:$16 sps:$4 sm:$0xff]  }
 0x381   :  { %v5617_v13 = vpop.eup %5616 }
 0x382   :  { %v1328_v9 = vadd.f32 0.5, %v1326_v15  ;;  %v1342_v3 = vmul.f32 %v5615_v14, %v1320_v10  ;;  %v1319_v4 = vmul.f32 0.5, %v5617_v13  ;;  %v7978_v15 = vld [vmem:[#allocation39_spill] sm:$0xff] }
 0x383   :  { %v5619_v24 = vpop.eup %5618 }
 0x384   :  { %v1340_v5 = vmul.f32 %v1328_v9, %v6742_v25  ;;  %v1321_v19 = vadd.f32 0.5, %v1319_v4  ;;  %v1327_v17 = vmul.f32 0.5, %v5619_v24  ;;  %v5621_v7 = vpop.eup %5620  ;;  %v7979_v4 = vld [vmem:[#allocation41_spill] sm:$0xff] }
 0x385   :  { %v5623_v21 = vpop.eup %5622 }
 0x386   :  { %v6848_v34 = vadd.f32 %v1342_v3, %v1340_v5  ;;  %v1329_v52 = vadd.f32 0.5, %v1327_v17  ;;  %v1343_v43 = vmul.f32 %v5621_v7, %v1321_v19  ;;  %v5625_v33 = vpop.eup %5624  ;;  %v1336_v16 = vmul.f32 0.5, %v5623_v21  ;;  %v7980_v5 = vld [vmem:[#allocation40_spill] sm:$0xff]  ;;  %v7981_v7 = vld [vmem:[#allocation45_spill] sm:$0xff] }
 0x387   :  { %v1337_v25 = vmul.f32 0.5, %v5625_v33 }
 0x388   :  { %v1341_v22 = vmul.f32 %v1329_v52, %v6746_v27  ;;  %5626 = vtanh.f32 %v6848_v34  ;;  %v1338_v20 = vadd.f32 0.5, %v1336_v16  ;;  %v6884_v27 = vld [vmem:[#allocation12 + $0xc] ss:$16 sps:$4 sm:$0xff]   ;;  %v502_v52 = vadd.f32 %v7981_v7, %v6511_v29 }
 0x389   :  { %v1339_v26 = vadd.f32 0.5, %v1337_v25 }
 0x38a   :  { %v6852_v18 = vadd.f32 %v1343_v43, %v1341_v22  ;;  %v7982_v22 = vld [vmem:[#allocation43_spill] sm:$0xff] }
 0x38c   :  { %5628 = vtanh.f32 %v6852_v18 }
 0x395   :  { %v5627_v0 = vpop.eup %5626 }
 0x396   :  { %v1348_v38 = vmul.f32 %v5627_v0, %v1338_v20  ;;  %v7983_v20 = vld [vmem:[#allocation44_spill] sm:$0xff] }
 0x399   :  { %v5629_v28 = vpop.eup %5628 }
 0x39a   :  { %v1349_v35 = vmul.f32 %v5629_v28, %v1339_v26 }
 0x39c   :  { %v1350_v6 = vpack.c.bf16 %v1349_v35, %v1348_v38  ;;  %v7984_v35 = vld [vmem:[#allocation46_spill] sm:$0xff] }
 0x39e   :  { %5078 = vst [vmem:[#allocation2 + $0x10] sm:$0xff] %v1350_v6   ;;  %1403 = vmatmul.mubr.bf16.vlgmr.msra.gmra.mxu0 %v1350_v6  ;;  %1446 = vmatmul.mubr.bf16.vlgmr.msra.gmra.mxu1 %v1350_v6  ;;  %v615_v6 = vadd.f32 %v7984_v35, %v6515_v30 }
 0x39f   :  { %1521 = vmatpush1.bf16.msra.mxu0 %v6749_v23  ;;  %1564 = vmatpush1.bf16.msra.mxu1 %v6752_v39 }
 0x3a0   :  { %1522 = vmatprep.subr.bf16.mxu0 %v6755_v40  ;;  %1565 = vmatprep.subr.bf16.mxu1 %v6758_v41 }
 0x3a1   :  { %1552 = vmatprep.mubr.bf16.mxu0 %v7968_v61  ;;  %1595 = vmatprep.mubr.bf16.mxu1 %v7968_v61 }
 0x3a3   :  { %1523 = vmatpush1.bf16.msra.mxu0 %v6763_v42  ;;  %1566 = vmatpush1.bf16.msra.mxu1 %v6766_v44 }
 0x3a4   :  { %1524 = vmatprep.subr.bf16.mxu0 %v6769_v45  ;;  %1567 = vmatprep.subr.bf16.mxu1 %v6772_v46 }
 0x3a7   :  { %1525 = vmatpush1.bf16.msra.mxu0 %v6775_v47  ;;  %1568 = vmatpush1.bf16.msra.mxu1 %v6778_v48 }
 0x3a8   :  { %1526 = vmatprep.subr.bf16.mxu0 %v6781_v49  ;;  %1569 = vmatprep.subr.bf16.mxu1 %v6784_v50 }
 0x3ab   :  { %1527 = vmatpush1.bf16.msra.mxu0 %v6787_v51  ;;  %1570 = vmatpush1.bf16.msra.mxu1 %v6790_v53 }
 0x3ac   :  { %1528 = vmatprep.subr.bf16.mxu0 %v6793_v54  ;;  %1571 = vmatprep.subr.bf16.mxu1 %v6796_v55 }
 0x3af   :  { %1529 = vmatpush1.bf16.msra.mxu0 %v6799_v56  ;;  %1572 = vmatpush1.bf16.msra.mxu1 %v6802_v57 }
 0x3b0   :  { %1530 = vmatprep.subr.bf16.mxu0 %v6805_v58  ;;  %1573 = vmatprep.subr.bf16.mxu1 %v6808_v59 }
 0x3b3   :  { %1531 = vmatpush1.bf16.msra.mxu0 %v6811_v60  ;;  %1574 = vmatpush1.bf16.msra.mxu1 %v6814_v62 }
 0x3b4   :  { %1532 = vmatprep.subr.bf16.mxu0 %v6817_v63  ;;  %1575 = vmatprep.subr.bf16.mxu1 %v6820_v1 }
 0x3b7   :  { %1533 = vmatpush1.bf16.msra.mxu0 %v6823_v2  ;;  %1576 = vmatpush1.bf16.msra.mxu1 %v6826_v31 }
 0x3b8   :  { %1534 = vmatprep.subr.bf16.mxu0 %v6829_v32  ;;  %1577 = vmatprep.subr.bf16.mxu1 %v6884_v27 }
 0x3bb   :  { %1535 = vmatpush1.bf16.msra.mxu0 %v6887_v8  ;;  %1578 = vmatpush1.bf16.msra.mxu1 %v6890_v12 }
 0x3bc   :  { %1670 = vmatprep.subr.bf16.mxu0 %v6725_v36  ;;  %1713 = vmatprep.subr.bf16.mxu1 %v6728_v37 }
 0x45e   :  { %v1404_v14 = vpop.f32.mrf.mxu0  ;;  %v1447_v10 = vpop.f32.mrf.mxu1 }
 0x45f   :  { %v1456_v11 = vadd.f32 %v1404_v14, %v7978_v15  ;;  %v1458_v19 = vadd.f32 %v1447_v10, %v7980_v5  ;;  %v7985_v14 = vld [vmem:[#allocation42_spill] sm:$0xff] }
 0x460   :  { %v1406_v13 = vpop.f32.mrf.mxu0  ;;  %v1449_v9 = vpop.f32.mrf.mxu1 }
 0x461   :  { %v1464_v3 = vmul.f32 0.5, %v1456_v11  ;;  %v1457_v24 = vadd.f32 %v1406_v13, %v7979_v4  ;;  %v1459_v10 = vadd.f32 %v1449_v9, %v7985_v14 }
 0x462   :  { %v1408_v17 = vpop.f32.mrf.mxu0  ;;  %v1451_v33 = vpop.f32.mrf.mxu1 }
 0x463   :  { %5630 = vtanh.f32 %v1464_v3  ;;  %v1472_v43 = vmul.f32 0.5, %v1457_v24  ;;  %v1460_v21 = vadd.f32 %v1408_v17, %v7982_v22  ;;  %v1462_v26 = vadd.f32 %v1451_v33, %v7983_v20 }
 0x464   :  { %v1410_v16 = vpop.f32.mrf.mxu0  ;;  %v1453_v38 = vpop.f32.mrf.mxu1  ;;  %v1482_v4 = vmul.f32 0.5, %v1459_v10 }
 0x465   :  { %5632 = vtanh.f32 %v1472_v43  ;;  %v1465_v25 = vmul.f32 0.5, %v1460_v21  ;;  %v1461_v0 = vadd.f32 %v1410_v16, %v502_v52  ;;  %v1463_v15 = vadd.f32 %v1453_v38, %v615_v6 }
 0x466   :  { %5634 = vtanh.f32 %v1458_v19 }
 0x467   :  { %5636 = vtanh.f32 %v1465_v25  ;;  %v1473_v28 = vmul.f32 0.5, %v1461_v0  ;;  %v1483_v17 = vmul.f32 0.5, %v1463_v15 }
 0x469   :  { %5638 = vtanh.f32 %v1473_v28 }
 0x46a   :  { %5640 = vtanh.f32 %v1462_v26 }
 0x46b   :  { %5642 = vtanh.f32 %v1482_v4 }
 0x46c   :  { %5644 = vtanh.f32 %v1483_v17 }
 0x470   :  { %v5631_v11 = vpop.eup %5630 }
 0x471   :  { %v1468_v13 = vmul.f32 0.5, %v5631_v11 }
 0x472   :  { %v5633_v3 = vpop.eup %5632 }
 0x473   :  { %v5635_v24 = vpop.eup %5634  ;;  %v1470_v5 = vadd.f32 0.5, %v1468_v13  ;;  %v1476_v19 = vmul.f32 0.5, %v5633_v3 }
 0x474   :  { %v5637_v7 = vpop.eup %5636 }
 0x475   :  { %v1478_v52 = vadd.f32 0.5, %v1476_v19  ;;  %v1492_v43 = vmul.f32 %v5635_v24, %v1470_v5  ;;  %v1469_v22 = vmul.f32 0.5, %v5637_v7  ;;  %v7986_v19 = vld [vmem:[#allocation47_spill] sm:$0xff] }
 0x476   :  { %v5639_v21 = vpop.eup %5638 }
 0x477   :  { %v1490_v33 = vmul.f32 %v1478_v52, %v6848_v34  ;;  %v1471_v16 = vadd.f32 0.5, %v1469_v22  ;;  %v1477_v25 = vmul.f32 0.5, %v5639_v21  ;;  %v5641_v9 = vpop.eup %5640  ;;  %v7987_v22 = vld [vmem:[#allocation49_spill] sm:$0xff] }
 0x478   :  { %v5643_v35 = vpop.eup %5642 }
 0x479   :  { %v6906_v0 = vadd.f32 %v1492_v43, %v1490_v33  ;;  %v1479_v20 = vadd.f32 0.5, %v1477_v25  ;;  %v1493_v26 = vmul.f32 %v5641_v9, %v1471_v16  ;;  %v5645_v6 = vpop.eup %5644  ;;  %v1486_v14 = vmul.f32 0.5, %v5643_v35  ;;  %v7988_v33 = vld [vmem:[#allocation48_spill] sm:$0xff]  ;;  %v7989_v9 = vld [vmem:[#allocation53_spill] sm:$0xff] }
 0x47a   :  { %v1487_v34 = vmul.f32 0.5, %v5645_v6 }
 0x47b   :  { %v1491_v28 = vmul.f32 %v1479_v20, %v6852_v18  ;;  %5646 = vtanh.f32 %v6906_v0  ;;  %v1488_v15 = vadd.f32 0.5, %v1486_v14  ;;  %v512_v20 = vadd.f32 %v7989_v9, %v6511_v29 }
 0x47c   :  { %v1489_v11 = vadd.f32 0.5, %v1487_v34 }
 0x47d   :  { %v6910_v38 = vadd.f32 %v1493_v26, %v1491_v28  ;;  %v7990_v28 = vld [vmem:[#allocation51_spill] sm:$0xff] }
 0x47f   :  { %5648 = vtanh.f32 %v6910_v38 }
 0x488   :  { %v5647_v10 = vpop.eup %5646 }
 0x489   :  { %v1498_v3 = vmul.f32 %v5647_v10, %v1488_v15  ;;  %v7991_v15 = vld [vmem:[#allocation52_spill] sm:$0xff] }
 0x48c   :  { %v5649_v13 = vpop.eup %5648 }
 0x48d   :  { %v1499_v4 = vmul.f32 %v5649_v13, %v1489_v11 }
 0x48f   :  { %v1500_v24 = vpack.c.bf16 %v1499_v4, %v1498_v3  ;;  %v7992_v4 = vld [vmem:[#allocation54_spill] sm:$0xff] }
 0x491   :  { %5083 = vst [vmem:[#allocation2 + $0x18] sm:$0xff] %v1500_v24   ;;  %1553 = vmatmul.mubr.bf16.vlgmr.msra.gmra.mxu0 %v1500_v24  ;;  %1596 = vmatmul.mubr.bf16.vlgmr.msra.gmra.mxu1 %v1500_v24  ;;  %v625_v24 = vadd.f32 %v7992_v4, %v6515_v30 }
 0x492   :  { %1671 = vmatpush1.bf16.msra.mxu0 %v6749_v23  ;;  %1714 = vmatpush1.bf16.msra.mxu1 %v6752_v39 }
 0x493   :  { %1672 = vmatprep.subr.bf16.mxu0 %v6755_v40  ;;  %1715 = vmatprep.subr.bf16.mxu1 %v6758_v41 }
 0x494   :  { %1702 = vmatprep.mubr.bf16.mxu0 %v7968_v61  ;;  %1745 = vmatprep.mubr.bf16.mxu1 %v7968_v61 }
 0x496   :  { %1673 = vmatpush1.bf16.msra.mxu0 %v6763_v42  ;;  %1716 = vmatpush1.bf16.msra.mxu1 %v6766_v44 }
 0x497   :  { %1674 = vmatprep.subr.bf16.mxu0 %v6769_v45  ;;  %1717 = vmatprep.subr.bf16.mxu1 %v6772_v46 }
 0x49a   :  { %1675 = vmatpush1.bf16.msra.mxu0 %v6775_v47  ;;  %1718 = vmatpush1.bf16.msra.mxu1 %v6778_v48 }
 0x49b   :  { %1676 = vmatprep.subr.bf16.mxu0 %v6781_v49  ;;  %1719 = vmatprep.subr.bf16.mxu1 %v6784_v50 }
 0x49e   :  { %1677 = vmatpush1.bf16.msra.mxu0 %v6787_v51  ;;  %1720 = vmatpush1.bf16.msra.mxu1 %v6790_v53 }
 0x49f   :  { %1678 = vmatprep.subr.bf16.mxu0 %v6793_v54  ;;  %1721 = vmatprep.subr.bf16.mxu1 %v6796_v55 }
 0x4a2   :  { %1679 = vmatpush1.bf16.msra.mxu0 %v6799_v56  ;;  %1722 = vmatpush1.bf16.msra.mxu1 %v6802_v57 }
 0x4a3   :  { %1680 = vmatprep.subr.bf16.mxu0 %v6805_v58  ;;  %1723 = vmatprep.subr.bf16.mxu1 %v6808_v59 }
 0x4a6   :  { %1681 = vmatpush1.bf16.msra.mxu0 %v6811_v60  ;;  %1724 = vmatpush1.bf16.msra.mxu1 %v6814_v62 }
 0x4a7   :  { %1682 = vmatprep.subr.bf16.mxu0 %v6817_v63  ;;  %1725 = vmatprep.subr.bf16.mxu1 %v6820_v1 }
 0x4aa   :  { %1683 = vmatpush1.bf16.msra.mxu0 %v6823_v2  ;;  %1726 = vmatpush1.bf16.msra.mxu1 %v6826_v31 }
 0x4ab   :  { %1684 = vmatprep.subr.bf16.mxu0 %v6829_v32  ;;  %1727 = vmatprep.subr.bf16.mxu1 %v6884_v27 }
 0x4ae   :  { %1685 = vmatpush1.bf16.msra.mxu0 %v6887_v8  ;;  %1728 = vmatpush1.bf16.msra.mxu1 %v6890_v12 }
 0x4af   :  { %1820 = vmatprep.subr.bf16.mxu0 %v6725_v36  ;;  %1863 = vmatprep.subr.bf16.mxu1 %v6728_v37 }
 0x551   :  { %v1554_v18 = vpop.f32.mrf.mxu0  ;;  %v1597_v5 = vpop.f32.mrf.mxu1 }
 0x552   :  { %v1606_v17 = vadd.f32 %v1554_v18, %v7986_v19  ;;  %v1608_v16 = vadd.f32 %v1597_v5, %v7988_v33  ;;  %v7993_v18 = vld [vmem:[#allocation50_spill] sm:$0xff] }
 0x553   :  { %v1556_v7 = vpop.f32.mrf.mxu0  ;;  %v1599_v52 = vpop.f32.mrf.mxu1 }
 0x554   :  { %v1614_v43 = vmul.f32 0.5, %v1606_v17  ;;  %v1607_v21 = vadd.f32 %v1556_v7, %v7987_v22  ;;  %v1609_v5 = vadd.f32 %v1599_v52, %v7993_v18 }
 0x555   :  { %v1558_v25 = vpop.f32.mrf.mxu0  ;;  %v1601_v6 = vpop.f32.mrf.mxu1 }
 0x556   :  { %5650 = vtanh.f32 %v1614_v43  ;;  %v1622_v26 = vmul.f32 0.5, %v1607_v21  ;;  %v1610_v35 = vadd.f32 %v1558_v25, %v7990_v28  ;;  %v1612_v11 = vadd.f32 %v1601_v6, %v7991_v15 }
 0x557   :  { %v1560_v14 = vpop.f32.mrf.mxu0  ;;  %v1603_v3 = vpop.f32.mrf.mxu1  ;;  %v1632_v22 = vmul.f32 0.5, %v1609_v5 }
 0x558   :  { %5652 = vtanh.f32 %v1622_v26  ;;  %v1615_v34 = vmul.f32 0.5, %v1610_v35  ;;  %v1611_v10 = vadd.f32 %v1560_v14, %v512_v20  ;;  %v1613_v19 = vadd.f32 %v1603_v3, %v625_v24 }
 0x559   :  { %5654 = vtanh.f32 %v1608_v16 }
 0x55a   :  { %5656 = vtanh.f32 %v1615_v34  ;;  %v1623_v13 = vmul.f32 0.5, %v1611_v10  ;;  %v1633_v25 = vmul.f32 0.5, %v1613_v19 }
 0x55c   :  { %5658 = vtanh.f32 %v1623_v13 }
 0x55d   :  { %5660 = vtanh.f32 %v1612_v11 }
 0x55e   :  { %5662 = vtanh.f32 %v1632_v22 }
 0x55f   :  { %5664 = vtanh.f32 %v1633_v25 }
 0x563   :  { %v5651_v17 = vpop.eup %5650 }
 0x564   :  { %v1618_v7 = vmul.f32 0.5, %v5651_v17 }
 0x565   :  { %v5653_v43 = vpop.eup %5652 }
 0x566   :  { %v5655_v21 = vpop.eup %5654  ;;  %v1620_v33 = vadd.f32 0.5, %v1618_v7  ;;  %v1626_v16 = vmul.f32 0.5, %v5653_v43 }
 0x567   :  { %v5657_v9 = vpop.eup %5656 }
 0x568   :  { %v1628_v20 = vadd.f32 0.5, %v1626_v16  ;;  %v1642_v26 = vmul.f32 %v5655_v21, %v1620_v33  ;;  %v1619_v28 = vmul.f32 0.5, %v5657_v9  ;;  %v7994_v16 = vld [vmem:[#allocation55_spill] sm:$0xff] }
 0x569   :  { %v5659_v35 = vpop.eup %5658 }
 0x56a   :  { %v1640_v6 = vmul.f32 %v1628_v20, %v6906_v0  ;;  %v1621_v14 = vadd.f32 0.5, %v1619_v28  ;;  %v1627_v34 = vmul.f32 0.5, %v5659_v35  ;;  %v5661_v52 = vpop.eup %5660  ;;  %v7995_v28 = vld [vmem:[#allocation57_spill] sm:$0xff] }
 0x56b   :  { %v5663_v4 = vpop.eup %5662 }
 0x56c   :  { %v6958_v10 = vadd.f32 %v1642_v26, %v1640_v6  ;;  %v1629_v15 = vadd.f32 0.5, %v1627_v34  ;;  %v1643_v11 = vmul.f32 %v5661_v52, %v1621_v14  ;;  %v5665_v24 = vpop.eup %5664  ;;  %v1636_v18 = vmul.f32 0.5, %v5663_v4  ;;  %v7996_v6 = vld [vmem:[#allocation56_spill] sm:$0xff]  ;;  %v7997_v52 = vld [vmem:[#allocation61_spill] sm:$0xff] }
 0x56d   :  { %v1637_v0 = vmul.f32 0.5, %v5665_v24 }
 0x56e   :  { %v1641_v13 = vmul.f32 %v1629_v15, %v6910_v38  ;;  %5666 = vtanh.f32 %v6958_v10  ;;  %v1638_v19 = vadd.f32 0.5, %v1636_v18  ;;  %v522_v15 = vadd.f32 %v7997_v52, %v6511_v29 }
 0x56f   :  { %v1639_v17 = vadd.f32 0.5, %v1637_v0  ;;  %v7999_v0 = vld [vmem:[#allocation60_spill] sm:$0xff] }
 0x570   :  { %v6962_v3 = vadd.f32 %v1643_v11, %v1641_v13 }
 0x572   :  { %5668 = vtanh.f32 %v6962_v3 }
 0x57b   :  { %v5667_v5 = vpop.eup %5666 }
 0x57c   :  { %v1648_v43 = vmul.f32 %v5667_v5, %v1638_v19 }
 0x57f   :  { %v5669_v7 = vpop.eup %5668 }
 0x580   :  { %v1649_v22 = vmul.f32 %v5669_v7, %v1639_v17  ;;  %v8000_v7 = vld [vmem:[#allocation62_spill] sm:$0xff] }
 0x582   :  { %v1650_v21 = vpack.c.bf16 %v1649_v22, %v1648_v43  ;;  %v635_v43 = vadd.f32 %v8000_v7, %v6515_v30  ;;  %v8001_v22 = vld [vmem:[#allocation58_spill] sm:$0xff] }
 0x584   :  { %5088 = vst [vmem:[#allocation2 + $0x20] sm:$0xff] %v1650_v21   ;;  %1703 = vmatmul.mubr.bf16.vlgmr.msra.gmra.mxu0 %v1650_v21  ;;  %1746 = vmatmul.mubr.bf16.vlgmr.msra.gmra.mxu1 %v1650_v21 }
 0x585   :  { %1821 = vmatpush1.bf16.msra.mxu0 %v6749_v23  ;;  %1864 = vmatpush1.bf16.msra.mxu1 %v6752_v39 }
 0x586   :  { %1822 = vmatprep.subr.bf16.mxu0 %v6755_v40  ;;  %1865 = vmatprep.subr.bf16.mxu1 %v6758_v41 }
 0x587   :  { %1852 = vmatprep.mubr.bf16.mxu0 %v7968_v61  ;;  %1895 = vmatprep.mubr.bf16.mxu1 %v7968_v61 }
 0x589   :  { %1823 = vmatpush1.bf16.msra.mxu0 %v6763_v42  ;;  %1866 = vmatpush1.bf16.msra.mxu1 %v6766_v44 }
 0x58a   :  { %1824 = vmatprep.subr.bf16.mxu0 %v6769_v45  ;;  %1867 = vmatprep.subr.bf16.mxu1 %v6772_v46 }
 0x58d   :  { %1825 = vmatpush1.bf16.msra.mxu0 %v6775_v47  ;;  %1868 = vmatpush1.bf16.msra.mxu1 %v6778_v48 }
 0x58e   :  { %1826 = vmatprep.subr.bf16.mxu0 %v6781_v49  ;;  %1869 = vmatprep.subr.bf16.mxu1 %v6784_v50 }
 0x591   :  { %1827 = vmatpush1.bf16.msra.mxu0 %v6787_v51  ;;  %1870 = vmatpush1.bf16.msra.mxu1 %v6790_v53 }
 0x592   :  { %1828 = vmatprep.subr.bf16.mxu0 %v6793_v54  ;;  %1871 = vmatprep.subr.bf16.mxu1 %v6796_v55 }
 0x595   :  { %1829 = vmatpush1.bf16.msra.mxu0 %v6799_v56  ;;  %1872 = vmatpush1.bf16.msra.mxu1 %v6802_v57 }
 0x596   :  { %1830 = vmatprep.subr.bf16.mxu0 %v6805_v58  ;;  %1873 = vmatprep.subr.bf16.mxu1 %v6808_v59 }
 0x599   :  { %1831 = vmatpush1.bf16.msra.mxu0 %v6811_v60  ;;  %1874 = vmatpush1.bf16.msra.mxu1 %v6814_v62 }
 0x59a   :  { %1832 = vmatprep.subr.bf16.mxu0 %v6817_v63  ;;  %1875 = vmatprep.subr.bf16.mxu1 %v6820_v1 }
 0x59d   :  { %1833 = vmatpush1.bf16.msra.mxu0 %v6823_v2  ;;  %1876 = vmatpush1.bf16.msra.mxu1 %v6826_v31 }
 0x59e   :  { %1834 = vmatprep.subr.bf16.mxu0 %v6829_v32  ;;  %1877 = vmatprep.subr.bf16.mxu1 %v6884_v27 }
 0x5a1   :  { %1835 = vmatpush1.bf16.msra.mxu0 %v6887_v8  ;;  %1878 = vmatpush1.bf16.msra.mxu1 %v6890_v12 }
 0x5a2   :  { %1970 = vmatprep.subr.bf16.mxu0 %v6725_v36  ;;  %2013 = vmatprep.subr.bf16.mxu1 %v6728_v37  ;;  %v7998_v36 = vld [vmem:[#allocation59_spill] sm:$0xff] }
 0x644   :  { %v1704_v38 = vpop.f32.mrf.mxu0  ;;  %v1747_v33 = vpop.f32.mrf.mxu1 }
 0x645   :  { %v1756_v25 = vadd.f32 %v1704_v38, %v7994_v16  ;;  %v1758_v14 = vadd.f32 %v1747_v33, %v7996_v6 }
 0x646   :  { %v1706_v9 = vpop.f32.mrf.mxu0  ;;  %v1749_v20 = vpop.f32.mrf.mxu1 }
 0x647   :  { %v1764_v26 = vmul.f32 0.5, %v1756_v25  ;;  %v1757_v35 = vadd.f32 %v1706_v9, %v7995_v28  ;;  %v1759_v21 = vadd.f32 %v1749_v20, %v8001_v22 }
 0x648   :  { %v1708_v34 = vpop.f32.mrf.mxu0  ;;  %v1751_v37 = vpop.f32.mrf.mxu1 }
 0x649   :  { %5670 = vtanh.f32 %v1764_v26  ;;  %v1772_v11 = vmul.f32 0.5, %v1757_v35  ;;  %v1760_v13 = vadd.f32 %v1708_v34, %v7998_v36  ;;  %v1762_v5 = vadd.f32 %v1751_v37, %v7999_v0 }
 0x64a   :  { %v1710_v4 = vpop.f32.mrf.mxu0  ;;  %v1753_v17 = vpop.f32.mrf.mxu1  ;;  %v1782_v9 = vmul.f32 0.5, %v1759_v21 }
 0x64b   :  { %5672 = vtanh.f32 %v1772_v11  ;;  %v1765_v24 = vmul.f32 0.5, %v1760_v13  ;;  %v1761_v18 = vadd.f32 %v1710_v4, %v522_v15  ;;  %v1763_v38 = vadd.f32 %v1753_v17, %v635_v43 }
 0x64c   :  { %5674 = vtanh.f32 %v1758_v14 }
 0x64d   :  { %5676 = vtanh.f32 %v1765_v24  ;;  %v1773_v19 = vmul.f32 0.5, %v1761_v18  ;;  %v1783_v6 = vmul.f32 0.5, %v1763_v38 }
 0x64f   :  { %5678 = vtanh.f32 %v1773_v19 }
 0x650   :  { %5680 = vtanh.f32 %v1762_v5 }
 0x651   :  { %5682 = vtanh.f32 %v1782_v9 }
 0x652   :  { %5684 = vtanh.f32 %v1783_v6 }
 0x656   :  { %v5671_v33 = vpop.eup %5670 }
 0x657   :  { %v1768_v16 = vmul.f32 0.5, %v5671_v33 }
 0x658   :  { %v5673_v25 = vpop.eup %5672 }
 0x659   :  { %v5675_v26 = vpop.eup %5674  ;;  %v1770_v28 = vadd.f32 0.5, %v1768_v16  ;;  %v1776_v35 = vmul.f32 0.5, %v5673_v25 }
 0x65a   :  { %v5677_v14 = vpop.eup %5676 }
 0x65b   :  { %v1778_v34 = vadd.f32 0.5, %v1776_v35  ;;  %v1792_v52 = vmul.f32 %v5675_v26, %v1770_v28  ;;  %v1769_v15 = vmul.f32 0.5, %v5677_v14 }
 0x65c   :  { %v5679_v11 = vpop.eup %5678 }
 0x65d   :  { %v1790_v36 = vmul.f32 %v1778_v34, %v6958_v10  ;;  %v1771_v13 = vadd.f32 0.5, %v1769_v15  ;;  %v1777_v37 = vmul.f32 0.5, %v5679_v11  ;;  %v5681_v20 = vpop.eup %5680 }
 0x65e   :  { %v5683_v19 = vpop.eup %5682 }
 0x65f   :  { %v7010_v4 = vadd.f32 %v1792_v52, %v1790_v36  ;;  %v1779_v24 = vadd.f32 0.5, %v1777_v37  ;;  %v1793_v18 = vmul.f32 %v5681_v20, %v1771_v13  ;;  %v5685_v17 = vpop.eup %5684  ;;  %v1786_v7 = vmul.f32 0.5, %v5683_v19 }
 0x660   :  { %v1787_v10 = vmul.f32 0.5, %v5685_v17 }
 0x661   :  { %v1791_v0 = vmul.f32 %v1779_v24, %v6962_v3  ;;  %5686 = vtanh.f32 %v7010_v4  ;;  %v1788_v22 = vadd.f32 0.5, %v1786_v7 }
 0x662   :  { %v1789_v21 = vadd.f32 0.5, %v1787_v10 }
 0x663   :  { %v7014_v5 = vadd.f32 %v1793_v18, %v1791_v0 }
 0x665   :  { %5688 = vtanh.f32 %v7014_v5 }
 0x66e   :  { %v5687_v43 = vpop.eup %5686 }
 0x66f   :  { %v1798_v33 = vmul.f32 %v5687_v43, %v1788_v22 }
 0x672   :  { %v5689_v38 = vpop.eup %5688 }
 0x673   :  { %v1799_v16 = vmul.f32 %v5689_v38, %v1789_v21 }
 0x675   :  { %v1800_v25 = vpack.c.bf16 %v1799_v16, %v1798_v33 }
 0x677   :  { %5093 = vst [vmem:[#allocation2 + $0x28] sm:$0xff] %v1800_v25   ;;  %1853 = vmatmul.mubr.bf16.vlgmr.msra.gmra.mxu0 %v1800_v25  ;;  %1896 = vmatmul.mubr.bf16.vlgmr.msra.gmra.mxu1 %v1800_v25 }
 0x678   :  { %1971 = vmatpush1.bf16.msra.mxu0 %v6749_v23  ;;  %2014 = vmatpush1.bf16.msra.mxu1 %v6752_v39  ;;  %v5428_v23 = vld [vmem:[#allocation10 + $0xe4] ss:$16 sps:$4 sm:$0xff]   ;;  %v5431_v39 = vld [vmem:[#allocation10 + $0xec] ss:$16 sps:$4 sm:$0xff]  }
 0x679   :  { %1972 = vmatprep.subr.bf16.mxu0 %v6755_v40  ;;  %2015 = vmatprep.subr.bf16.mxu1 %v6758_v41 }
 0x67a   :  { %2002 = vmatprep.mubr.bf16.mxu0 %v7968_v61  ;;  %2045 = vmatprep.mubr.bf16.mxu1 %v7968_v61 }
 0x67c   :  { %1973 = vmatpush1.bf16.msra.mxu0 %v6763_v42  ;;  %2016 = vmatpush1.bf16.msra.mxu1 %v6766_v44  ;;  %v8002_v42 = vld [vmem:[#allocation63_spill] sm:$0xff] }
 0x67d   :  { %1974 = vmatprep.subr.bf16.mxu0 %v6769_v45  ;;  %2017 = vmatprep.subr.bf16.mxu1 %v6772_v46 }
 0x680   :  { %1975 = vmatpush1.bf16.msra.mxu0 %v6775_v47  ;;  %2018 = vmatpush1.bf16.msra.mxu1 %v6778_v48  ;;  %v8003_v48 = vld [vmem:[#allocation65_spill] sm:$0xff] }
 0x681   :  { %1976 = vmatprep.subr.bf16.mxu0 %v6781_v49  ;;  %2019 = vmatprep.subr.bf16.mxu1 %v6784_v50  ;;  %v8004_v50 = vld [vmem:[#allocation64_spill] sm:$0xff] }
 0x684   :  { %1977 = vmatpush1.bf16.msra.mxu0 %v6787_v51  ;;  %2020 = vmatpush1.bf16.msra.mxu1 %v6790_v53 }
 0x685   :  { %1978 = vmatprep.subr.bf16.mxu0 %v6793_v54  ;;  %2021 = vmatprep.subr.bf16.mxu1 %v6796_v55  ;;  %v8005_v54 = vld [vmem:[#allocation69_spill] sm:$0xff] }
 0x686   :  { %v532_v55 = vadd.f32 %v8005_v54, %v6511_v29  ;;  %v5446_v54 = vld [vmem:[#allocation10 + $0x84] ss:$16 sps:$4 sm:$0xff]  }
 0x688   :  { %1979 = vmatpush1.bf16.msra.mxu0 %v6799_v56  ;;  %2022 = vmatpush1.bf16.msra.mxu1 %v6802_v57  ;;  %v8006_v57 = vld [vmem:[#allocation67_spill] sm:$0xff] }
 0x689   :  { %1980 = vmatprep.subr.bf16.mxu0 %v6805_v58  ;;  %2023 = vmatprep.subr.bf16.mxu1 %v6808_v59 }
 0x68c   :  { %1981 = vmatpush1.bf16.msra.mxu0 %v6811_v60  ;;  %2024 = vmatpush1.bf16.msra.mxu1 %v6814_v62 }
 0x68d   :  { %1982 = vmatprep.subr.bf16.mxu0 %v6817_v63  ;;  %2025 = vmatprep.subr.bf16.mxu1 %v6820_v1  ;;  %v8007_v1 = vld [vmem:[#allocation68_spill] sm:$0xff] }
 0x690   :  { %1983 = vmatpush1.bf16.msra.mxu0 %v6823_v2  ;;  %2026 = vmatpush1.bf16.msra.mxu1 %v6826_v31 }
 0x691   :  { %1984 = vmatprep.subr.bf16.mxu0 %v6829_v32  ;;  %2027 = vmatprep.subr.bf16.mxu1 %v6884_v27  ;;  %v8008_v27 = vld [vmem:[#allocation70_spill] sm:$0xff] }
 0x694   :  { %1985 = vmatpush1.bf16.msra.mxu0 %v6887_v8  ;;  %2028 = vmatpush1.bf16.msra.mxu1 %v6890_v12  ;;  %v645_v8 = vadd.f32 %v8008_v27, %v6515_v30  ;;  %v8009_v12 = vld [vmem:[#allocation66_spill] sm:$0xff] }
 0x695   :  { %2390 = vmatprep.subr.bf16.mxu0 %v5428_v23  ;;  %2503 = vmatprep.subr.bf16.mxu1 %v5431_v39  ;;  %v5467_v27 = vld [vmem:[#allocation10 + $0x2c] ss:$16 sps:$4 sm:$0xff]  }
 0x737   :  { %v1854_v40 = vpop.f32.mrf.mxu0  ;;  %v1897_v41 = vpop.f32.mrf.mxu1 }
 0x738   :  { %v1906_v44 = vadd.f32 %v1854_v40, %v8002_v42  ;;  %v1908_v51 = vadd.f32 %v1897_v41, %v8004_v50  ;;  %v5426_v42 = vld [vmem:[#allocation10 + $0xe0] ss:$16 sps:$4 sm:$0xff]   ;;  %v5443_v50 = vld [vmem:[#allocation10 + $0xac] ss:$16 sps:$4 sm:$0xff]  }
 0x739   :  { %v1856_v45 = vpop.f32.mrf.mxu0  ;;  %v1899_v46 = vpop.f32.mrf.mxu1 }
 0x73a   :  { %v1914_v47 = vmul.f32 0.5, %v1906_v44  ;;  %v1907_v49 = vadd.f32 %v1856_v45, %v8003_v48  ;;  %v1909_v3 = vadd.f32 %v1899_v46, %v8009_v12  ;;  %v5429_v44 = vld [vmem:[#allocation10 + $0xe8] ss:$16 sps:$4 sm:$0xff]   ;;  %v5437_v46 = vld [vmem:[#allocation10 + $0xcc] ss:$16 sps:$4 sm:$0xff]  }
 0x73b   :  { %v1858_v53 = vpop.f32.mrf.mxu0  ;;  %v1901_v59 = vpop.f32.mrf.mxu1  ;;  %v5435_v48 = vld [vmem:[#allocation10 + $0xc8] ss:$16 sps:$4 sm:$0xff]  }
 0x73c   :  { %5690 = vtanh.f32 %v1914_v47  ;;  %v1922_v56 = vmul.f32 0.5, %v1907_v49  ;;  %v1910_v58 = vadd.f32 %v1858_v53, %v8006_v57  ;;  %v1912_v2 = vadd.f32 %v1901_v59, %v8007_v1  ;;  %v5432_v47 = vld [vmem:[#allocation10 + $0xc0] ss:$16 sps:$4 sm:$0xff]   ;;  %v5440_v49 = vld [vmem:[#allocation10 + $0xa4] ss:$16 sps:$4 sm:$0xff]  }
 0x73d   :  { %v1860_v60 = vpop.f32.mrf.mxu0  ;;  %v1903_v32 = vpop.f32.mrf.mxu1  ;;  %v1932_v6 = vmul.f32 0.5, %v1909_v3  ;;  %v5441_v53 = vld [vmem:[#allocation10 + $0xa8] ss:$16 sps:$4 sm:$0xff]   ;;  %v5455_v59 = vld [vmem:[#allocation10 + $0x6c] ss:$16 sps:$4 sm:$0xff]  }
 0x73e   :  { %5692 = vtanh.f32 %v1922_v56  ;;  %v1915_v62 = vmul.f32 0.5, %v1910_v58  ;;  %v1911_v63 = vadd.f32 %v1860_v60, %v532_v55  ;;  %v1913_v9 = vadd.f32 %v1903_v32, %v645_v8  ;;  %v5449_v55 = vld [vmem:[#allocation10 + $0x8c] ss:$16 sps:$4 sm:$0xff]   ;;  %v5444_v56 = vld [vmem:[#allocation10 + $0x80] ss:$16 sps:$4 sm:$0xff]  }
 0x73f   :  { %5694 = vtanh.f32 %v1908_v51  ;;  %v5438_v51 = vld [vmem:[#allocation10 + $0xa0] ss:$16 sps:$4 sm:$0xff]   ;;  %v5447_v57 = vld [vmem:[#allocation10 + $0x88] ss:$16 sps:$4 sm:$0xff]   ;;  %v5452_v58 = vld [vmem:[#allocation10 + $0x64] ss:$16 sps:$4 sm:$0xff]  }
 0x740   :  { %5696 = vtanh.f32 %v1915_v62  ;;  %v1923_v31 = vmul.f32 0.5, %v1911_v63  ;;  %v1933_v15 = vmul.f32 0.5, %v1913_v9  ;;  %v5450_v60 = vld [vmem:[#allocation10 + $0x60] ss:$16 sps:$4 sm:$0xff]   ;;  %v5453_v62 = vld [vmem:[#allocation10 + $0x68] ss:$16 sps:$4 sm:$0xff]  }
 0x741   :  { %v5458_v63 = vld [vmem:[#allocation10 + $0x44] ss:$16 sps:$4 sm:$0xff]   ;;  %v5461_v1 = vld [vmem:[#allocation10 + $0x4c] ss:$16 sps:$4 sm:$0xff]   ;;  %v5462_v8 = vld [vmem:[#allocation10 + $0x20] ss:$16 sps:$4 sm:$0xff]  }
 0x742   :  { %5698 = vtanh.f32 %v1923_v31  ;;  %v5459_v31 = vld [vmem:[#allocation10 + $0x48] ss:$16 sps:$4 sm:$0xff]   ;;  %v5464_v32 = vld [vmem:[#allocation10 + $0x24] ss:$16 sps:$4 sm:$0xff]   ;;  %v5473_v9 = vld [vmem:[#allocation10 + $0xc] ss:$16 sps:$4 sm:$0xff]  }
 0x743   :  { %5700 = vtanh.f32 %v1912_v2  ;;  %v5456_v2 = vld [vmem:[#allocation10 + $0x40] ss:$16 sps:$4 sm:$0xff]   ;;  %v5465_v12 = vld [vmem:[#allocation10 + $0x28] ss:$16 sps:$4 sm:$0xff]   ;;  %v5470_v3 = vld [vmem:[#allocation10 + $0x4] ss:$16 sps:$4 sm:$0xff]  }
 0x744   :  { %5702 = vtanh.f32 %v1932_v6  ;;  %v5475_v6 = vld [vmem:[#allocation2 + $0x8] sm:$0xff]  }
 0x745   :  { %5704 = vtanh.f32 %v1933_v15  ;;  %v5479_v15 = vld [vmem:[#allocation2 + $0x28] sm:$0xff]  }
 0x749   :  { %v5691_v26 = vpop.eup %5690 }
 0x74a   :  { %v1918_v28 = vmul.f32 0.5, %v5691_v26  ;;  %v5468_v26 = vld [vmem:[#allocation10] ss:$16 sps:$4 sm:$0xff]  }
 0x74b   :  { %v5693_v35 = vpop.eup %5692 }
 0x74c   :  { %v5695_v14 = vpop.eup %5694  ;;  %v1920_v34 = vadd.f32 0.5, %v1918_v28  ;;  %v1926_v52 = vmul.f32 0.5, %v5693_v35  ;;  %v5471_v28 = vld [vmem:[#allocation10 + $0x8] ss:$16 sps:$4 sm:$0xff]   ;;  %v5474_v35 = vld [vmem:[#allocation2] sm:$0xff]  }
 0x74d   :  { %v5697_v11 = vpop.eup %5696 }
 0x74e   :  { %v1928_v36 = vadd.f32 0.5, %v1926_v52  ;;  %v1942_v13 = vmul.f32 %v5695_v14, %v1920_v34  ;;  %v1919_v37 = vmul.f32 0.5, %v5697_v11  ;;  %v5476_v14 = vld [vmem:[#allocation2 + $0x10] sm:$0xff]   ;;  %v5477_v34 = vld [vmem:[#allocation2 + $0x18] sm:$0xff]   ;;  %v5478_v52 = vld [vmem:[#allocation2 + $0x20] sm:$0xff]  }
 0x74f   :  { %v5699_v20 = vpop.eup %5698 }
 0x750   :  { %v1940_v24 = vmul.f32 %v1928_v36, %v7010_v4  ;;  %v1921_v18 = vadd.f32 0.5, %v1919_v37  ;;  %v1927_v0 = vmul.f32 0.5, %v5699_v20  ;;  %v5701_v19 = vpop.eup %5700  ;;  %v7083_v36 = vld [vmem:[#allocation12 + $0x1e4] ss:$16 sps:$4 sm:$0xff]   ;;  %v7087_v37 = vld [vmem:[#allocation12 + $0x1e0] ss:$16 sps:$4 sm:$0xff]  }
 0x751   :  { %v5703_v21 = vpop.eup %5702  ;;  %v7089_v20 = vld [vmem:[#allocation12 + $0x1e8] ss:$16 sps:$4 sm:$0xff]  }
 0x752   :  { %v7060_v17 = vadd.f32 %v1942_v13, %v1940_v24  ;;  %v1929_v7 = vadd.f32 0.5, %v1927_v0  ;;  %v1943_v10 = vmul.f32 %v5701_v19, %v1921_v18  ;;  %v5705_v38 = vpop.eup %5704  ;;  %v1936_v33 = vmul.f32 0.5, %v5703_v21  ;;  %v7085_v13 = vld [vmem:[#allocation12 + $0x1ec] ss:$16 sps:$4 sm:$0xff]   ;;  %v7095_v24 = vld [vmem:[#allocation12 + $0x1c4] ss:$16 sps:$4 sm:$0xff]  }
 0x753   :  { %v1937_v4 = vmul.f32 0.5, %v5705_v38  ;;  %v7097_v18 = vld [vmem:[#allocation12 + $0x1cc] ss:$16 sps:$4 sm:$0xff]   ;;  %v7099_v0 = vld [vmem:[#allocation12 + $0x1c0] ss:$16 sps:$4 sm:$0xff]  }
 0x754   :  { %v1941_v43 = vmul.f32 %v1929_v7, %v7014_v5  ;;  %5706 = vtanh.f32 %v7060_v17  ;;  %v1938_v25 = vadd.f32 0.5, %v1936_v33  ;;  %v5434_v5 = vld [vmem:[#allocation10 + $0xc4] ss:$16 sps:$4 sm:$0xff]   ;;  %v7101_v19 = vld [vmem:[#allocation12 + $0x1c8] ss:$16 sps:$4 sm:$0xff]  }
 0x755   :  { %v1939_v23 = vadd.f32 0.5, %v1937_v4  ;;  %v7107_v7 = vld [vmem:[#allocation12 + $0x1a4] ss:$16 sps:$4 sm:$0xff]   ;;  %v7113_v21 = vld [vmem:[#allocation12 + $0x1a8] ss:$16 sps:$4 sm:$0xff]  }
 0x756   :  { %v7064_v22 = vadd.f32 %v1943_v10, %v1941_v43  ;;  %v7109_v10 = vld [vmem:[#allocation12 + $0x1ac] ss:$16 sps:$4 sm:$0xff]   ;;  %v7111_v43 = vld [vmem:[#allocation12 + $0x1a0] ss:$16 sps:$4 sm:$0xff]   ;;  %v7119_v38 = vld [vmem:[#allocation12 + $0x184] ss:$16 sps:$4 sm:$0xff]  }
 0x757   :  { %v7121_v33 = vld [vmem:[#allocation12 + $0x18c] ss:$16 sps:$4 sm:$0xff]   ;;  %v7123_v4 = vld [vmem:[#allocation12 + $0x180] ss:$16 sps:$4 sm:$0xff]  }
 0x758   :  { %5708 = vtanh.f32 %v7064_v22 }
 0x761   :  { %v5707_v16 = vpop.eup %5706 }
 0x762   :  { %v1948_v40 = vmul.f32 %v5707_v16, %v1938_v25  ;;  %v7125_v16 = vld [vmem:[#allocation12 + $0x188] ss:$16 sps:$4 sm:$0xff]   ;;  %v7128_v25 = vld [vmem:[#allocation12 + $0x164] ss:$16 sps:$4 sm:$0xff]  }
 0x765   :  { %v5709_v39 = vpop.eup %5708 }
 0x766   :  { %v1949_v41 = vmul.f32 %v5709_v39, %v1939_v23  ;;  %v7132_v23 = vld [vmem:[#allocation12 + $0x160] ss:$16 sps:$4 sm:$0xff]   ;;  %v7135_v39 = vld [vmem:[#allocation12 + $0x16c] ss:$16 sps:$4 sm:$0xff]  }
 0x768   :  { %v1950_v45 = vpack.c.bf16 %v1949_v41, %v1948_v40  ;;  %v7137_v40 = vld [vmem:[#allocation12 + $0x168] ss:$16 sps:$4 sm:$0xff]   ;;  %v7140_v41 = vld [vmem:[#allocation12 + $0x144] ss:$16 sps:$4 sm:$0xff]  }
 0x76a   :  { %5098 = vst [vmem:[#allocation2 + $0x30] sm:$0xff] %v1950_v45   ;;  %2003 = vmatmul.mubr.bf16.vlgmr.msra.gmra.mxu0 %v1950_v45  ;;  %2046 = vmatmul.mubr.bf16.vlgmr.msra.gmra.mxu1 %v1950_v45  ;;  %v7149_v45 = vld [vmem:[#allocation12 + $0x148] ss:$16 sps:$4 sm:$0xff]  }
 0x76b   :  { %2391 = vmatpush1.bf16.msra.mxu0 %v5426_v42  ;;  %2504 = vmatpush1.bf16.msra.mxu1 %v5429_v44  ;;  %v7143_v42 = vld [vmem:[#allocation12 + $0x14c] ss:$16 sps:$4 sm:$0xff]   ;;  %v7146_v44 = vld [vmem:[#allocation12 + $0x140] ss:$16 sps:$4 sm:$0xff]  }
 0x76c   :  { %2392 = vmatprep.subr.bf16.mxu0 %v5434_v5  ;;  %2505 = vmatprep.subr.bf16.mxu1 %v5437_v46  ;;  %v7152_v5 = vld [vmem:[#allocation12 + $0x124] ss:$16 sps:$4 sm:$0xff]   ;;  %v7156_v46 = vld [vmem:[#allocation12 + $0x120] ss:$16 sps:$4 sm:$0xff]  }
 0x76d   :  { %2422 = vmatprep.mubr.bf16.mxu0 %v7968_v61  ;;  %2535 = vmatprep.mubr.bf16.mxu1 %v7968_v61 }
 0x76f   :  { %2393 = vmatpush1.bf16.msra.mxu0 %v5432_v47  ;;  %2506 = vmatpush1.bf16.msra.mxu1 %v5435_v48  ;;  %v7160_v47 = vld [vmem:[#allocation12 + $0x12c] ss:$16 sps:$4 sm:$0xff]   ;;  %v7162_v48 = vld [vmem:[#allocation12 + $0x128] ss:$16 sps:$4 sm:$0xff]  }
 0x770   :  { %2394 = vmatprep.subr.bf16.mxu0 %v5440_v49  ;;  %2507 = vmatprep.subr.bf16.mxu1 %v5443_v50  ;;  %v7164_v49 = vld [vmem:[#allocation12 + $0x104] ss:$16 sps:$4 sm:$0xff]   ;;  %v7168_v50 = vld [vmem:[#allocation12 + $0x100] ss:$16 sps:$4 sm:$0xff]  }
 0x771   :  { %v5480_v11 = vld [vmem:[#allocation2 + $0x30] sm:$0xff]  }
 0x773   :  { %2395 = vmatpush1.bf16.msra.mxu0 %v5438_v51  ;;  %2508 = vmatpush1.bf16.msra.mxu1 %v5441_v53  ;;  %v7172_v51 = vld [vmem:[#allocation12 + $0x10c] ss:$16 sps:$4 sm:$0xff]   ;;  %v7174_v53 = vld [vmem:[#allocation12 + $0x108] ss:$16 sps:$4 sm:$0xff]  }
 0x774   :  { %2396 = vmatprep.subr.bf16.mxu0 %v5446_v54  ;;  %2509 = vmatprep.subr.bf16.mxu1 %v5449_v55 }
 0x777   :  { %2397 = vmatpush1.bf16.msra.mxu0 %v5444_v56  ;;  %2510 = vmatpush1.bf16.msra.mxu1 %v5447_v57  ;;  %v8010_v56 = vld [vmem:[#allocation71_spill] sm:$0xff] }
 0x778   :  { %2398 = vmatprep.subr.bf16.mxu0 %v5452_v58  ;;  %2511 = vmatprep.subr.bf16.mxu1 %v5455_v59 }
 0x77b   :  { %2399 = vmatpush1.bf16.msra.mxu0 %v5450_v60  ;;  %2512 = vmatpush1.bf16.msra.mxu1 %v5453_v62  ;;  %v8011_v62 = vld [vmem:[#allocation73_spill] sm:$0xff] }
 0x77c   :  { %2400 = vmatprep.subr.bf16.mxu0 %v5458_v63  ;;  %2513 = vmatprep.subr.bf16.mxu1 %v5461_v1  ;;  %v8012_v1 = vld [vmem:[#allocation72_spill] sm:$0xff] }
 0x77f   :  { %2401 = vmatpush1.bf16.msra.mxu0 %v5456_v2  ;;  %2514 = vmatpush1.bf16.msra.mxu1 %v5459_v31 }
 0x780   :  { %2402 = vmatprep.subr.bf16.mxu0 %v5464_v32  ;;  %2515 = vmatprep.subr.bf16.mxu1 %v5467_v27  ;;  %v8013_v32 = vld [vmem:[#allocation77_spill] sm:$0xff] }
 0x781   :  { %v542_v27 = vadd.f32 %v8013_v32, %v6511_v29  ;;  %v8017_v29 = vld [vmem:[#allocation78_spill] sm:$0xff] }
 0x783   :  { %2403 = vmatpush1.bf16.msra.mxu0 %v5462_v8  ;;  %2516 = vmatpush1.bf16.msra.mxu1 %v5465_v12  ;;  %v8014_v12 = vld [vmem:[#allocation75_spill] sm:$0xff] }
 0x784   :  { %2404 = vmatprep.subr.bf16.mxu0 %v5470_v3  ;;  %2517 = vmatprep.subr.bf16.mxu1 %v5473_v9 }
 0x787   :  { %2405 = vmatpush1.bf16.msra.mxu0 %v5468_v26  ;;  %2518 = vmatpush1.bf16.msra.mxu1 %v5471_v28 }
 0x788   :  { %2881 = vmatprep.subr.bf16.mxu0 %v7083_v36  ;;  %2924 = vmatprep.subr.bf16.mxu1 %v7085_v13 }
 0x78a   :  { %2423 = vmatmul.mubr.bf16.vlgmr.msra.gmra.mxu0 %v5474_v35  ;;  %2536 = vmatmul.mubr.bf16.vlgmr.msra.gmra.mxu1 %v5474_v35 }
 0x78b   :  { %2432 = vmatprep.mubr.bf16.mxu0 %v7968_v61  ;;  %2545 = vmatprep.mubr.bf16.mxu1 %v7968_v61 }
 0x78c   :  { %2882 = vmatpush1.bf16.msra.mxu0 %v7087_v37  ;;  %2925 = vmatpush1.bf16.msra.mxu1 %v7089_v20 }
 0x78d   :  { %2883 = vmatprep.subr.bf16.mxu0 %v7095_v24  ;;  %2926 = vmatprep.subr.bf16.mxu1 %v7097_v18 }
 0x790   :  { %2884 = vmatpush1.bf16.msra.mxu0 %v7099_v0  ;;  %2927 = vmatpush1.bf16.msra.mxu1 %v7101_v19 }
 0x791   :  { %2885 = vmatprep.subr.bf16.mxu0 %v7107_v7  ;;  %2928 = vmatprep.subr.bf16.mxu1 %v7109_v10 }
 0x792   :  { %2433 = vmatmul.mubr.bf16.gmra.mxu0 %v5475_v6  ;;  %2546 = vmatmul.mubr.bf16.gmra.mxu1 %v5475_v6  ;;  %v8015_v6 = vld [vmem:[#allocation76_spill] sm:$0xff] }
 0x793   :  { %2442 = vmatprep.mubr.bf16.mxu0 %v7968_v61  ;;  %2555 = vmatprep.mubr.bf16.mxu1 %v7968_v61 }
 0x794   :  { %2886 = vmatpush1.bf16.msra.mxu0 %v7111_v43  ;;  %2929 = vmatpush1.bf16.msra.mxu1 %v7113_v21 }
 0x795   :  { %2887 = vmatprep.subr.bf16.mxu0 %v7119_v38  ;;  %2930 = vmatprep.subr.bf16.mxu1 %v7121_v33 }
 0x798   :  { %2888 = vmatpush1.bf16.msra.mxu0 %v7123_v4  ;;  %2931 = vmatpush1.bf16.msra.mxu1 %v7125_v16 }
 0x799   :  { %2889 = vmatprep.subr.bf16.mxu0 %v7128_v25  ;;  %2932 = vmatprep.subr.bf16.mxu1 %v7135_v39 }
 0x79a   :  { %2443 = vmatmul.mubr.bf16.gmra.mxu0 %v5476_v14  ;;  %2556 = vmatmul.mubr.bf16.gmra.mxu1 %v5476_v14 }
 0x79b   :  { %2452 = vmatprep.mubr.bf16.mxu0 %v7968_v61  ;;  %2565 = vmatprep.mubr.bf16.mxu1 %v7968_v61 }
 0x79c   :  { %2890 = vmatpush1.bf16.msra.mxu0 %v7132_v23  ;;  %2933 = vmatpush1.bf16.msra.mxu1 %v7137_v40 }
 0x79d   :  { %2891 = vmatprep.subr.bf16.mxu0 %v7140_v41  ;;  %2934 = vmatprep.subr.bf16.mxu1 %v7143_v42 }
 0x7a0   :  { %2892 = vmatpush1.bf16.msra.mxu0 %v7146_v44  ;;  %2935 = vmatpush1.bf16.msra.mxu1 %v7149_v45 }
 0x7a1   :  { %2893 = vmatprep.subr.bf16.mxu0 %v7152_v5  ;;  %2936 = vmatprep.subr.bf16.mxu1 %v7160_v47 }
 0x7a2   :  { %2453 = vmatmul.mubr.bf16.gmra.mxu0 %v5477_v34  ;;  %2566 = vmatmul.mubr.bf16.gmra.mxu1 %v5477_v34 }
 0x7a3   :  { %2462 = vmatprep.mubr.bf16.mxu0 %v7968_v61  ;;  %2575 = vmatprep.mubr.bf16.mxu1 %v7968_v61 }
 0x7a4   :  { %2894 = vmatpush1.bf16.msra.mxu0 %v7156_v46  ;;  %2937 = vmatpush1.bf16.msra.mxu1 %v7162_v48 }
 0x7a5   :  { %2895 = vmatprep.subr.bf16.mxu0 %v7164_v49  ;;  %2938 = vmatprep.subr.bf16.mxu1 %v7172_v51 }
 0x7a8   :  { %2896 = vmatpush1.bf16.msra.mxu0 %v7168_v50  ;;  %2939 = vmatpush1.bf16.msra.mxu1 %v7174_v53 }
 0x7a9   :  { %3031 = vmatprep.subr.bf16.mxu0 %v7083_v36  ;;  %3074 = vmatprep.subr.bf16.mxu1 %v7085_v13 }
 0x7aa   :  { %2463 = vmatmul.mubr.bf16.gmra.mxu0 %v5478_v52  ;;  %2576 = vmatmul.mubr.bf16.gmra.mxu1 %v5478_v52  ;;  %v8016_v52 = vld [vmem:[#allocation74_spill] sm:$0xff] }
 0x7ab   :  { %2472 = vmatprep.mubr.bf16.mxu0 %v7968_v61  ;;  %2585 = vmatprep.mubr.bf16.mxu1 %v7968_v61 }
 0x7b2   :  { %2473 = vmatmul.mubr.bf16.gmra.mxu0 %v5479_v15  ;;  %2586 = vmatmul.mubr.bf16.gmra.mxu1 %v5479_v15 }
 0x7b3   :  { %2482 = vmatprep.mubr.bf16.mxu0 %v7968_v61  ;;  %2595 = vmatprep.mubr.bf16.mxu1 %v7968_v61 }
 0x7ba   :  { %2483 = vmatmul.mubr.bf16.gmra.mxu0 %v5480_v11  ;;  %2596 = vmatmul.mubr.bf16.gmra.mxu1 %v5480_v11 }
 0x7bb   :  { %2492 = vmatprep.mubr.bf16.mxu0 %v7968_v61  ;;  %2605 = vmatprep.mubr.bf16.mxu1 %v7968_v61 }
 0x82a   :  { %v2004_v54 = vpop.f32.mrf.mxu0  ;;  %v2047_v55 = vpop.f32.mrf.mxu1 }
 0x82b   :  { %v2056_v57 = vadd.f32 %v2004_v54, %v8010_v56  ;;  %v2058_v2 = vadd.f32 %v2047_v55, %v8012_v1  ;;  %v655_v54 = vadd.f32 %v8017_v29, %v6515_v30 }
 0x82c   :  { %v2006_v58 = vpop.f32.mrf.mxu0  ;;  %v2049_v59 = vpop.f32.mrf.mxu1 }
 0x82d   :  { %v2064_v60 = vmul.f32 0.5, %v2056_v57  ;;  %v2057_v63 = vadd.f32 %v2006_v58, %v8011_v62  ;;  %v2059_v15 = vadd.f32 %v2049_v59, %v8016_v52 }
 0x82e   :  { %v2008_v31 = vpop.f32.mrf.mxu0  ;;  %v2051_v9 = vpop.f32.mrf.mxu1 }
 0x82f   :  { %5710 = vtanh.f32 %v2064_v60  ;;  %v2072_v8 = vmul.f32 0.5, %v2057_v63  ;;  %v2060_v3 = vadd.f32 %v2008_v31, %v8014_v12  ;;  %v2062_v14 = vadd.f32 %v2051_v9, %v8015_v6 }
 0x830   :  { %v2010_v26 = vpop.f32.mrf.mxu0  ;;  %v2053_v11 = vpop.f32.mrf.mxu1  ;;  %v2082_v55 = vmul.f32 0.5, %v2059_v15 }
 0x831   :  { %5712 = vtanh.f32 %v2072_v8  ;;  %v2065_v28 = vmul.f32 0.5, %v2060_v3  ;;  %v2061_v35 = vadd.f32 %v2010_v26, %v542_v27  ;;  %v2063_v56 = vadd.f32 %v2053_v11, %v655_v54 }
 0x832   :  { %5714 = vtanh.f32 %v2058_v2 }
 0x833   :  { %5716 = vtanh.f32 %v2065_v28  ;;  %v2073_v34 = vmul.f32 0.5, %v2061_v35  ;;  %v2083_v2 = vmul.f32 0.5, %v2063_v56 }
 0x835   :  { %5718 = vtanh.f32 %v2073_v34 }
 0x836   :  { %5720 = vtanh.f32 %v2062_v14 }
 0x837   :  { %5722 = vtanh.f32 %v2082_v55 }
 0x838   :  { %5724 = vtanh.f32 %v2083_v2 }
 0x83c   :  { %v5711_v57 = vpop.eup %5710 }
 0x83d   :  { %v2068_v58 = vmul.f32 0.5, %v5711_v57 }
 0x83e   :  { %v5713_v60 = vpop.eup %5712 }
 0x83f   :  { %v5715_v62 = vpop.eup %5714  ;;  %v2070_v63 = vadd.f32 0.5, %v2068_v58  ;;  %v2076_v1 = vmul.f32 0.5, %v5713_v60 }
 0x840   :  { %v5717_v31 = vpop.eup %5716 }
 0x841   :  { %v2078_v32 = vadd.f32 0.5, %v2076_v1  ;;  %v2092_v27 = vmul.f32 %v5715_v62, %v2070_v63  ;;  %v2069_v8 = vmul.f32 0.5, %v5717_v31 }
 0x842   :  { %v5719_v59 = vpop.eup %5718 }
 0x843   :  { %v2090_v12 = vmul.f32 %v2078_v32, %v7060_v17  ;;  %v2071_v3 = vadd.f32 0.5, %v2069_v8  ;;  %v2077_v9 = vmul.f32 0.5, %v5719_v59  ;;  %v5721_v30 = vpop.eup %5720 }
 0x844   :  { %v5723_v34 = vpop.eup %5722 }
 0x845   :  { %v2094_v26 = vadd.f32 %v2092_v27, %v2090_v12  ;;  %v2079_v28 = vadd.f32 0.5, %v2077_v9  ;;  %v2093_v35 = vmul.f32 %v5721_v30, %v2071_v3  ;;  %v2086_v52 = vmul.f32 0.5, %v5723_v34  ;;  %v5725_v15 = vpop.eup %5724 }
 0x846   :  { %v2087_v29 = vmul.f32 0.5, %v5725_v15 }
 0x847   :  { %5726 = vtanh.f32 %v2094_v26  ;;  %v2091_v6 = vmul.f32 %v2079_v28, %v7064_v22  ;;  %v2088_v11 = vadd.f32 0.5, %v2086_v52 }
 0x848   :  { %v2089_v17 = vadd.f32 0.5, %v2087_v29 }
 0x849   :  { %v2095_v14 = vadd.f32 %v2093_v35, %v2091_v6 }
 0x84a   :  { %v7231_v22 = vpop.f32.mrf.mxu0  ;;  %v7233_v62 = vpop.f32.mrf.mxu1 }
 0x84b   :  { %5728 = vtanh.f32 %v2095_v14 }
 0x84c   :  { %v7235_v63 = vpop.f32.mrf.mxu0  ;;  %v7237_v1 = vpop.f32.mrf.mxu1 }
 0x84e   :  { %v7239_v2 = vpop.f32.mrf.mxu0  ;;  %v7241_v31 = vpop.f32.mrf.mxu1 }
 0x850   :  { %v7243_v32 = vpop.f32.mrf.mxu0  ;;  %v7245_v27 = vpop.f32.mrf.mxu1 }
 0x852   :  { %v7247_v8 = vpop.f32.mrf.mxu0  ;;  %v7249_v59 = vpop.f32.mrf.mxu1 }
 0x854   :  { %v5727_v54 = vpop.eup %5726  ;;  %v7251_v12 = vpop.f32.mrf.mxu0 }
 0x855   :  { %v2098_v55 = vmul.f32 %v5727_v54, %v2088_v11  ;;  %v7253_v3 = vpop.f32.mrf.mxu1 }
 0x856   :  { %8018 = vst [vmem:[#allocation30_spill] sm:$0xff] %v7253_v3  ;;  %v7255_v9 = vpop.f32.mrf.mxu0 }
 0x857   :  { %8019 = vst [vmem:[#allocation31_spill] sm:$0xff] %v7255_v9  ;;  %v7257_v30 = vpop.f32.mrf.mxu1 }
 0x858   :  { %v5729_v56 = vpop.eup %5728  ;;  %8020 = vst [vmem:[#allocation33_spill] sm:$0xff] %v7257_v30  ;;  %v7259_v26 = vpop.f32.mrf.mxu0 }
 0x859   :  { %v2099_v57 = vmul.f32 %v5729_v56, %v2089_v17  ;;  %8021 = vst [vmem:[#allocation32_spill] sm:$0xff] %v7259_v26  ;;  %v7261_v28 = vpop.f32.mrf.mxu1 }
 0x85a   :  { %8022 = vst [vmem:[#allocation37_spill] sm:$0xff] %v7261_v28  ;;  %v7263_v35 = vpop.f32.mrf.mxu0 }
 0x85b   :  { %v5102_v58 = vpack.c.bf16 %v2099_v57, %v2098_v55  ;;  %8023 = vst [vmem:[#allocation35_spill] sm:$0xff] %v7263_v35  ;;  %v7265_v6 = vpop.f32.mrf.mxu1 }
 0x85c   :  { %8024 = vst [vmem:[#allocation36_spill] sm:$0xff] %v7265_v6  ;;  %v7267_v14 = vpop.f32.mrf.mxu0 }
 0x85d   :  { %5103 = vst [vmem:[#allocation2 + $0x38] sm:$0xff] %v5102_v58   ;;  %8025 = vst [vmem:[#allocation38_spill] sm:$0xff] %v7267_v14  ;;  %v7269_v34 = vpop.f32.mrf.mxu1 }
 0x85e   :  { %8026 = vst [vmem:[#allocation34_spill] sm:$0xff] %v7269_v34  ;;  %v7271_v52 = vpop.f32.mrf.mxu0 }
 0x85f   :  { %8027 = vst [vmem:[#allocation39_spill] sm:$0xff] %v7271_v52  ;;  %v7273_v15 = vpop.f32.mrf.mxu1 }
 0x860   :  { %8028 = vst [vmem:[#allocation41_spill] sm:$0xff] %v7273_v15  ;;  %v7275_v11 = vpop.f32.mrf.mxu0 }
 0x861   :  { %8029 = vst [vmem:[#allocation40_spill] sm:$0xff] %v7275_v11  ;;  %v7277_v29 = vpop.f32.mrf.mxu1 }
 0x862   :  { %8030 = vst [vmem:[#allocation45_spill] sm:$0xff] %v7277_v29  ;;  %v7279_v54 = vpop.f32.mrf.mxu0 }
 0x863   :  { %8031 = vst [vmem:[#allocation43_spill] sm:$0xff] %v7279_v54  ;;  %v7281_v55 = vpop.f32.mrf.mxu1 }
 0x864   :  { %v5520_v60 = vld [vmem:[#allocation2 + $0x38] sm:$0xff]   ;;  %8032 = vst [vmem:[#allocation44_spill] sm:$0xff] %v7281_v55  ;;  %v7283_v17 = vpop.f32.mrf.mxu0 }
 0x865   :  { %2493 = vmatmul.mubr.bf16.gmra.mxu0 %v5520_v60  ;;  %2606 = vmatmul.mubr.bf16.gmra.mxu1 %v5520_v60  ;;  %8033 = vst [vmem:[#allocation46_spill] sm:$0xff] %v7283_v17  ;;  %v7285_v56 = vpop.f32.mrf.mxu1 }
 0x866   :  { %2913 = vmatprep.mubr.bf16.mxu0 %v7968_v61  ;;  %2956 = vmatprep.mubr.bf16.mxu1 %v7968_v61  ;;  %8034 = vst [vmem:[#allocation42_spill] sm:$0xff] %v7285_v56  ;;  %v7287_v57 = vpop.f32.mrf.mxu0 }
 0x867   :  { %8035 = vst [vmem:[#allocation47_spill] sm:$0xff] %v7287_v57  ;;  %v7289_v58 = vpop.f32.mrf.mxu1 }
 0x868   :  { %8036 = vst [vmem:[#allocation49_spill] sm:$0xff] %v7289_v58  ;;  %v7291_v60 = vpop.f32.mrf.mxu0 }
 0x869   :  { %8037 = vst [vmem:[#allocation48_spill] sm:$0xff] %v7291_v60  ;;  %v7293_v34 = vpop.f32.mrf.mxu1 }
 0x86a   :  { %8038 = vst [vmem:[#allocation53_spill] sm:$0xff] %v7293_v34  ;;  %v7295_v15 = vpop.f32.mrf.mxu0 }
 0x86b   :  { %8039 = vst [vmem:[#allocation51_spill] sm:$0xff] %v7295_v15  ;;  %v7297_v11 = vpop.f32.mrf.mxu1 }
 0x86c   :  { %8040 = vst [vmem:[#allocation52_spill] sm:$0xff] %v7297_v11  ;;  %v7299_v29 = vpop.f32.mrf.mxu0 }
 0x86d   :  { %2914 = vmatmul.mubr.bf16.vlgmr.msra.gmra.mxu0 %v7968_v61  ;;  %2957 = vmatmul.mubr.bf16.vlgmr.msra.gmra.mxu1 %v7968_v61  ;;  %8041 = vst [vmem:[#allocation54_spill] sm:$0xff] %v7299_v29  ;;  %v7301_v54 = vpop.f32.mrf.mxu1 }
 0x86e   :  { %3032 = vmatpush1.bf16.msra.mxu0 %v7087_v37  ;;  %3075 = vmatpush1.bf16.msra.mxu1 %v7089_v20  ;;  %8042 = vst [vmem:[#allocation50_spill] sm:$0xff] %v7301_v54  ;;  %v7303_v55 = vpop.f32.mrf.mxu0 }
 0x86f   :  { %3033 = vmatprep.subr.bf16.mxu0 %v7095_v24  ;;  %3076 = vmatprep.subr.bf16.mxu1 %v7097_v18  ;;  %8043 = vst [vmem:[#allocation55_spill] sm:$0xff] %v7303_v55  ;;  %v7305_v17 = vpop.f32.mrf.mxu1 }
 0x870   :  { %3063 = vmatprep.mubr.bf16.mxu0 %v7968_v61  ;;  %3106 = vmatprep.mubr.bf16.mxu1 %v7968_v61  ;;  %8044 = vst [vmem:[#allocation57_spill] sm:$0xff] %v7305_v17  ;;  %v7307_v56 = vpop.f32.mrf.mxu0 }
 0x871   :  { %8045 = vst [vmem:[#allocation56_spill] sm:$0xff] %v7307_v56  ;;  %v7309_v57 = vpop.f32.mrf.mxu1 }
 0x872   :  { %3034 = vmatpush1.bf16.msra.mxu0 %v7099_v0  ;;  %3077 = vmatpush1.bf16.msra.mxu1 %v7101_v19  ;;  %8046 = vst [vmem:[#allocation61_spill] sm:$0xff] %v7309_v57  ;;  %v7311_v58 = vpop.f32.mrf.mxu0 }
 0x873   :  { %3035 = vmatprep.subr.bf16.mxu0 %v7107_v7  ;;  %3078 = vmatprep.subr.bf16.mxu1 %v7109_v10  ;;  %8047 = vst [vmem:[#allocation59_spill] sm:$0xff] %v7311_v58  ;;  %v7313_v60 = vpop.f32.mrf.mxu1 }
 0x874   :  { %8048 = vst [vmem:[#allocation60_spill] sm:$0xff] %v7313_v60  ;;  %v7315_v34 = vpop.f32.mrf.mxu0 }
 0x875   :  { %8049 = vst [vmem:[#allocation62_spill] sm:$0xff] %v7315_v34  ;;  %v7317_v15 = vpop.f32.mrf.mxu1 }
 0x876   :  { %3036 = vmatpush1.bf16.msra.mxu0 %v7111_v43  ;;  %3079 = vmatpush1.bf16.msra.mxu1 %v7113_v21  ;;  %8050 = vst [vmem:[#allocation58_spill] sm:$0xff] %v7317_v15  ;;  %v7319_v11 = vpop.f32.mrf.mxu0 }
 0x877   :  { %3037 = vmatprep.subr.bf16.mxu0 %v7119_v38  ;;  %3080 = vmatprep.subr.bf16.mxu1 %v7121_v33  ;;  %8051 = vst [vmem:[#allocation63_spill] sm:$0xff] %v7319_v11  ;;  %v7321_v29 = vpop.f32.mrf.mxu1 }
 0x878   :  { %8052 = vst [vmem:[#allocation65_spill] sm:$0xff] %v7321_v29  ;;  %v7323_v54 = vpop.f32.mrf.mxu0 }
 0x879   :  { %8053 = vst [vmem:[#allocation64_spill] sm:$0xff] %v7323_v54  ;;  %v7325_v55 = vpop.f32.mrf.mxu1 }
 0x87a   :  { %3038 = vmatpush1.bf16.msra.mxu0 %v7123_v4  ;;  %3081 = vmatpush1.bf16.msra.mxu1 %v7125_v16  ;;  %8054 = vst [vmem:[#allocation69_spill] sm:$0xff] %v7325_v55  ;;  %v7327_v17 = vpop.f32.mrf.mxu0  ;;  %v4901_v55 = vld [vmem:[%s7901_s5 + $0x4] sm:$0xf] }
 0x87b   :  { %3039 = vmatprep.subr.bf16.mxu0 %v7128_v25  ;;  %3082 = vmatprep.subr.bf16.mxu1 %v7135_v39  ;;  %8055 = vst [vmem:[#allocation67_spill] sm:$0xff] %v7327_v17  ;;  %v7329_v56 = vpop.f32.mrf.mxu1 }
 0x87c   :  { %8056 = vst [vmem:[#allocation68_spill] sm:$0xff] %v7329_v56  ;;  %v7331_v57 = vpop.f32.mrf.mxu0 }
 0x87d   :  { %8057 = vst [vmem:[#allocation70_spill] sm:$0xff] %v7331_v57  ;;  %v7333_v58 = vpop.f32.mrf.mxu1 }
 0x87e   :  { %3040 = vmatpush1.bf16.msra.mxu0 %v7132_v23  ;;  %3083 = vmatpush1.bf16.msra.mxu1 %v7137_v40  ;;  %8058 = vst [vmem:[#allocation66_spill] sm:$0xff] %v7333_v58  ;;  %v7335_v60 = vpop.f32.mrf.mxu0  ;;  %v8067_v58 = vld [vmem:[#allocation29_spill] sm:$0xff] }
 0x87f   :  { %3041 = vmatprep.subr.bf16.mxu0 %v7140_v41  ;;  %3084 = vmatprep.subr.bf16.mxu1 %v7143_v42  ;;  %8059 = vst [vmem:[#allocation71_spill] sm:$0xff] %v7335_v60  ;;  %v7337_v34 = vpop.f32.mrf.mxu1  ;;  %v8068_v60 = vsub.s32 0, %v8067_v58 }
 0x880   :  { %8060 = vst [vmem:[#allocation73_spill] sm:$0xff] %v7337_v34  ;;  %v7339_v15 = vpop.f32.mrf.mxu0 }
 0x881   :  { %8061 = vst [vmem:[#allocation72_spill] sm:$0xff] %v7339_v15  ;;  %v7341_v11 = vpop.f32.mrf.mxu1  ;;  %v7356_v54 = vrot.slane %v4901_v55, %v8068_v60 }
 0x882   :  { %3042 = vmatpush1.bf16.msra.mxu0 %v7146_v44  ;;  %3085 = vmatpush1.bf16.msra.mxu1 %v7149_v45  ;;  %8062 = vst [vmem:[#allocation77_spill] sm:$0xff] %v7341_v11  ;;  %v8071_v11 = vsub.s32 1, %v8067_v58 }
 0x883   :  { %3043 = vmatprep.subr.bf16.mxu0 %v7152_v5  ;;  %3086 = vmatprep.subr.bf16.mxu1 %v7160_v47 }
 0x884   :  { %v7364_v52 = vrot.slane %v4901_v55, %v8071_v11  ;;  %v2429_v11 = vadd.f32 %v7239_v2, %v7356_v54 }
 0x886   :  { %3044 = vmatpush1.bf16.msra.mxu0 %v7156_v46  ;;  %3087 = vmatpush1.bf16.msra.mxu1 %v7162_v48 }
 0x887   :  { %3045 = vmatprep.subr.bf16.mxu0 %v7164_v49  ;;  %3088 = vmatprep.subr.bf16.mxu1 %v7172_v51 }
 0x88a   :  { %3046 = vmatpush1.bf16.msra.mxu0 %v7168_v50  ;;  %3089 = vmatpush1.bf16.msra.mxu1 %v7174_v53 }
 0x88b   :  { %3182 = vmatprep.subr.bf16.mxu0 %v7083_v36  ;;  %3225 = vmatprep.subr.bf16.mxu1 %v7085_v13 }
 0x925   :  { %v7346_v29 = vpop.f32.mrf.mxu0  ;;  %v7348_v17 = vpop.f32.mrf.mxu1 }
 0x926   :  { %8063 = vst [vmem:[#allocation75_spill] sm:$0xff] %v7346_v29  ;;  %8064 = vst [vmem:[#allocation76_spill] sm:$0xff] %v7348_v17  ;;  %v2425_v17 = vadd.f32 %v7231_v22, %v7356_v54 }
 0x927   :  { %v7350_v56 = vpop.f32.mrf.mxu0  ;;  %v7352_v57 = vpop.f32.mrf.mxu1 }
 0x928   :  { %8065 = vst [vmem:[#allocation74_spill] sm:$0xff] %v7350_v56  ;;  %8066 = vst [vmem:[#allocation78_spill] sm:$0xff] %v7352_v57  ;;  %v8074_v57 = vsub.s32 2, %v8067_v58 }
 0x929   :  { %v7358_v34 = vpop.f32.mrf.mxu0  ;;  %v7360_v15 = vpop.f32.mrf.mxu1 }
 0x92a   :  { %8069 = vst [vmem:[#allocation29_spill] sm:$0xff] %v7358_v34  ;;  %8070 = vst [vmem:[#allocation79_spill] sm:$0xff] %v7360_v15  ;;  %v7374_v56 = vrot.slane %v4901_v55, %v8074_v57  ;;  %v2427_v15 = vadd.f32 %v7235_v63, %v7364_v52  ;;  %v2431_v57 = vadd.f32 %v7243_v32, %v7364_v52 }
 0x92b   :  { %v7366_v6 = vpop.f32.mrf.mxu0  ;;  %v7368_v29 = vpop.f32.mrf.mxu1 }
 0x92c   :  { %8072 = vst [vmem:[#allocation80_spill] sm:$0xff] %v7366_v6  ;;  %8073 = vst [vmem:[#allocation81_spill] sm:$0xff] %v7368_v29  ;;  %v2538_v29 = vadd.f32 %v7233_v62, %v7374_v56  ;;  %v2542_v62 = vadd.f32 %v7241_v31, %v7374_v56 }
 0x92d   :  { %v2915_v60 = vpop.f32.mrf.mxu0  ;;  %v2958_v14 = vpop.f32.mrf.mxu1 }
 0x92e   :  { %v2967_v34 = vadd.f32 %v2915_v60, %v2425_v17  ;;  %v2969_v9 = vadd.f32 %v2958_v14, %v2538_v29  ;;  %v8075_v17 = vsub.s32 3, %v8067_v58 }
 0x92f   :  { %v2917_v35 = vpop.f32.mrf.mxu0  ;;  %v2960_v22 = vpop.f32.mrf.mxu1 }
 0x930   :  { %v2975_v6 = vmul.f32 0.5, %v2967_v34  ;;  %v2968_v28 = vadd.f32 %v2917_v35, %v2427_v15  ;;  %v7386_v60 = vrot.slane %v4901_v55, %v8075_v17 }
 0x931   :  { %v2919_v3 = vpop.f32.mrf.mxu0  ;;  %v2962_v34 = vpop.f32.mrf.mxu1 }
 0x932   :  { %5730 = vtanh.f32 %v2975_v6  ;;  %v2983_v30 = vmul.f32 0.5, %v2968_v28  ;;  %v2971_v26 = vadd.f32 %v2919_v3, %v2429_v11  ;;  %v2540_v32 = vadd.f32 %v7237_v1, %v7386_v60 }
 0x933   :  { %v2921_v63 = vpop.f32.mrf.mxu0  ;;  %v2973_v3 = vadd.f32 %v2962_v34, %v2542_v62  ;;  %v2964_v6 = vpop.f32.mrf.mxu1  ;;  %v2544_v14 = vadd.f32 %v7245_v27, %v7386_v60 }
 0x934   :  { %5732 = vtanh.f32 %v2983_v30  ;;  %v2976_v2 = vmul.f32 0.5, %v2971_v26  ;;  %v2972_v35 = vadd.f32 %v2921_v63, %v2431_v57  ;;  %v2970_v28 = vadd.f32 %v2960_v22, %v2540_v32 }
 0x935   :  { %v2974_v30 = vadd.f32 %v2964_v6, %v2544_v14 }
 0x936   :  { %5734 = vtanh.f32 %v2976_v2  ;;  %v2984_v15 = vmul.f32 0.5, %v2972_v35  ;;  %v2993_v26 = vmul.f32 0.5, %v2970_v28 }
 0x937   :  { %5736 = vtanh.f32 %v2969_v9  ;;  %v2994_v31 = vmul.f32 0.5, %v2974_v30 }
 0x938   :  { %5738 = vtanh.f32 %v2984_v15 }
 0x939   :  { %5740 = vtanh.f32 %v2973_v3 }
 0x93a   :  { %5742 = vtanh.f32 %v2993_v26 }
 0x93b   :  { %5744 = vtanh.f32 %v2994_v31 }
 0x93f   :  { %v5731_v29 = vpop.eup %5730 }
 0x940   :  { %v2979_v55 = vmul.f32 0.5, %v5731_v29 }
 0x941   :  { %v5733_v58 = vpop.eup %5732 }
 0x942   :  { %v2981_v11 = vadd.f32 0.5, %v2979_v55  ;;  %v2987_v57 = vmul.f32 0.5, %v5733_v58 }
 0x943   :  { %v5735_v9 = vpop.eup %5734 }
 0x944   :  { %v5737_v63 = vpop.eup %5736  ;;  %v2989_v1 = vadd.f32 0.5, %v2987_v57  ;;  %v2980_v17 = vmul.f32 0.5, %v5735_v9 }
 0x945   :  { %v5739_v2 = vpop.eup %5738  ;;  %v3003_v35 = vmul.f32 %v5737_v63, %v2981_v11 }
 0x946   :  { %v3001_v22 = vmul.f32 0.0, %v2989_v1  ;;  %v2982_v34 = vadd.f32 0.5, %v2980_v17  ;;  %v2988_v27 = vmul.f32 0.5, %v5739_v2  ;;  %v5741_v32 = vpop.eup %5740  ;;  %v2435_v1 = vadd.f32 %v7247_v8, %v7356_v54  ;;  %v8077_v8 = vld [vmem:[#allocation32_spill] sm:$0xff] }
 0x947   :  { %v5743_v14 = vpop.eup %5742 }
 0x948   :  { %v7394_v62 = vadd.f32 %v3003_v35, %v3001_v22  ;;  %v2990_v15 = vadd.f32 0.5, %v2988_v27  ;;  %v3004_v28 = vmul.f32 %v5741_v32, %v2982_v34  ;;  %v5745_v30 = vpop.eup %5744  ;;  %v2997_v26 = vmul.f32 0.5, %v5743_v14  ;;  %v8076_v32 = vld [vmem:[#allocation31_spill] sm:$0xff] }
 0x949   :  { %v2998_v55 = vmul.f32 0.5, %v5745_v30  ;;  %v2437_v22 = vadd.f32 %v7251_v12, %v7364_v52  ;;  %v2548_v34 = vadd.f32 %v7249_v59, %v7374_v56 }
 0x94a   :  { %5746 = vtanh.f32 %v7394_v62  ;;  %v3002_v3 = vmul.f32 0.0, %v2990_v15  ;;  %v2999_v29 = vadd.f32 0.5, %v2997_v26 }
 0x94b   :  { %v3000_v11 = vadd.f32 0.5, %v2998_v55 }
 0x94c   :  { %v7397_v6 = vadd.f32 %v3004_v28, %v3002_v3  ;;  %v2439_v3 = vadd.f32 %v8076_v32, %v7356_v54 }
 0x94e   :  { %5748 = vtanh.f32 %v7397_v6 }
 0x957   :  { %v5747_v58 = vpop.eup %5746 }
 0x958   :  { %v3009_v31 = vmul.f32 %v5747_v58, %v2999_v29  ;;  %v2441_v29 = vadd.f32 %v8077_v8, %v7364_v52 }
 0x95a   :  { %3021 = vst [vmem:[#allocation18] sm:$0xff] %v3009_v31 }
 0x95b   :  { %v5749_v57 = vpop.eup %5748 }
 0x95c   :  { %v3010_v9 = vmul.f32 %v5749_v57, %v3000_v11  ;;  %v8078_v11 = vld [vmem:[#allocation33_spill] sm:$0xff] }
 0x95d   :  { %v2552_v59 = vadd.f32 %v8078_v11, %v7374_v56 }
 0x95e   :  { %3022 = vst [vmem:[#allocation18 + $0x8] sm:$0xff] %v3010_v9  ;;  %v3011_v63 = vpack.c.bf16 %v3010_v9, %v3009_v31 }
 0x960   :  { %5108 = vst [vmem:[#allocation2] sm:$0xff] %v3011_v63   ;;  %3064 = vmatmul.mubr.bf16.vlgmr.msra.gmra.mxu0 %v3011_v63  ;;  %3107 = vmatmul.mubr.bf16.vlgmr.msra.gmra.mxu1 %v3011_v63 }
 0x961   :  { %3183 = vmatpush1.bf16.msra.mxu0 %v7087_v37  ;;  %3226 = vmatpush1.bf16.msra.mxu1 %v7089_v20 }
 0x962   :  { %3184 = vmatprep.subr.bf16.mxu0 %v7095_v24  ;;  %3227 = vmatprep.subr.bf16.mxu1 %v7097_v18 }
 0x963   :  { %3214 = vmatprep.mubr.bf16.mxu0 %v7968_v61  ;;  %3257 = vmatprep.mubr.bf16.mxu1 %v7968_v61 }
 0x965   :  { %3185 = vmatpush1.bf16.msra.mxu0 %v7099_v0  ;;  %3228 = vmatpush1.bf16.msra.mxu1 %v7101_v19 }
 0x966   :  { %3186 = vmatprep.subr.bf16.mxu0 %v7107_v7  ;;  %3229 = vmatprep.subr.bf16.mxu1 %v7109_v10 }
 0x969   :  { %3187 = vmatpush1.bf16.msra.mxu0 %v7111_v43  ;;  %3230 = vmatpush1.bf16.msra.mxu1 %v7113_v21 }
 0x96a   :  { %3188 = vmatprep.subr.bf16.mxu0 %v7119_v38  ;;  %3231 = vmatprep.subr.bf16.mxu1 %v7121_v33 }
 0x96d   :  { %3189 = vmatpush1.bf16.msra.mxu0 %v7123_v4  ;;  %3232 = vmatpush1.bf16.msra.mxu1 %v7125_v16 }
 0x96e   :  { %3190 = vmatprep.subr.bf16.mxu0 %v7128_v25  ;;  %3233 = vmatprep.subr.bf16.mxu1 %v7135_v39 }
 0x971   :  { %3191 = vmatpush1.bf16.msra.mxu0 %v7132_v23  ;;  %3234 = vmatpush1.bf16.msra.mxu1 %v7137_v40 }
 0x972   :  { %3192 = vmatprep.subr.bf16.mxu0 %v7140_v41  ;;  %3235 = vmatprep.subr.bf16.mxu1 %v7143_v42 }
 0x975   :  { %3193 = vmatpush1.bf16.msra.mxu0 %v7146_v44  ;;  %3236 = vmatpush1.bf16.msra.mxu1 %v7149_v45 }
 0x976   :  { %3194 = vmatprep.subr.bf16.mxu0 %v7152_v5  ;;  %3237 = vmatprep.subr.bf16.mxu1 %v7160_v47 }
 0x979   :  { %3195 = vmatpush1.bf16.msra.mxu0 %v7156_v46  ;;  %3238 = vmatpush1.bf16.msra.mxu1 %v7162_v48 }
 0x97a   :  { %3196 = vmatprep.subr.bf16.mxu0 %v7164_v49  ;;  %3239 = vmatprep.subr.bf16.mxu1 %v7172_v51 }
 0x97d   :  { %3197 = vmatpush1.bf16.msra.mxu0 %v7168_v50  ;;  %3240 = vmatpush1.bf16.msra.mxu1 %v7174_v53 }
 0x97e   :  { %3333 = vmatprep.subr.bf16.mxu0 %v7083_v36  ;;  %3376 = vmatprep.subr.bf16.mxu1 %v7085_v13 }
 0xa20   :  { %v3065_v17 = vpop.f32.mrf.mxu0  ;;  %v3108_v2 = vpop.f32.mrf.mxu1 }
 0xa21   :  { %v3117_v35 = vadd.f32 %v3065_v17, %v2435_v1  ;;  %v3119_v30 = vadd.f32 %v3108_v2, %v2548_v34  ;;  %v8079_v17 = vld [vmem:[#allocation30_spill] sm:$0xff]  ;;  %v8080_v34 = vld [vmem:[#allocation37_spill] sm:$0xff] }
 0xa22   :  { %v3067_v27 = vpop.f32.mrf.mxu0  ;;  %v3110_v15 = vpop.f32.mrf.mxu1  ;;  %v2550_v2 = vadd.f32 %v8079_v17, %v7386_v60 }
 0xa23   :  { %v3125_v28 = vmul.f32 0.5, %v3117_v35  ;;  %v3118_v14 = vadd.f32 %v3067_v27, %v2437_v22  ;;  %v2554_v27 = vadd.f32 %v8080_v34, %v7386_v60 }
 0xa24   :  { %v3069_v26 = vpop.f32.mrf.mxu0  ;;  %v3112_v12 = vpop.f32.mrf.mxu1  ;;  %v3120_v22 = vadd.f32 %v3110_v15, %v2550_v2 }
 0xa25   :  { %5750 = vtanh.f32 %v3125_v28  ;;  %v3133_v55 = vmul.f32 0.5, %v3118_v14  ;;  %v3121_v58 = vadd.f32 %v3069_v26, %v2439_v3  ;;  %v3123_v63 = vadd.f32 %v3112_v12, %v2552_v59 }
 0xa26   :  { %v3071_v31 = vpop.f32.mrf.mxu0  ;;  %v3114_v35 = vpop.f32.mrf.mxu1  ;;  %v3143_v32 = vmul.f32 0.5, %v3120_v22 }
 0xa27   :  { %5752 = vtanh.f32 %v3133_v55  ;;  %v3126_v57 = vmul.f32 0.5, %v3121_v58  ;;  %v3122_v9 = vadd.f32 %v3071_v31, %v2441_v29  ;;  %v3124_v3 = vadd.f32 %v3114_v35, %v2554_v27 }
 0xa28   :  { %5754 = vtanh.f32 %v3119_v30 }
 0xa29   :  { %5756 = vtanh.f32 %v3126_v57  ;;  %v3134_v1 = vmul.f32 0.5, %v3122_v9  ;;  %v3144_v55 = vmul.f32 0.5, %v3124_v3 }
 0xa2b   :  { %5758 = vtanh.f32 %v3134_v1 }
 0xa2c   :  { %5760 = vtanh.f32 %v3123_v63 }
 0xa2d   :  { %5762 = vtanh.f32 %v3143_v32 }
 0xa2e   :  { %5764 = vtanh.f32 %v3144_v55  ;;  %v8088_v55 = vld [vmem:[#allocation45_spill] sm:$0xff] }
 0xa32   :  { %v5751_v28 = vpop.eup %5750 }
 0xa33   :  { %v3129_v14 = vmul.f32 0.5, %v5751_v28 }
 0xa34   :  { %v5753_v26 = vpop.eup %5752 }
 0xa35   :  { %v5755_v8 = vpop.eup %5754  ;;  %v3131_v30 = vadd.f32 0.5, %v3129_v14  ;;  %v3137_v29 = vmul.f32 0.5, %v5753_v26 }
 0xa36   :  { %v5757_v58 = vpop.eup %5756 }
 0xa37   :  { %v3139_v12 = vadd.f32 0.5, %v3137_v29  ;;  %v3153_v31 = vmul.f32 %v5755_v8, %v3131_v30  ;;  %v3130_v11 = vmul.f32 0.5, %v5757_v58  ;;  %v2564_v58 = vadd.f32 %v8088_v55, %v7386_v60  ;;  %v7587_v55 = vld [vmem:[#allocation12 + $0x12c] ss:$16 sps:$4 sm:$0xff]  }
 0xa38   :  { %v5759_v15 = vpop.eup %5758 }
 0xa39   :  { %v3151_v59 = vmul.f32 %v3139_v12, %v7394_v62  ;;  %v3132_v57 = vadd.f32 0.5, %v3130_v11  ;;  %v3138_v9 = vmul.f32 0.5, %v5759_v15  ;;  %v5761_v63 = vpop.eup %5760 }
 0xa3a   :  { %v5763_v34 = vpop.eup %5762 }
 0xa3b   :  { %v7451_v1 = vadd.f32 %v3153_v31, %v3151_v59  ;;  %v3140_v17 = vadd.f32 0.5, %v3138_v9  ;;  %v3154_v2 = vmul.f32 %v5761_v63, %v3132_v57  ;;  %v3147_v27 = vmul.f32 0.5, %v5763_v34  ;;  %v5765_v32 = vpop.eup %5764 }
 0xa3c   :  { %v3148_v3 = vmul.f32 0.5, %v5765_v32 }
 0xa3d   :  { %5766 = vtanh.f32 %v7451_v1  ;;  %v3152_v22 = vmul.f32 %v3140_v17, %v7397_v6  ;;  %v3149_v62 = vadd.f32 0.5, %v3147_v27 }
 0xa3e   :  { %v3150_v26 = vadd.f32 0.5, %v3148_v3 }
 0xa3f   :  { %v7455_v35 = vadd.f32 %v3154_v2, %v3152_v22 }
 0xa41   :  { %5768 = vtanh.f32 %v7455_v35 }
 0xa4a   :  { %v5767_v28 = vpop.eup %5766 }
 0xa4b   :  { %v3159_v14 = vmul.f32 %v5767_v28, %v3149_v62 }
 0xa4d   :  { %3172 = vst [vmem:[#allocation18 + $0x10] sm:$0xff] %v3159_v14 }
 0xa4e   :  { %v5769_v8 = vpop.eup %5768 }
 0xa4f   :  { %v3160_v30 = vmul.f32 %v5769_v8, %v3150_v26 }
 0xa51   :  { %3173 = vst [vmem:[#allocation18 + $0x18] sm:$0xff] %v3160_v30  ;;  %v3161_v29 = vpack.c.bf16 %v3160_v30, %v3159_v14 }
 0xa53   :  { %5113 = vst [vmem:[#allocation2 + $0x8] sm:$0xff] %v3161_v29   ;;  %3215 = vmatmul.mubr.bf16.vlgmr.msra.gmra.mxu0 %v3161_v29  ;;  %3258 = vmatmul.mubr.bf16.vlgmr.msra.gmra.mxu1 %v3161_v29 }
 0xa54   :  { %3334 = vmatpush1.bf16.msra.mxu0 %v7087_v37  ;;  %3377 = vmatpush1.bf16.msra.mxu1 %v7089_v20  ;;  %v8081_v37 = vld [vmem:[#allocation35_spill] sm:$0xff] }
 0xa55   :  { %3335 = vmatprep.subr.bf16.mxu0 %v7095_v24  ;;  %3378 = vmatprep.subr.bf16.mxu1 %v7097_v18  ;;  %v2445_v20 = vadd.f32 %v8081_v37, %v7356_v54 }
 0xa56   :  { %3365 = vmatprep.mubr.bf16.mxu0 %v7968_v61  ;;  %3408 = vmatprep.mubr.bf16.mxu1 %v7968_v61 }
 0xa58   :  { %3336 = vmatpush1.bf16.msra.mxu0 %v7099_v0  ;;  %3379 = vmatpush1.bf16.msra.mxu1 %v7101_v19  ;;  %v8082_v0 = vld [vmem:[#allocation38_spill] sm:$0xff] }
 0xa59   :  { %3337 = vmatprep.subr.bf16.mxu0 %v7107_v7  ;;  %3380 = vmatprep.subr.bf16.mxu1 %v7109_v10  ;;  %v2447_v19 = vadd.f32 %v8082_v0, %v7364_v52  ;;  %v8083_v10 = vld [vmem:[#allocation36_spill] sm:$0xff] }
 0xa5c   :  { %3338 = vmatpush1.bf16.msra.mxu0 %v7111_v43  ;;  %3381 = vmatpush1.bf16.msra.mxu1 %v7113_v21  ;;  %v2558_v43 = vadd.f32 %v8083_v10, %v7374_v56 }
 0xa5d   :  { %3339 = vmatprep.subr.bf16.mxu0 %v7119_v38  ;;  %3382 = vmatprep.subr.bf16.mxu1 %v7121_v33  ;;  %v8084_v33 = vld [vmem:[#allocation39_spill] sm:$0xff] }
 0xa60   :  { %3340 = vmatpush1.bf16.msra.mxu0 %v7123_v4  ;;  %3383 = vmatpush1.bf16.msra.mxu1 %v7125_v16  ;;  %v2449_v4 = vadd.f32 %v8084_v33, %v7356_v54  ;;  %v7519_v33 = vld [vmem:[#allocation12 + $0x1e8] ss:$16 sps:$4 sm:$0xff]  }
 0xa61   :  { %3341 = vmatprep.subr.bf16.mxu0 %v7128_v25  ;;  %3384 = vmatprep.subr.bf16.mxu1 %v7135_v39 }
 0xa64   :  { %3342 = vmatpush1.bf16.msra.mxu0 %v7132_v23  ;;  %3385 = vmatpush1.bf16.msra.mxu1 %v7137_v40  ;;  %v8085_v23 = vld [vmem:[#allocation40_spill] sm:$0xff] }
 0xa65   :  { %3343 = vmatprep.subr.bf16.mxu0 %v7140_v41  ;;  %3386 = vmatprep.subr.bf16.mxu1 %v7143_v42  ;;  %v2451_v39 = vadd.f32 %v8085_v23, %v7364_v52  ;;  %v7539_v23 = vld [vmem:[#allocation12 + $0x1ac] ss:$16 sps:$4 sm:$0xff]  }
 0xa68   :  { %3344 = vmatpush1.bf16.msra.mxu0 %v7146_v44  ;;  %3387 = vmatpush1.bf16.msra.mxu1 %v7149_v45  ;;  %v8086_v45 = vld [vmem:[#allocation41_spill] sm:$0xff] }
 0xa69   :  { %3345 = vmatprep.subr.bf16.mxu0 %v7152_v5  ;;  %3388 = vmatprep.subr.bf16.mxu1 %v7160_v47  ;;  %v2562_v5 = vadd.f32 %v8086_v45, %v7374_v56  ;;  %v7557_v45 = vld [vmem:[#allocation12 + $0x188] ss:$16 sps:$4 sm:$0xff]  }
 0xa6c   :  { %3346 = vmatpush1.bf16.msra.mxu0 %v7156_v46  ;;  %3389 = vmatpush1.bf16.msra.mxu1 %v7162_v48 }
 0xa6d   :  { %3347 = vmatprep.subr.bf16.mxu0 %v7164_v49  ;;  %3390 = vmatprep.subr.bf16.mxu1 %v7172_v51 }
 0xa70   :  { %3348 = vmatpush1.bf16.msra.mxu0 %v7168_v50  ;;  %3391 = vmatpush1.bf16.msra.mxu1 %v7174_v53  ;;  %v8087_v50 = vld [vmem:[#allocation34_spill] sm:$0xff] }
 0xa71   :  { %3484 = vmatprep.subr.bf16.mxu0 %v7083_v36  ;;  %3527 = vmatprep.subr.bf16.mxu1 %v7085_v13  ;;  %v2560_v51 = vadd.f32 %v8087_v50, %v7386_v60  ;;  %v7575_v50 = vld [vmem:[#allocation12 + $0x14c] ss:$16 sps:$4 sm:$0xff]  }
 0xb13   :  { %v3216_v24 = vpop.f32.mrf.mxu0  ;;  %v3259_v18 = vpop.f32.mrf.mxu1 }
 0xb14   :  { %v3268_v7 = vadd.f32 %v3216_v24, %v2445_v20  ;;  %v3270_v13 = vadd.f32 %v3259_v18, %v2558_v43 }
 0xb15   :  { %v3218_v21 = vpop.f32.mrf.mxu0  ;;  %v3261_v38 = vpop.f32.mrf.mxu1 }
 0xb16   :  { %v3276_v36 = vmul.f32 0.5, %v3268_v7  ;;  %v3269_v16 = vadd.f32 %v3218_v21, %v2447_v19  ;;  %v3271_v53 = vadd.f32 %v3261_v38, %v2560_v51  ;;  %v7578_v51 = vld [vmem:[#allocation12 + $0x140] ss:$16 sps:$4 sm:$0xff]  }
 0xb17   :  { %v3220_v25 = vpop.f32.mrf.mxu0  ;;  %v3263_v42 = vpop.f32.mrf.mxu1 }
 0xb18   :  { %5770 = vtanh.f32 %v3276_v36  ;;  %v3284_v40 = vmul.f32 0.5, %v3269_v16  ;;  %v3272_v41 = vadd.f32 %v3220_v25, %v2449_v4  ;;  %v3274_v48 = vadd.f32 %v3263_v42, %v2562_v5  ;;  %v7522_v4 = vld [vmem:[#allocation12 + $0x1c4] ss:$16 sps:$4 sm:$0xff]   ;;  %v7525_v36 = vld [vmem:[#allocation12 + $0x1cc] ss:$16 sps:$4 sm:$0xff]  }
 0xb19   :  { %v3222_v44 = vpop.f32.mrf.mxu0  ;;  %v3265_v6 = vpop.f32.mrf.mxu1  ;;  %v3294_v12 = vmul.f32 0.5, %v3271_v53  ;;  %v7530_v16 = vld [vmem:[#allocation12 + $0x1c0] ss:$16 sps:$4 sm:$0xff]   ;;  %v7536_v25 = vld [vmem:[#allocation12 + $0x1a4] ss:$16 sps:$4 sm:$0xff]  }
 0xb1a   :  { %5772 = vtanh.f32 %v3284_v40  ;;  %v3277_v46 = vmul.f32 0.5, %v3272_v41  ;;  %v3273_v47 = vadd.f32 %v3222_v44, %v2451_v39  ;;  %v3275_v31 = vadd.f32 %v3265_v6, %v2564_v58  ;;  %v7542_v39 = vld [vmem:[#allocation12 + $0x1a0] ss:$16 sps:$4 sm:$0xff]   ;;  %v7545_v40 = vld [vmem:[#allocation12 + $0x1a8] ss:$16 sps:$4 sm:$0xff]  }
 0xb1b   :  { %5774 = vtanh.f32 %v3270_v13  ;;  %v7533_v13 = vld [vmem:[#allocation12 + $0x1c8] ss:$16 sps:$4 sm:$0xff]   ;;  %v7548_v41 = vld [vmem:[#allocation12 + $0x184] ss:$16 sps:$4 sm:$0xff]   ;;  %v7551_v42 = vld [vmem:[#allocation12 + $0x18c] ss:$16 sps:$4 sm:$0xff]  }
 0xb1c   :  { %5776 = vtanh.f32 %v3277_v46  ;;  %v3285_v49 = vmul.f32 0.5, %v3273_v47  ;;  %v3295_v17 = vmul.f32 0.5, %v3275_v31  ;;  %v7554_v44 = vld [vmem:[#allocation12 + $0x180] ss:$16 sps:$4 sm:$0xff]   ;;  %v7560_v5 = vld [vmem:[#allocation12 + $0x164] ss:$16 sps:$4 sm:$0xff]  }
 0xb1d   :  { %v7563_v46 = vld [vmem:[#allocation12 + $0x16c] ss:$16 sps:$4 sm:$0xff]   ;;  %v7566_v47 = vld [vmem:[#allocation12 + $0x160] ss:$16 sps:$4 sm:$0xff]   ;;  %v7581_v53 = vld [vmem:[#allocation12 + $0x148] ss:$16 sps:$4 sm:$0xff]  }
 0xb1e   :  { %5778 = vtanh.f32 %v3285_v49  ;;  %v7572_v49 = vld [vmem:[#allocation12 + $0x144] ss:$16 sps:$4 sm:$0xff]   ;;  %v7590_v58 = vld [vmem:[#allocation12 + $0x120] ss:$16 sps:$4 sm:$0xff]  }
 0xb1f   :  { %5780 = vtanh.f32 %v3274_v48  ;;  %v7569_v48 = vld [vmem:[#allocation12 + $0x168] ss:$16 sps:$4 sm:$0xff]   ;;  %v7584_v6 = vld [vmem:[#allocation12 + $0x124] ss:$16 sps:$4 sm:$0xff]  }
 0xb20   :  { %5782 = vtanh.f32 %v3294_v12  ;;  %v7593_v12 = vld [vmem:[#allocation12 + $0x128] ss:$16 sps:$4 sm:$0xff]   ;;  %v7596_v31 = vld [vmem:[#allocation12 + $0x104] ss:$16 sps:$4 sm:$0xff]  }
 0xb21   :  { %5784 = vtanh.f32 %v3295_v17 }
 0xb25   :  { %v5771_v11 = vpop.eup %5770 }
 0xb26   :  { %v3280_v15 = vmul.f32 0.5, %v5771_v11  ;;  %v7599_v11 = vld [vmem:[#allocation12 + $0x10c] ss:$16 sps:$4 sm:$0xff]  }
 0xb27   :  { %v5773_v59 = vpop.eup %5772 }
 0xb28   :  { %v5775_v57 = vpop.eup %5774  ;;  %v3282_v9 = vadd.f32 0.5, %v3280_v15  ;;  %v3288_v63 = vmul.f32 0.5, %v5773_v59  ;;  %v7602_v15 = vld [vmem:[#allocation12 + $0x100] ss:$16 sps:$4 sm:$0xff]   ;;  %v7605_v59 = vld [vmem:[#allocation12 + $0x108] ss:$16 sps:$4 sm:$0xff]  }
 0xb29   :  { %v5777_v2 = vpop.eup %5776 }
 0xb2a   :  { %v3290_v22 = vadd.f32 0.5, %v3288_v63  ;;  %v3304_v34 = vmul.f32 %v5775_v57, %v3282_v9  ;;  %v3281_v27 = vmul.f32 0.5, %v5777_v2  ;;  %v7608_v57 = vld [vmem:[#allocation12 + $0x1e4] ss:$16 sps:$4 sm:$0xff]   ;;  %v7611_v9 = vld [vmem:[#allocation12 + $0x1ec] ss:$16 sps:$4 sm:$0xff]  }
 0xb2b   :  { %v5779_v32 = vpop.eup %5778  ;;  %v8089_v63 = vld [vmem:[#allocation43_spill] sm:$0xff] }
 0xb2c   :  { %v3302_v62 = vmul.f32 %v3290_v22, %v7451_v1  ;;  %v3283_v3 = vadd.f32 0.5, %v3281_v27  ;;  %v3289_v28 = vmul.f32 0.5, %v5779_v32  ;;  %v5781_v14 = vpop.eup %5780  ;;  %v2455_v17 = vadd.f32 %v8089_v63, %v7356_v54 }
 0xb2d   :  { %v5783_v20 = vpop.eup %5782 }
 0xb2e   :  { %v7509_v26 = vadd.f32 %v3304_v34, %v3302_v62  ;;  %v3291_v8 = vadd.f32 0.5, %v3289_v28  ;;  %v3305_v30 = vmul.f32 %v5781_v14, %v3283_v3  ;;  %v3298_v24 = vmul.f32 0.5, %v5783_v20  ;;  %v5785_v18 = vpop.eup %5784  ;;  %v8090_v34 = vld [vmem:[#allocation46_spill] sm:$0xff]  ;;  %v8091_v62 = vld [vmem:[#allocation44_spill] sm:$0xff] }
 0xb2f   :  { %v3299_v0 = vmul.f32 0.5, %v5785_v18  ;;  %v2457_v27 = vadd.f32 %v8090_v34, %v7364_v52  ;;  %v2568_v3 = vadd.f32 %v8091_v62, %v7374_v56 }
 0xb30   :  { %5786 = vtanh.f32 %v7509_v26  ;;  %v3303_v29 = vmul.f32 %v3291_v8, %v7455_v35  ;;  %v3300_v1 = vadd.f32 0.5, %v3298_v24  ;;  %v7516_v35 = vld [vmem:[#allocation12 + $0x1e0] ss:$16 sps:$4 sm:$0xff]  }
 0xb31   :  { %v3301_v10 = vadd.f32 0.5, %v3299_v0  ;;  %v8092_v8 = vld [vmem:[#allocation47_spill] sm:$0xff] }
 0xb32   :  { %v7513_v37 = vadd.f32 %v3305_v30, %v3303_v29  ;;  %v2459_v30 = vadd.f32 %v8092_v8, %v7356_v54 }
 0xb34   :  { %5788 = vtanh.f32 %v7513_v37 }
 0xb3d   :  { %v5787_v19 = vpop.eup %5786 }
 0xb3e   :  { %v3310_v7 = vmul.f32 %v5787_v19, %v3300_v1  ;;  %v8093_v1 = vld [vmem:[#allocation48_spill] sm:$0xff] }
 0xb3f   :  { %v2461_v0 = vadd.f32 %v8093_v1, %v7364_v52 }
 0xb40   :  { %3323 = vst [vmem:[#allocation18 + $0x20] sm:$0xff] %v3310_v7 }
 0xb41   :  { %v5789_v43 = vpop.eup %5788 }
 0xb42   :  { %v3311_v21 = vmul.f32 %v5789_v43, %v3301_v10 }
 0xb44   :  { %3324 = vst [vmem:[#allocation18 + $0x28] sm:$0xff] %v3311_v21  ;;  %v3312_v38 = vpack.c.bf16 %v3311_v21, %v3310_v7  ;;  %v8094_v21 = vld [vmem:[#allocation49_spill] sm:$0xff] }
 0xb46   :  { %5118 = vst [vmem:[#allocation2 + $0x10] sm:$0xff] %v3312_v38   ;;  %3366 = vmatmul.mubr.bf16.vlgmr.msra.gmra.mxu0 %v3312_v38  ;;  %3409 = vmatmul.mubr.bf16.vlgmr.msra.gmra.mxu1 %v3312_v38  ;;  %v2572_v38 = vadd.f32 %v8094_v21, %v7374_v56 }
 0xb47   :  { %3485 = vmatpush1.bf16.msra.mxu0 %v7516_v35  ;;  %3528 = vmatpush1.bf16.msra.mxu1 %v7519_v33 }
 0xb48   :  { %3486 = vmatprep.subr.bf16.mxu0 %v7522_v4  ;;  %3529 = vmatprep.subr.bf16.mxu1 %v7525_v36 }
 0xb49   :  { %3516 = vmatprep.mubr.bf16.mxu0 %v7968_v61  ;;  %3559 = vmatprep.mubr.bf16.mxu1 %v7968_v61 }
 0xb4b   :  { %3487 = vmatpush1.bf16.msra.mxu0 %v7530_v16  ;;  %3530 = vmatpush1.bf16.msra.mxu1 %v7533_v13 }
 0xb4c   :  { %3488 = vmatprep.subr.bf16.mxu0 %v7536_v25  ;;  %3531 = vmatprep.subr.bf16.mxu1 %v7539_v23 }
 0xb4f   :  { %3489 = vmatpush1.bf16.msra.mxu0 %v7542_v39  ;;  %3532 = vmatpush1.bf16.msra.mxu1 %v7545_v40 }
 0xb50   :  { %3490 = vmatprep.subr.bf16.mxu0 %v7548_v41  ;;  %3533 = vmatprep.subr.bf16.mxu1 %v7551_v42 }
 0xb53   :  { %3491 = vmatpush1.bf16.msra.mxu0 %v7554_v44  ;;  %3534 = vmatpush1.bf16.msra.mxu1 %v7557_v45 }
 0xb54   :  { %3492 = vmatprep.subr.bf16.mxu0 %v7560_v5  ;;  %3535 = vmatprep.subr.bf16.mxu1 %v7563_v46 }
 0xb57   :  { %3493 = vmatpush1.bf16.msra.mxu0 %v7566_v47  ;;  %3536 = vmatpush1.bf16.msra.mxu1 %v7569_v48 }
 0xb58   :  { %3494 = vmatprep.subr.bf16.mxu0 %v7572_v49  ;;  %3537 = vmatprep.subr.bf16.mxu1 %v7575_v50 }
 0xb5b   :  { %3495 = vmatpush1.bf16.msra.mxu0 %v7578_v51  ;;  %3538 = vmatpush1.bf16.msra.mxu1 %v7581_v53 }
 0xb5c   :  { %3496 = vmatprep.subr.bf16.mxu0 %v7584_v6  ;;  %3539 = vmatprep.subr.bf16.mxu1 %v7587_v55 }
 0xb5f   :  { %3497 = vmatpush1.bf16.msra.mxu0 %v7590_v58  ;;  %3540 = vmatpush1.bf16.msra.mxu1 %v7593_v12 }
 0xb60   :  { %3498 = vmatprep.subr.bf16.mxu0 %v7596_v31  ;;  %3541 = vmatprep.subr.bf16.mxu1 %v7599_v11 }
 0xb63   :  { %3499 = vmatpush1.bf16.msra.mxu0 %v7602_v15  ;;  %3542 = vmatpush1.bf16.msra.mxu1 %v7605_v59 }
 0xb64   :  { %3635 = vmatprep.subr.bf16.mxu0 %v7608_v57  ;;  %3678 = vmatprep.subr.bf16.mxu1 %v7611_v9 }
 0xc06   :  { %v3367_v2 = vpop.f32.mrf.mxu0  ;;  %v3410_v22 = vpop.f32.mrf.mxu1 }
 0xc07   :  { %v3419_v32 = vadd.f32 %v3367_v2, %v2455_v17  ;;  %v3421_v24 = vadd.f32 %v3410_v22, %v2568_v3  ;;  %v8095_v22 = vld [vmem:[#allocation42_spill] sm:$0xff]  ;;  %v8096_v3 = vld [vmem:[#allocation53_spill] sm:$0xff] }
 0xc08   :  { %v3369_v28 = vpop.f32.mrf.mxu0  ;;  %v3412_v14 = vpop.f32.mrf.mxu1 }
 0xc09   :  { %v3427_v29 = vmul.f32 0.5, %v3419_v32  ;;  %v3420_v20 = vadd.f32 %v3369_v28, %v2457_v27  ;;  %v2570_v27 = vadd.f32 %v8095_v22, %v7386_v60  ;;  %v2574_v28 = vadd.f32 %v8096_v3, %v7386_v60 }
 0xc0a   :  { %v3371_v18 = vpop.f32.mrf.mxu0  ;;  %v3414_v10 = vpop.f32.mrf.mxu1 }
 0xc0b   :  { %5790 = vtanh.f32 %v3427_v29  ;;  %v3435_v19 = vmul.f32 0.5, %v3420_v20  ;;  %v3423_v7 = vadd.f32 %v3371_v18, %v2459_v30  ;;  %v3425_v2 = vadd.f32 %v3414_v10, %v2572_v38 }
 0xc0c   :  { %v3373_v43 = vpop.f32.mrf.mxu0  ;;  %v3422_v32 = vadd.f32 %v3412_v14, %v2570_v27  ;;  %v3416_v62 = vpop.f32.mrf.mxu1 }
 0xc0d   :  { %5792 = vtanh.f32 %v3435_v19  ;;  %v3428_v63 = vmul.f32 0.5, %v3423_v7  ;;  %v3424_v17 = vadd.f32 %v3373_v43, %v2461_v0  ;;  %v3426_v30 = vadd.f32 %v3416_v62, %v2574_v28 }
 0xc0e   :  { %5794 = vtanh.f32 %v3421_v24  ;;  %v3445_v8 = vmul.f32 0.5, %v3422_v32 }
 0xc0f   :  { %5796 = vtanh.f32 %v3428_v63  ;;  %v3436_v34 = vmul.f32 0.5, %v3424_v17  ;;  %v3446_v19 = vmul.f32 0.5, %v3426_v30 }
 0xc11   :  { %5798 = vtanh.f32 %v3436_v34 }
 0xc12   :  { %5800 = vtanh.f32 %v3425_v2 }
 0xc13   :  { %5802 = vtanh.f32 %v3445_v8 }
 0xc14   :  { %5804 = vtanh.f32 %v3446_v19 }
 0xc18   :  { %v5791_v29 = vpop.eup %5790 }
 0xc19   :  { %v3431_v20 = vmul.f32 0.5, %v5791_v29 }
 0xc1a   :  { %v5793_v18 = vpop.eup %5792 }
 0xc1b   :  { %v5795_v1 = vpop.eup %5794  ;;  %v3433_v24 = vadd.f32 0.5, %v3431_v20  ;;  %v3439_v0 = vmul.f32 0.5, %v5793_v18 }
 0xc1c   :  { %v5797_v7 = vpop.eup %5796 }
 0xc1d   :  { %v3441_v10 = vadd.f32 0.5, %v3439_v0  ;;  %v3455_v43 = vmul.f32 %v5795_v1, %v3433_v24  ;;  %v3432_v21 = vmul.f32 0.5, %v5797_v7 }
 0xc1e   :  { %v5799_v14 = vpop.eup %5798 }
 0xc1f   :  { %v3453_v38 = vmul.f32 %v3441_v10, %v7509_v26  ;;  %v3434_v63 = vadd.f32 0.5, %v3432_v21  ;;  %v3440_v17 = vmul.f32 0.5, %v5799_v14  ;;  %v5801_v2 = vpop.eup %5800 }
 0xc20   :  { %v5803_v3 = vpop.eup %5802 }
 0xc21   :  { %v7631_v34 = vadd.f32 %v3455_v43, %v3453_v38  ;;  %v3442_v22 = vadd.f32 0.5, %v3440_v17  ;;  %v3456_v27 = vmul.f32 %v5801_v2, %v3434_v63  ;;  %v3449_v28 = vmul.f32 0.5, %v5803_v3  ;;  %v5805_v8 = vpop.eup %5804  ;;  %v8098_v43 = vld [vmem:[#allocation54_spill] sm:$0xff]  ;;  %v8099_v38 = vld [vmem:[#allocation52_spill] sm:$0xff] }
 0xc22   :  { %v3450_v30 = vmul.f32 0.5, %v5805_v8  ;;  %v2467_v21 = vadd.f32 %v8098_v43, %v7364_v52  ;;  %v2578_v63 = vadd.f32 %v8099_v38, %v7374_v56 }
 0xc23   :  { %5806 = vtanh.f32 %v7631_v34  ;;  %v3454_v32 = vmul.f32 %v3442_v22, %v7513_v37  ;;  %v3451_v26 = vadd.f32 0.5, %v3449_v28  ;;  %v8097_v37 = vld [vmem:[#allocation51_spill] sm:$0xff] }
 0xc24   :  { %v3452_v18 = vadd.f32 0.5, %v3450_v30  ;;  %v2465_v19 = vadd.f32 %v8097_v37, %v7356_v54  ;;  %v8100_v22 = vld [vmem:[#allocation55_spill] sm:$0xff] }
 0xc25   :  { %v7635_v62 = vadd.f32 %v3456_v27, %v3454_v32  ;;  %v2469_v27 = vadd.f32 %v8100_v22, %v7356_v54 }
 0xc27   :  { %5808 = vtanh.f32 %v7635_v62 }
 0xc30   :  { %v5807_v29 = vpop.eup %5806 }
 0xc31   :  { %v3461_v20 = vmul.f32 %v5807_v29, %v3451_v26  ;;  %v8101_v26 = vld [vmem:[#allocation56_spill] sm:$0xff] }
 0xc32   :  { %v2471_v30 = vadd.f32 %v8101_v26, %v7364_v52 }
 0xc33   :  { %3474 = vst [vmem:[#allocation18 + $0x30] sm:$0xff] %v3461_v20 }
 0xc34   :  { %v5809_v1 = vpop.eup %5808 }
 0xc35   :  { %v3462_v24 = vmul.f32 %v5809_v1, %v3452_v18 }
 0xc37   :  { %v3463_v0 = vpack.c.bf16 %v3462_v24, %v3461_v20  ;;  %3475 = vst [vmem:[#allocation18 + $0x38] sm:$0xff] %v3462_v24  ;;  %v8102_v24 = vld [vmem:[#allocation57_spill] sm:$0xff] }
 0xc39   :  { %5123 = vst [vmem:[#allocation2 + $0x18] sm:$0xff] %v3463_v0   ;;  %3517 = vmatmul.mubr.bf16.vlgmr.msra.gmra.mxu0 %v3463_v0  ;;  %3560 = vmatmul.mubr.bf16.vlgmr.msra.gmra.mxu1 %v3463_v0  ;;  %v2582_v0 = vadd.f32 %v8102_v24, %v7374_v56 }
 0xc3a   :  { %3636 = vmatpush1.bf16.msra.mxu0 %v7516_v35  ;;  %3679 = vmatpush1.bf16.msra.mxu1 %v7519_v33 }
 0xc3b   :  { %3637 = vmatprep.subr.bf16.mxu0 %v7522_v4  ;;  %3680 = vmatprep.subr.bf16.mxu1 %v7525_v36 }
 0xc3c   :  { %3667 = vmatprep.mubr.bf16.mxu0 %v7968_v61  ;;  %3710 = vmatprep.mubr.bf16.mxu1 %v7968_v61 }
 0xc3e   :  { %3638 = vmatpush1.bf16.msra.mxu0 %v7530_v16  ;;  %3681 = vmatpush1.bf16.msra.mxu1 %v7533_v13 }
 0xc3f   :  { %3639 = vmatprep.subr.bf16.mxu0 %v7536_v25  ;;  %3682 = vmatprep.subr.bf16.mxu1 %v7539_v23 }
 0xc42   :  { %3640 = vmatpush1.bf16.msra.mxu0 %v7542_v39  ;;  %3683 = vmatpush1.bf16.msra.mxu1 %v7545_v40 }
 0xc43   :  { %3641 = vmatprep.subr.bf16.mxu0 %v7548_v41  ;;  %3684 = vmatprep.subr.bf16.mxu1 %v7551_v42 }
 0xc46   :  { %3642 = vmatpush1.bf16.msra.mxu0 %v7554_v44  ;;  %3685 = vmatpush1.bf16.msra.mxu1 %v7557_v45 }
 0xc47   :  { %3643 = vmatprep.subr.bf16.mxu0 %v7560_v5  ;;  %3686 = vmatprep.subr.bf16.mxu1 %v7563_v46 }
 0xc4a   :  { %3644 = vmatpush1.bf16.msra.mxu0 %v7566_v47  ;;  %3687 = vmatpush1.bf16.msra.mxu1 %v7569_v48 }
 0xc4b   :  { %3645 = vmatprep.subr.bf16.mxu0 %v7572_v49  ;;  %3688 = vmatprep.subr.bf16.mxu1 %v7575_v50 }
 0xc4e   :  { %3646 = vmatpush1.bf16.msra.mxu0 %v7578_v51  ;;  %3689 = vmatpush1.bf16.msra.mxu1 %v7581_v53 }
 0xc4f   :  { %3647 = vmatprep.subr.bf16.mxu0 %v7584_v6  ;;  %3690 = vmatprep.subr.bf16.mxu1 %v7587_v55 }
 0xc52   :  { %3648 = vmatpush1.bf16.msra.mxu0 %v7590_v58  ;;  %3691 = vmatpush1.bf16.msra.mxu1 %v7593_v12 }
 0xc53   :  { %3649 = vmatprep.subr.bf16.mxu0 %v7596_v31  ;;  %3692 = vmatprep.subr.bf16.mxu1 %v7599_v11 }
 0xc56   :  { %3650 = vmatpush1.bf16.msra.mxu0 %v7602_v15  ;;  %3693 = vmatpush1.bf16.msra.mxu1 %v7605_v59 }
 0xc57   :  { %3786 = vmatprep.subr.bf16.mxu0 %v7608_v57  ;;  %3829 = vmatprep.subr.bf16.mxu1 %v7611_v9 }
 0xcf9   :  { %v3518_v7 = vpop.f32.mrf.mxu0  ;;  %v3561_v10 = vpop.f32.mrf.mxu1 }
 0xcfa   :  { %v3570_v14 = vadd.f32 %v3518_v7, %v2465_v19  ;;  %v3572_v28 = vadd.f32 %v3561_v10, %v2578_v63  ;;  %v8103_v10 = vld [vmem:[#allocation50_spill] sm:$0xff]  ;;  %v8104_v63 = vld [vmem:[#allocation61_spill] sm:$0xff] }
 0xcfb   :  { %v3520_v17 = vpop.f32.mrf.mxu0  ;;  %v3563_v2 = vpop.f32.mrf.mxu1 }
 0xcfc   :  { %v3578_v32 = vmul.f32 0.5, %v3570_v14  ;;  %v3571_v3 = vadd.f32 %v3520_v17, %v2467_v21  ;;  %v2580_v21 = vadd.f32 %v8103_v10, %v7386_v60  ;;  %v2584_v17 = vadd.f32 %v8104_v63, %v7386_v60 }
 0xcfd   :  { %v3522_v8 = vpop.f32.mrf.mxu0  ;;  %v3565_v18 = vpop.f32.mrf.mxu1 }
 0xcfe   :  { %5810 = vtanh.f32 %v3578_v32  ;;  %v3586_v29 = vmul.f32 0.5, %v3571_v3  ;;  %v3574_v20 = vadd.f32 %v3522_v8, %v2469_v27  ;;  %v3576_v7 = vadd.f32 %v3565_v18, %v2582_v0 }
 0xcff   :  { %v3524_v1 = vpop.f32.mrf.mxu0  ;;  %v3573_v14 = vadd.f32 %v3563_v2, %v2580_v21  ;;  %v3567_v38 = vpop.f32.mrf.mxu1 }
 0xd00   :  { %5812 = vtanh.f32 %v3586_v29  ;;  %v3579_v37 = vmul.f32 0.5, %v3574_v20  ;;  %v3575_v19 = vadd.f32 %v3524_v1, %v2471_v30  ;;  %v3577_v27 = vadd.f32 %v3567_v38, %v2584_v17 }
 0xd01   :  { %5814 = vtanh.f32 %v3572_v28  ;;  %v3596_v22 = vmul.f32 0.5, %v3573_v14 }
 0xd02   :  { %5816 = vtanh.f32 %v3579_v37  ;;  %v3587_v43 = vmul.f32 0.5, %v3575_v19  ;;  %v3597_v29 = vmul.f32 0.5, %v3577_v27 }
 0xd04   :  { %5818 = vtanh.f32 %v3587_v43 }
 0xd05   :  { %5820 = vtanh.f32 %v3576_v7 }
 0xd06   :  { %5822 = vtanh.f32 %v3596_v22 }
 0xd07   :  { %5824 = vtanh.f32 %v3597_v29 }
 0xd0b   :  { %v5811_v32 = vpop.eup %5810 }
 0xd0c   :  { %v3582_v3 = vmul.f32 0.5, %v5811_v32 }
 0xd0d   :  { %v5813_v8 = vpop.eup %5812 }
 0xd0e   :  { %v5815_v26 = vpop.eup %5814  ;;  %v3584_v28 = vadd.f32 0.5, %v3582_v3  ;;  %v3590_v30 = vmul.f32 0.5, %v5813_v8 }
 0xd0f   :  { %v5817_v20 = vpop.eup %5816 }
 0xd10   :  { %v3592_v18 = vadd.f32 0.5, %v3590_v30  ;;  %v3606_v1 = vmul.f32 %v5815_v26, %v3584_v28  ;;  %v3583_v24 = vmul.f32 0.5, %v5817_v20 }
 0xd11   :  { %v5819_v2 = vpop.eup %5818 }
 0xd12   :  { %v3604_v0 = vmul.f32 %v3592_v18, %v7631_v34  ;;  %v3585_v37 = vadd.f32 0.5, %v3583_v24  ;;  %v3591_v19 = vmul.f32 0.5, %v5819_v2  ;;  %v5821_v7 = vpop.eup %5820 }
 0xd13   :  { %v5823_v63 = vpop.eup %5822 }
 0xd14   :  { %v7689_v43 = vadd.f32 %v3606_v1, %v3604_v0  ;;  %v3593_v10 = vadd.f32 0.5, %v3591_v19  ;;  %v3607_v21 = vmul.f32 %v5821_v7, %v3585_v37  ;;  %v3600_v17 = vmul.f32 0.5, %v5823_v63  ;;  %v5825_v22 = vpop.eup %5824  ;;  %v8106_v1 = vld [vmem:[#allocation62_spill] sm:$0xff]  ;;  %v8107_v0 = vld [vmem:[#allocation60_spill] sm:$0xff] }
 0xd15   :  { %v3601_v27 = vmul.f32 0.5, %v5825_v22  ;;  %v2477_v24 = vadd.f32 %v8106_v1, %v7364_v52  ;;  %v2588_v37 = vadd.f32 %v8107_v0, %v7374_v56 }
 0xd16   :  { %5826 = vtanh.f32 %v7689_v43  ;;  %v3605_v14 = vmul.f32 %v3593_v10, %v7635_v62  ;;  %v3602_v34 = vadd.f32 0.5, %v3600_v17  ;;  %v8105_v62 = vld [vmem:[#allocation59_spill] sm:$0xff]  ;;  %v8109_v17 = vld [vmem:[#allocation64_spill] sm:$0xff] }
 0xd17   :  { %v3603_v8 = vadd.f32 0.5, %v3601_v27  ;;  %v2475_v29 = vadd.f32 %v8105_v62, %v7356_v54  ;;  %v8108_v10 = vld [vmem:[#allocation63_spill] sm:$0xff]  ;;  %v2481_v22 = vadd.f32 %v8109_v17, %v7364_v52 }
 0xd18   :  { %v7693_v38 = vadd.f32 %v3607_v21, %v3605_v14  ;;  %v2479_v21 = vadd.f32 %v8108_v10, %v7356_v54 }
 0xd1a   :  { %5828 = vtanh.f32 %v7693_v38 }
 0xd23   :  { %v5827_v32 = vpop.eup %5826 }
 0xd24   :  { %v3612_v3 = vmul.f32 %v5827_v32, %v3602_v34 }
 0xd26   :  { %3625 = vst [vmem:[#allocation18 + $0x40] sm:$0xff] %v3612_v3 }
 0xd27   :  { %v5829_v26 = vpop.eup %5828 }
 0xd28   :  { %v3613_v28 = vmul.f32 %v5829_v26, %v3603_v8  ;;  %v8110_v8 = vld [vmem:[#allocation65_spill] sm:$0xff] }
 0xd29   :  { %v2592_v26 = vadd.f32 %v8110_v8, %v7374_v56 }
 0xd2a   :  { %v3614_v30 = vpack.c.bf16 %v3613_v28, %v3612_v3  ;;  %3626 = vst [vmem:[#allocation18 + $0x48] sm:$0xff] %v3613_v28 }
 0xd2c   :  { %5128 = vst [vmem:[#allocation2 + $0x20] sm:$0xff] %v3614_v30   ;;  %3668 = vmatmul.mubr.bf16.vlgmr.msra.gmra.mxu0 %v3614_v30  ;;  %3711 = vmatmul.mubr.bf16.vlgmr.msra.gmra.mxu1 %v3614_v30 }
 0xd2d   :  { %3787 = vmatpush1.bf16.msra.mxu0 %v7516_v35  ;;  %3830 = vmatpush1.bf16.msra.mxu1 %v7519_v33 }
 0xd2e   :  { %3788 = vmatprep.subr.bf16.mxu0 %v7522_v4  ;;  %3831 = vmatprep.subr.bf16.mxu1 %v7525_v36 }
 0xd2f   :  { %3818 = vmatprep.mubr.bf16.mxu0 %v7968_v61  ;;  %3861 = vmatprep.mubr.bf16.mxu1 %v7968_v61 }
 0xd31   :  { %3789 = vmatpush1.bf16.msra.mxu0 %v7530_v16  ;;  %3832 = vmatpush1.bf16.msra.mxu1 %v7533_v13 }
 0xd32   :  { %3790 = vmatprep.subr.bf16.mxu0 %v7536_v25  ;;  %3833 = vmatprep.subr.bf16.mxu1 %v7539_v23 }
 0xd35   :  { %3791 = vmatpush1.bf16.msra.mxu0 %v7542_v39  ;;  %3834 = vmatpush1.bf16.msra.mxu1 %v7545_v40 }
 0xd36   :  { %3792 = vmatprep.subr.bf16.mxu0 %v7548_v41  ;;  %3835 = vmatprep.subr.bf16.mxu1 %v7551_v42 }
 0xd39   :  { %3793 = vmatpush1.bf16.msra.mxu0 %v7554_v44  ;;  %3836 = vmatpush1.bf16.msra.mxu1 %v7557_v45 }
 0xd3a   :  { %3794 = vmatprep.subr.bf16.mxu0 %v7560_v5  ;;  %3837 = vmatprep.subr.bf16.mxu1 %v7563_v46 }
 0xd3d   :  { %3795 = vmatpush1.bf16.msra.mxu0 %v7566_v47  ;;  %3838 = vmatpush1.bf16.msra.mxu1 %v7569_v48 }
 0xd3e   :  { %3796 = vmatprep.subr.bf16.mxu0 %v7572_v49  ;;  %3839 = vmatprep.subr.bf16.mxu1 %v7575_v50 }
 0xd41   :  { %3797 = vmatpush1.bf16.msra.mxu0 %v7578_v51  ;;  %3840 = vmatpush1.bf16.msra.mxu1 %v7581_v53 }
 0xd42   :  { %3798 = vmatprep.subr.bf16.mxu0 %v7584_v6  ;;  %3841 = vmatprep.subr.bf16.mxu1 %v7587_v55 }
 0xd45   :  { %3799 = vmatpush1.bf16.msra.mxu0 %v7590_v58  ;;  %3842 = vmatpush1.bf16.msra.mxu1 %v7593_v12 }
 0xd46   :  { %3800 = vmatprep.subr.bf16.mxu0 %v7596_v31  ;;  %3843 = vmatprep.subr.bf16.mxu1 %v7599_v11 }
 0xd49   :  { %3801 = vmatpush1.bf16.msra.mxu0 %v7602_v15  ;;  %3844 = vmatpush1.bf16.msra.mxu1 %v7605_v59 }
 0xd4a   :  { %3937 = vmatprep.subr.bf16.mxu0 %v7608_v57  ;;  %3980 = vmatprep.subr.bf16.mxu1 %v7611_v9 }
 0xdec   :  { %v3669_v20 = vpop.f32.mrf.mxu0  ;;  %v3712_v18 = vpop.f32.mrf.mxu1 }
 0xded   :  { %v3721_v2 = vadd.f32 %v3669_v20, %v2475_v29  ;;  %v3723_v9 = vadd.f32 %v3712_v18, %v2588_v37  ;;  %v8111_v20 = vld [vmem:[#allocation58_spill] sm:$0xff] }
 0xdee   :  { %v3671_v19 = vpop.f32.mrf.mxu0  ;;  %v3714_v7 = vpop.f32.mrf.mxu1  ;;  %v2590_v18 = vadd.f32 %v8111_v20, %v7386_v60 }
 0xdef   :  { %v3729_v57 = vmul.f32 0.5, %v3721_v2  ;;  %v3722_v14 = vadd.f32 %v3671_v19, %v2477_v24  ;;  %v8112_v2 = vld [vmem:[#allocation69_spill] sm:$0xff] }
 0xdf0   :  { %v3673_v63 = vpop.f32.mrf.mxu0  ;;  %v3716_v32 = vpop.f32.mrf.mxu1  ;;  %v3724_v1 = vadd.f32 %v3714_v7, %v2590_v18  ;;  %v2594_v0 = vadd.f32 %v8112_v2, %v7386_v60 }
 0xdf1   :  { %5830 = vtanh.f32 %v3729_v57  ;;  %v3737_v34 = vmul.f32 0.5, %v3722_v14  ;;  %v3725_v27 = vadd.f32 %v3673_v63, %v2479_v21  ;;  %v3727_v62 = vadd.f32 %v3716_v32, %v2592_v26 }
 0xdf2   :  { %v3675_v3 = vpop.f32.mrf.mxu0  ;;  %v3718_v24 = vpop.f32.mrf.mxu1  ;;  %v3747_v37 = vmul.f32 0.5, %v3724_v1 }
 0xdf3   :  { %5832 = vtanh.f32 %v3737_v34  ;;  %v3730_v28 = vmul.f32 0.5, %v3725_v27  ;;  %v3726_v30 = vadd.f32 %v3675_v3, %v2481_v22  ;;  %v3728_v19 = vadd.f32 %v3718_v24, %v2594_v0 }
 0xdf4   :  { %5834 = vtanh.f32 %v3723_v9 }
 0xdf5   :  { %5836 = vtanh.f32 %v3730_v28  ;;  %v3738_v29 = vmul.f32 0.5, %v3726_v30  ;;  %v3748_v17 = vmul.f32 0.5, %v3728_v19 }
 0xdf7   :  { %5838 = vtanh.f32 %v3738_v29 }
 0xdf8   :  { %5840 = vtanh.f32 %v3727_v62 }
 0xdf9   :  { %5842 = vtanh.f32 %v3747_v37 }
 0xdfa   :  { %5844 = vtanh.f32 %v3748_v17 }
 0xdfe   :  { %v5831_v10 = vpop.eup %5830 }
 0xdff   :  { %v3733_v21 = vmul.f32 0.5, %v5831_v10 }
 0xe00   :  { %v5833_v57 = vpop.eup %5832 }
 0xe01   :  { %v5835_v14 = vpop.eup %5834  ;;  %v3735_v9 = vadd.f32 0.5, %v3733_v21  ;;  %v3741_v63 = vmul.f32 0.5, %v5833_v57 }
 0xe02   :  { %v5837_v22 = vpop.eup %5836 }
 0xe03   :  { %v3743_v34 = vadd.f32 0.5, %v3741_v63  ;;  %v3757_v27 = vmul.f32 %v5835_v14, %v3735_v9  ;;  %v3734_v32 = vmul.f32 0.5, %v5837_v22  ;;  %v8120_v22 = vld [vmem:[#allocation77_spill] sm:$0xff] }
 0xe04   :  { %v5839_v7 = vpop.eup %5838 }
 0xe05   :  { %v3755_v3 = vmul.f32 %v3743_v34, %v7689_v43  ;;  %v3736_v8 = vadd.f32 0.5, %v3734_v32  ;;  %v3742_v26 = vmul.f32 0.5, %v5839_v7  ;;  %v5841_v28 = vpop.eup %5840  ;;  %v2604_v34 = vadd.f32 %v8120_v22, %v7386_v60  ;;  %v5556_v22 = vld [vmem:[#allocation7 + $0x28] sm:$0xff]  }
 0xe06   :  { %v5843_v1 = vpop.eup %5842 }
 0xe07   :  { %v7747_v30 = vadd.f32 %v3757_v27, %v3755_v3  ;;  %v3744_v62 = vadd.f32 0.5, %v3742_v26  ;;  %v3758_v29 = vmul.f32 %v5841_v28, %v3736_v8  ;;  %v3751_v24 = vmul.f32 0.5, %v5843_v1  ;;  %v5845_v2 = vpop.eup %5844 }
 0xe08   :  { %v3752_v0 = vmul.f32 0.5, %v5845_v2 }
 0xe09   :  { %5846 = vtanh.f32 %v7747_v30  ;;  %v3756_v20 = vmul.f32 %v3744_v62, %v7693_v38  ;;  %v3753_v43 = vadd.f32 0.5, %v3751_v24  ;;  %v8119_v38 = vld [vmem:[#allocation66_spill] sm:$0xff] }
 0xe0a   :  { %v3754_v10 = vadd.f32 0.5, %v3752_v0  ;;  %v2600_v9 = vadd.f32 %v8119_v38, %v7386_v60  ;;  %v5552_v38 = vld [vmem:[#allocation7 + $0x18] sm:$0xff]  }
 0xe0b   :  { %v7751_v18 = vadd.f32 %v3758_v29, %v3756_v20 }
 0xe0d   :  { %5848 = vtanh.f32 %v7751_v18 }
 0xe16   :  { %v5847_v37 = vpop.eup %5846 }
 0xe17   :  { %v3763_v19 = vmul.f32 %v5847_v37, %v3753_v43 }
 0xe19   :  { %3776 = vst [vmem:[#allocation18 + $0x50] sm:$0xff] %v3763_v19 }
 0xe1a   :  { %v5849_v21 = vpop.eup %5848 }
 0xe1b   :  { %v3764_v57 = vmul.f32 %v5849_v21, %v3754_v10 }
 0xe1d   :  { %v3765_v14 = vpack.c.bf16 %v3764_v57, %v3763_v19  ;;  %3777 = vst [vmem:[#allocation18 + $0x58] sm:$0xff] %v3764_v57 }
 0xe1f   :  { %5133 = vst [vmem:[#allocation2 + $0x28] sm:$0xff] %v3765_v14   ;;  %3819 = vmatmul.mubr.bf16.vlgmr.msra.gmra.mxu0 %v3765_v14  ;;  %3862 = vmatmul.mubr.bf16.vlgmr.msra.gmra.mxu1 %v3765_v14 }
 0xe20   :  { %3938 = vmatpush1.bf16.msra.mxu0 %v7516_v35  ;;  %3981 = vmatpush1.bf16.msra.mxu1 %v7519_v33  ;;  %v7788_v35 = vld [vmem:[#allocation13 + $0x38] sm:$0xff]   ;;  %v8113_v33 = vld [vmem:[#allocation67_spill] sm:$0xff] }
 0xe21   :  { %3939 = vmatprep.subr.bf16.mxu0 %v7522_v4  ;;  %3982 = vmatprep.subr.bf16.mxu1 %v7525_v36  ;;  %v2485_v4 = vadd.f32 %v8113_v33, %v7356_v54 }
 0xe22   :  { %3969 = vmatprep.mubr.bf16.mxu0 %v7968_v61  ;;  %4012 = vmatprep.mubr.bf16.mxu1 %v7968_v61  ;;  %v7786_v61 = vld [vmem:[#allocation15 + $0x38] sm:$0xff]  }
 0xe24   :  { %3940 = vmatpush1.bf16.msra.mxu0 %v7530_v16  ;;  %3983 = vmatpush1.bf16.msra.mxu1 %v7533_v13  ;;  %v8114_v13 = vld [vmem:[#allocation70_spill] sm:$0xff] }
 0xe25   :  { %3941 = vmatprep.subr.bf16.mxu0 %v7536_v25  ;;  %3984 = vmatprep.subr.bf16.mxu1 %v7539_v23  ;;  %v2487_v25 = vadd.f32 %v8114_v13, %v7364_v52 }
 0xe28   :  { %3942 = vmatpush1.bf16.msra.mxu0 %v7542_v39  ;;  %3985 = vmatpush1.bf16.msra.mxu1 %v7545_v40  ;;  %v8115_v39 = vld [vmem:[#allocation68_spill] sm:$0xff] }
 0xe29   :  { %3943 = vmatprep.subr.bf16.mxu0 %v7548_v41  ;;  %3986 = vmatprep.subr.bf16.mxu1 %v7551_v42  ;;  %v2598_v40 = vadd.f32 %v8115_v39, %v7374_v56 }
 0xe2c   :  { %3944 = vmatpush1.bf16.msra.mxu0 %v7554_v44  ;;  %3987 = vmatpush1.bf16.msra.mxu1 %v7557_v45  ;;  %v8116_v44 = vld [vmem:[#allocation71_spill] sm:$0xff] }
 0xe2d   :  { %3945 = vmatprep.subr.bf16.mxu0 %v7560_v5  ;;  %3988 = vmatprep.subr.bf16.mxu1 %v7563_v46  ;;  %v2489_v45 = vadd.f32 %v8116_v44, %v7356_v54 }
 0xe30   :  { %3946 = vmatpush1.bf16.msra.mxu0 %v7566_v47  ;;  %3989 = vmatpush1.bf16.msra.mxu1 %v7569_v48 }
 0xe31   :  { %3947 = vmatprep.subr.bf16.mxu0 %v7572_v49  ;;  %3990 = vmatprep.subr.bf16.mxu1 %v7575_v50  ;;  %v8117_v49 = vld [vmem:[#allocation72_spill] sm:$0xff] }
 0xe32   :  { %v2491_v50 = vadd.f32 %v8117_v49, %v7364_v52  ;;  %v5537_v49 = vld [vmem:[#allocation15 + $0x20] sm:$0xff]  }
 0xe34   :  { %3948 = vmatpush1.bf16.msra.mxu0 %v7578_v51  ;;  %3991 = vmatpush1.bf16.msra.mxu1 %v7581_v53 }
 0xe35   :  { %3949 = vmatprep.subr.bf16.mxu0 %v7584_v6  ;;  %3992 = vmatprep.subr.bf16.mxu1 %v7587_v55 }
 0xe38   :  { %3950 = vmatpush1.bf16.msra.mxu0 %v7590_v58  ;;  %3993 = vmatpush1.bf16.msra.mxu1 %v7593_v12  ;;  %v8118_v58 = vld [vmem:[#allocation73_spill] sm:$0xff] }
 0xe39   :  { %3951 = vmatprep.subr.bf16.mxu0 %v7596_v31  ;;  %3994 = vmatprep.subr.bf16.mxu1 %v7599_v11  ;;  %v2602_v12 = vadd.f32 %v8118_v58, %v7374_v56  ;;  %v5545_v58 = vld [vmem:[#allocation15] sm:$0xff]  }
 0xe3c   :  { %3952 = vmatpush1.bf16.msra.mxu0 %v7602_v15  ;;  %3995 = vmatpush1.bf16.msra.mxu1 %v7605_v59 }
 0xe3d   :  { %5192 = vmatprep.subr.bf16.mxu0 %v7786_v61  ;;  %5224 = vmatprep.subr.bf16.mxu1 %v7788_v35 }
 0xedf   :  { %v3820_v36 = vpop.f32.mrf.mxu0  ;;  %v3863_v16 = vpop.f32.mrf.mxu1 }
 0xee0   :  { %v3872_v23 = vadd.f32 %v3820_v36, %v2485_v4  ;;  %v3874_v47 = vadd.f32 %v3863_v16, %v2598_v40 }
 0xee1   :  { %v3822_v41 = vpop.f32.mrf.mxu0  ;;  %v3865_v42 = vpop.f32.mrf.mxu1 }
 0xee2   :  { %v3880_v5 = vmul.f32 0.5, %v3872_v23  ;;  %v3873_v46 = vadd.f32 %v3822_v41, %v2487_v25  ;;  %v3875_v63 = vadd.f32 %v3865_v42, %v2600_v9  ;;  %v5555_v9 = vld [vmem:[#allocation7 + $0x20] sm:$0xff]  }
 0xee3   :  { %v3824_v48 = vpop.f32.mrf.mxu0  ;;  %v3867_v6 = vpop.f32.mrf.mxu1 }
 0xee4   :  { %5850 = vtanh.f32 %v3880_v5  ;;  %v3888_v51 = vmul.f32 0.5, %v3873_v46  ;;  %v3876_v53 = vadd.f32 %v3824_v48, %v2489_v45  ;;  %v3878_v15 = vadd.f32 %v3867_v6, %v2602_v12  ;;  %v5533_v45 = vld [vmem:[#allocation15 + $0x30] sm:$0xff]   ;;  %v5532_v46 = vld [vmem:[#allocation2] sm:$0xff]   ;;  %v5536_v48 = vld [vmem:[#allocation13 + $0x28] sm:$0xff]  }
 0xee5   :  { %v3826_v55 = vpop.f32.mrf.mxu0  ;;  %v3869_v17 = vpop.f32.mrf.mxu1  ;;  %v3898_v27 = vmul.f32 0.5, %v3875_v63  ;;  %v5534_v5 = vld [vmem:[#allocation13 + $0x30] sm:$0xff]   ;;  %v5543_v6 = vld [vmem:[#allocation15 + $0x8] sm:$0xff]   ;;  %v5546_v12 = vld [vmem:[#allocation13] sm:$0xff]  }
 0xee6   :  { %5852 = vtanh.f32 %v3888_v51  ;;  %v3881_v31 = vmul.f32 0.5, %v3876_v53  ;;  %v3877_v11 = vadd.f32 %v3826_v55, %v2491_v50  ;;  %v3879_v32 = vadd.f32 %v3869_v17, %v2604_v34  ;;  %v5538_v50 = vld [vmem:[#allocation13 + $0x20] sm:$0xff]   ;;  %v5539_v51 = vld [vmem:[#allocation15 + $0x18] sm:$0xff]   ;;  %v5542_v53 = vld [vmem:[#allocation13 + $0x10] sm:$0xff]  }
 0xee7   :  { %5854 = vtanh.f32 %v3874_v47  ;;  %v5535_v47 = vld [vmem:[#allocation15 + $0x28] sm:$0xff]   ;;  %v5553_v63 = vld [vmem:[#allocation2 + $0x18] sm:$0xff]   ;;  %v5554_v17 = vld [vmem:[#allocation2 + $0x20] sm:$0xff]  }
 0xee8   :  { %5856 = vtanh.f32 %v3881_v31  ;;  %v3889_v59 = vmul.f32 0.5, %v3877_v11  ;;  %v3899_v29 = vmul.f32 0.5, %v3879_v32  ;;  %v5544_v55 = vld [vmem:[#allocation13 + $0x8] sm:$0xff]   ;;  %v5551_v11 = vld [vmem:[#allocation7 + $0x10] sm:$0xff]   ;;  %v5559_v32 = vld [vmem:[#allocation16 + $0x38] sm:$0xff]  }
 0xee9   :  { %v5548_v31 = vld [vmem:[#allocation7 + $0x8] sm:$0xff]  }
 0xeea   :  { %5858 = vtanh.f32 %v3889_v59  ;;  %v5550_v59 = vld [vmem:[#allocation2 + $0x10] sm:$0xff]   ;;  %v5557_v34 = vld [vmem:[#allocation2 + $0x28] sm:$0xff]  }
 0xeeb   :  { %5860 = vtanh.f32 %v3878_v15  ;;  %v5549_v15 = vld [vmem:[#allocation2 + $0x8] sm:$0xff]  }
 0xeec   :  { %5862 = vtanh.f32 %v3898_v27 }
 0xeed   :  { %5864 = vtanh.f32 %v3899_v29  ;;  %v5566_v29 = vld [vmem:[#allocation7 + $0x38] sm:$0xff]  }
 0xef1   :  { %v5851_v7 = vpop.eup %5850 }
 0xef2   :  { %v3884_v3 = vmul.f32 0.5, %v5851_v7  ;;  %v5560_v7 = vld [vmem:[#allocation16 + $0x30] sm:$0xff]  }
 0xef3   :  { %v5853_v8 = vpop.eup %5852 }
 0xef4   :  { %v5855_v26 = vpop.eup %5854  ;;  %v3886_v28 = vadd.f32 0.5, %v3884_v3  ;;  %v3892_v62 = vmul.f32 0.5, %v5853_v8  ;;  %v5561_v3 = vld [vmem:[#allocation16 + $0x28] sm:$0xff]   ;;  %v5562_v8 = vld [vmem:[#allocation16 + $0x20] sm:$0xff]  }
 0xef5   :  { %v5857_v20 = vpop.eup %5856 }
 0xef6   :  { %v3894_v1 = vadd.f32 0.5, %v3892_v62  ;;  %v3908_v24 = vmul.f32 %v5855_v26, %v3886_v28  ;;  %v3885_v2 = vmul.f32 0.5, %v5857_v20  ;;  %v5563_v26 = vld [vmem:[#allocation16 + $0x18] sm:$0xff]   ;;  %v5564_v28 = vld [vmem:[#allocation16 + $0x10] sm:$0xff]   ;;  %v5567_v20 = vld [vmem:[#allocation16 + $0x8] sm:$0xff]  }
 0xef7   :  { %v5859_v43 = vpop.eup %5858  ;;  %v5565_v62 = vld [vmem:[#allocation7 + $0x30] sm:$0xff]  }
 0xef8   :  { %v3906_v0 = vmul.f32 %v3894_v1, %v7747_v30  ;;  %v3887_v37 = vadd.f32 0.5, %v3885_v2  ;;  %v3893_v19 = vmul.f32 0.5, %v5859_v43  ;;  %v5861_v10 = vpop.eup %5860  ;;  %v5568_v1 = vld [vmem:[#allocation16] sm:$0xff]  }
 0xef9   :  { %v5863_v36 = vpop.eup %5862 }
 0xefa   :  { %v7809_v21 = vadd.f32 %v3908_v24, %v3906_v0  ;;  %v3895_v57 = vadd.f32 0.5, %v3893_v19  ;;  %v3909_v14 = vmul.f32 %v5861_v10, %v3887_v37  ;;  %v3902_v16 = vmul.f32 0.5, %v5863_v36  ;;  %v5865_v13 = vpop.eup %5864  ;;  %v8121_v24 = vld [vmem:[#allocation75_spill] sm:$0xff]  ;;  %v8122_v37 = vld [vmem:[#allocation74_spill] sm:$0xff] }
 0xefb   :  { %v3903_v25 = vmul.f32 0.5, %v5865_v13  ;;  %v2495_v2 = vadd.f32 %v8121_v24, %v7356_v54  ;;  %v2497_v19 = vadd.f32 %v8122_v37, %v7364_v52 }
 0xefc   :  { %5866 = vtanh.f32 %v7809_v21  ;;  %v3907_v33 = vmul.f32 %v3895_v57, %v7751_v18  ;;  %v3904_v30 = vadd.f32 0.5, %v3902_v16  ;;  %v5547_v18 = vld [vmem:[#allocation7] sm:$0xff]   ;;  %v8123_v57 = vld [vmem:[#allocation76_spill] sm:$0xff] }
 0xefd   :  { %v3905_v40 = vadd.f32 0.5, %v3903_v25  ;;  %v8124_v16 = vld [vmem:[#allocation29_spill] sm:$0xff] }
 0xefe   :  { %v7813_v4 = vadd.f32 %v3909_v14, %v3907_v33  ;;  %v2608_v14 = vadd.f32 %v8123_v57, %v7374_v56  ;;  %v2499_v13 = vadd.f32 %v8124_v16, %v7356_v54 }
 0xf00   :  { %5868 = vtanh.f32 %v7813_v4 }
 0xf09   :  { %v5867_v23 = vpop.eup %5866 }
 0xf0a   :  { %v3914_v39 = vmul.f32 %v5867_v23, %v3904_v30 }
 0xf0c   :  { %3927 = vst [vmem:[#allocation18 + $0x60] sm:$0xff] %v3914_v39 }
 0xf0d   :  { %v5869_v41 = vpop.eup %5868 }
 0xf0e   :  { %v3915_v42 = vmul.f32 %v5869_v41, %v3905_v40  ;;  %v8125_v40 = vld [vmem:[#allocation80_spill] sm:$0xff] }
 0xf0f   :  { %v2501_v41 = vadd.f32 %v8125_v40, %v7364_v52 }
 0xf10   :  { %v3916_v44 = vpack.c.bf16 %v3915_v42, %v3914_v39  ;;  %3928 = vst [vmem:[#allocation18 + $0x68] sm:$0xff] %v3915_v42 }
 0xf12   :  { %5138 = vst [vmem:[#allocation2 + $0x30] sm:$0xff] %v3916_v44   ;;  %3970 = vmatmul.mubr.bf16.vlgmr.msra.gmra.mxu0 %v3916_v44  ;;  %4013 = vmatmul.mubr.bf16.vlgmr.msra.gmra.mxu1 %v3916_v44 }
 0xf13   :  { %5193 = vmatpush3.bf16.msra.mxu0 %v7786_v61  ;;  %5225 = vmatpush3.bf16.msra.mxu1 %v7788_v35  ;;  %v5540_v61 = vld [vmem:[#allocation13 + $0x18] sm:$0xff]   ;;  %v5541_v35 = vld [vmem:[#allocation15 + $0x10] sm:$0xff]  }
 0xf14   :  { %5240 = vmatprep.mubr.bf16.mxu1 %v5532_v46  ;;  %5194 = vmatprep.subr.bf16.mxu0 %v5533_v45 }
 0xf15   :  { %5226 = vmatprep.subr.bf16.mxu1 %v5534_v5  ;;  %5208 = vmatprep.mubr.bf16.mxu0 %v5547_v18  ;;  %v8126_v18 = vld [vmem:[#allocation79_spill] sm:$0xff] }
 0xf16   :  { %v2612_v46 = vadd.f32 %v8126_v18, %v7374_v56 }
 0xf17   :  { %5195 = vmatpush3.bf16.msra.mxu0 %v5533_v45  ;;  %5227 = vmatpush3.bf16.msra.mxu1 %v5534_v5 }
 0xf18   :  { %5196 = vmatprep.subr.bf16.mxu0 %v5535_v47  ;;  %5228 = vmatprep.subr.bf16.mxu1 %v5536_v48 }
 0xf19   :  { %v5558_v27 = vld [vmem:[#allocation2 + $0x30] sm:$0xff]  }
 0xf1b   :  { %5197 = vmatpush3.bf16.msra.mxu0 %v5535_v47  ;;  %5229 = vmatpush3.bf16.msra.mxu1 %v5536_v48 }
 0xf1c   :  { %5198 = vmatprep.subr.bf16.mxu0 %v5537_v49  ;;  %5230 = vmatprep.subr.bf16.mxu1 %v5538_v50 }
 0xf1f   :  { %5199 = vmatpush3.bf16.msra.mxu0 %v5537_v49  ;;  %5231 = vmatpush3.bf16.msra.mxu1 %v5538_v50  ;;  %v8127_v50 = vld [vmem:[#allocation78_spill] sm:$0xff] }
 0xf20   :  { %5200 = vmatprep.subr.bf16.mxu0 %v5539_v51  ;;  %5232 = vmatprep.subr.bf16.mxu1 %v5540_v61 }
 0xf23   :  { %5201 = vmatpush3.bf16.msra.mxu0 %v5539_v51  ;;  %5233 = vmatpush3.bf16.msra.mxu1 %v5540_v61  ;;  %v2610_v51 = vadd.f32 %v8127_v50, %v7386_v60 }
 0xf24   :  { %5202 = vmatprep.subr.bf16.mxu0 %v5541_v35  ;;  %5234 = vmatprep.subr.bf16.mxu1 %v5542_v53 }
 0xf27   :  { %5203 = vmatpush3.bf16.msra.mxu0 %v5541_v35  ;;  %5235 = vmatpush3.bf16.msra.mxu1 %v5542_v53  ;;  %v8128_v35 = vld [vmem:[#allocation81_spill] sm:$0xff] }
 0xf28   :  { %5204 = vmatprep.subr.bf16.mxu0 %v5543_v6  ;;  %5236 = vmatprep.subr.bf16.mxu1 %v5544_v55  ;;  %v2614_v53 = vadd.f32 %v8128_v35, %v7386_v60 }
 0xf2b   :  { %5205 = vmatpush3.bf16.msra.mxu0 %v5543_v6  ;;  %5237 = vmatpush3.bf16.msra.mxu1 %v5544_v55 }
 0xf2c   :  { %5206 = vmatprep.subr.bf16.mxu0 %v5545_v58  ;;  %5238 = vmatprep.subr.bf16.mxu1 %v5546_v12 }
 0xf2f   :  { %5207 = vmatpush3.bf16.msra.mxu0 %v5545_v58  ;;  %5239 = vmatpush3.bf16.msra.mxu1 %v5546_v12 }
 0xf30   :  { %5256 = vmatprep.subr.bf16.mxu0 %v5559_v32  ;;  %5288 = vmatprep.subr.bf16.mxu1 %v5559_v32 }
 0xf32   :  { %5209 = vmatmul.mubr.bf16.vlgmr.msra.gmra.mxu0 %v5548_v31  ;;  %5241 = vmatmul.mubr.bf16.vlgmr.msra.gmra.mxu1 %v5549_v15 }
 0xf33   :  { %5244 = vmatprep.mubr.bf16.mxu1 %v5550_v59  ;;  %5212 = vmatprep.mubr.bf16.mxu0 %v5551_v11 }
 0xf34   :  { %5257 = vmatpush3.bf16.msra.mxu0 %v5559_v32  ;;  %5296 = vmatpush3.bf16.msra.mxu1 %v5559_v32 }
 0xf35   :  { %5258 = vmatprep.subr.bf16.mxu0 %v5560_v7  ;;  %5289 = vmatprep.subr.bf16.mxu1 %v5560_v7 }
 0xf38   :  { %5259 = vmatpush3.bf16.msra.mxu0 %v5560_v7  ;;  %5297 = vmatpush3.bf16.msra.mxu1 %v5560_v7 }
 0xf39   :  { %5260 = vmatprep.subr.bf16.mxu0 %v5561_v3  ;;  %5290 = vmatprep.subr.bf16.mxu1 %v5561_v3 }
 0xf3a   :  { %5213 = vmatmul.mubr.bf16.gmra.mxu0 %v5552_v38  ;;  %5245 = vmatmul.mubr.bf16.gmra.mxu1 %v5553_v63 }
 0xf3b   :  { %5248 = vmatprep.mubr.bf16.mxu1 %v5554_v17  ;;  %5216 = vmatprep.mubr.bf16.mxu0 %v5555_v9 }
 0xf3c   :  { %5261 = vmatpush3.bf16.msra.mxu0 %v5561_v3  ;;  %5298 = vmatpush3.bf16.msra.mxu1 %v5561_v3 }
 0xf3d   :  { %5262 = vmatprep.subr.bf16.mxu0 %v5562_v8  ;;  %5291 = vmatprep.subr.bf16.mxu1 %v5562_v8 }
 0xf40   :  { %5263 = vmatpush3.bf16.msra.mxu0 %v5562_v8  ;;  %5299 = vmatpush3.bf16.msra.mxu1 %v5562_v8 }
 0xf41   :  { %5264 = vmatprep.subr.bf16.mxu0 %v5563_v26  ;;  %5292 = vmatprep.subr.bf16.mxu1 %v5563_v26 }
 0xf42   :  { %5217 = vmatmul.mubr.bf16.gmra.mxu0 %v5556_v22  ;;  %5249 = vmatmul.mubr.bf16.gmra.mxu1 %v5557_v34 }
 0xf43   :  { %5252 = vmatprep.mubr.bf16.mxu1 %v5558_v27  ;;  %5220 = vmatprep.mubr.bf16.mxu0 %v5565_v62 }
 0xf44   :  { %5265 = vmatpush3.bf16.msra.mxu0 %v5563_v26  ;;  %5300 = vmatpush3.bf16.msra.mxu1 %v5563_v26 }
 0xf45   :  { %5266 = vmatprep.subr.bf16.mxu0 %v5564_v28  ;;  %5293 = vmatprep.subr.bf16.mxu1 %v5564_v28 }
 0xf48   :  { %5267 = vmatpush3.bf16.msra.mxu0 %v5564_v28  ;;  %5301 = vmatpush3.bf16.msra.mxu1 %v5564_v28 }
 0xf49   :  { %5268 = vmatprep.subr.bf16.mxu0 %v5567_v20  ;;  %5294 = vmatprep.subr.bf16.mxu1 %v5567_v20 }
 0xf4a   :  { %5221 = vmatmul.mubr.bf16.gmra.mxu0 %v5566_v29 }
 0xf4c   :  { %5269 = vmatpush3.bf16.msra.mxu0 %v5567_v20  ;;  %5302 = vmatpush3.bf16.msra.mxu1 %v5567_v20  ;;  %v7839_v20 = vld [vmem:[%s7904_s8] ss:$0 sm:$0xff] }
 0xf4d   :  { %5270 = vmatprep.subr.bf16.mxu0 %v5568_v1  ;;  %5295 = vmatprep.subr.bf16.mxu1 %v5568_v1 }
 0xf50   :  { %5271 = vmatpush3.bf16.msra.mxu0 %v5568_v1  ;;  %5303 = vmatpush3.bf16.msra.mxu1 %v5568_v1 }
 0xfd2   :  { %v3971_v43 = vpop.f32.mrf.mxu0  ;;  %v4014_v0 = vpop.f32.mrf.mxu1 }
 0xfd3   :  { %v4023_v10 = vadd.f32 %v3971_v43, %v2495_v2  ;;  %v4025_v23 = vadd.f32 %v4014_v0, %v2608_v14 }
 0xfd4   :  { %v3973_v33 = vpop.f32.mrf.mxu0  ;;  %v4016_v36 = vpop.f32.mrf.mxu1 }
 0xfd5   :  { %v4031_v30 = vmul.f32 0.5, %v4023_v10  ;;  %v4024_v25 = vadd.f32 %v3973_v33, %v2497_v19  ;;  %v4026_v52 = vadd.f32 %v4016_v36, %v2610_v51 }
 0xfd6   :  { %v3975_v39 = vpop.f32.mrf.mxu0  ;;  %v4018_v45 = vpop.f32.mrf.mxu1 }
 0xfd7   :  { %5870 = vtanh.f32 %v4031_v30  ;;  %v4039_v42 = vmul.f32 0.5, %v4024_v25  ;;  %v4027_v44 = vadd.f32 %v3975_v39, %v2499_v13  ;;  %v4029_v54 = vadd.f32 %v4018_v45, %v2612_v46 }
 0xfd8   :  { %v3977_v5 = vpop.f32.mrf.mxu0  ;;  %v4020_v61 = vpop.f32.mrf.mxu1  ;;  %v4049_v6 = vmul.f32 0.5, %v4026_v52 }
 0xfd9   :  { %5872 = vtanh.f32 %v4039_v42  ;;  %v4032_v47 = vmul.f32 0.5, %v4027_v44  ;;  %v4028_v48 = vadd.f32 %v3977_v5, %v2501_v41  ;;  %v4030_v55 = vadd.f32 %v4020_v61, %v2614_v53 }
 0xfda   :  { %5874 = vtanh.f32 %v4025_v23 }
 0xfdb   :  { %5876 = vtanh.f32 %v4032_v47  ;;  %v4040_v49 = vmul.f32 0.5, %v4028_v48  ;;  %v4050_v59 = vmul.f32 0.5, %v4030_v55 }
 0xfdd   :  { %5878 = vtanh.f32 %v4040_v49 }
 0xfde   :  { %5880 = vtanh.f32 %v4029_v54 }
 0xfdf   :  { %5882 = vtanh.f32 %v4049_v6 }
 0xfe0   :  { %5884 = vtanh.f32 %v4050_v59 }
 0xfe4   :  { %v5871_v56 = vpop.eup %5870 }
 0xfe5   :  { %v4035_v58 = vmul.f32 0.5, %v5871_v56 }
 0xfe6   :  { %v5873_v12 = vpop.eup %5872 }
 0xfe7   :  { %v5875_v31 = vpop.eup %5874  ;;  %v4037_v11 = vadd.f32 0.5, %v4035_v58  ;;  %v4043_v15 = vmul.f32 0.5, %v5873_v12 }
 0xfe8   :  { %v5877_v38 = vpop.eup %5876 }
 0xfe9   :  { %v4045_v9 = vadd.f32 0.5, %v4043_v15  ;;  %v4059_v63 = vmul.f32 %v5875_v31, %v4037_v11  ;;  %v4036_v17 = vmul.f32 0.5, %v5877_v38 }
 0xfea   :  { %v5879_v22 = vpop.eup %5878 }
 0xfeb   :  { %v4057_v34 = vmul.f32 %v4045_v9, %v7809_v21  ;;  %v4038_v27 = vadd.f32 0.5, %v4036_v17  ;;  %v4044_v32 = vmul.f32 0.5, %v5879_v22  ;;  %v5881_v60 = vpop.eup %5880 }
 0xfec   :  { %v5883_v1 = vpop.eup %5882 }
 0xfed   :  { %v4061_v7 = vadd.f32 %v4059_v63, %v4057_v34  ;;  %v4046_v3 = vadd.f32 0.5, %v4044_v32  ;;  %v4060_v8 = vmul.f32 %v5881_v60, %v4038_v27  ;;  %v4053_v10 = vmul.f32 0.5, %v5883_v1  ;;  %v5885_v14 = vpop.eup %5884 }
 0xfee   :  { %v4054_v39 = vmul.f32 0.5, %v5885_v14 }
 0xfef   :  { %5886 = vtanh.f32 %v4061_v7  ;;  %v4058_v26 = vmul.f32 %v4046_v3, %v7813_v4  ;;  %v4055_v23 = vadd.f32 0.5, %v4053_v10 }
 0xff0   :  { %v4056_v50 = vadd.f32 0.5, %v4054_v39 }
 0xff1   :  { %v4062_v28 = vadd.f32 %v4060_v8, %v4058_v26 }
 0xff2   :  { %v5210_v62 = vpop.f32.mrf.mxu0  ;;  %v5242_v29 = vpop.f32.mrf.mxu1 }
 0xff3   :  { %5888 = vtanh.f32 %v4062_v28  ;;  %v4476_v21 = vadd.f32 %v5242_v29, %v5210_v62 }
 0xff4   :  { %v4274_v24 = vpop.f32.mrf.mxu0  ;;  %v4467_v2 = vpop.f32.mrf.mxu1 }
 0xff5   :  { %v4539_v43 = vadd.f32 %v7839_v20, %v4476_v21  ;;  %v4468_v0 = vadd.f32 %v4467_v2, %v4274_v24 }
 0xff6   :  { %v5211_v37 = vpop.f32.mrf.mxu0  ;;  %v5243_v19 = vpop.f32.mrf.mxu1 }
 0xff7   :  { %4555 = vst [vmem:[#allocation19 + $0x10] sm:$0xff] %v4539_v43  ;;  %v4537_v4 = vadd.f32 %v7839_v20, %v4468_v0  ;;  %v4479_v57 = vadd.f32 %v5243_v19, %v5211_v37  ;;  %v7856_v0 = vld [vmem:[%s7906_s10] ss:$0 sm:$0xff]  ;;  %s6201_s10 = smov [#allocation19]  }
 0xff8   :  { %v4277_v33 = vpop.f32.mrf.mxu0  ;;  %v4470_v36 = vpop.f32.mrf.mxu1  ;;  %s4778_s16 = sshll.u32 %s6201_s10, 4  ;;  %s4779_s16 = int_to_ptr.vmem [resolvable:$true] %s4778_s16 }
 0xff9   :  { %4553 = vst [vmem:[#allocation19] sm:$0xff] %v4537_v4  ;;  %v4540_v16 = vadd.f32 %v7839_v20, %v4479_v57  ;;  %v4471_v13 = vadd.f32 %v4470_v36, %v4277_v33  ;;  %s6114_s18 = scalar_lea.vmem %s4779_s16, 2048  ;;  %p6119_p13 = scmp.lt.s32.totalorder %s4779_s16, %s4779_s16 }
 0xffa   :  { %v5214_v30 = vpop.f32.mrf.mxu0  ;;  %v5246_v25 = vpop.f32.mrf.mxu1  ;;  %p6115_p12 = scmp.ne.s32.totalorder %s4779_s16, %s6114_s18  ;;  %p6120_p0 = scmp.lt.s32.totalorder %s6114_s18, %s6114_s18 }
 0xffb   :  { %4556 = vst [vmem:[#allocation19 + $0x18] sm:$0xff] %v4540_v16  ;;  %v4538_v40 = vadd.f32 %v7839_v20, %v4471_v13  ;;  %v4492_v41 = vadd.f32 %v5246_v25, %v5214_v30  ;;  %v4570_v48 = vpack.c.bf16 %v4540_v16, %v4539_v43 }
 0xffc   :  { %v5887_v42 = vpop.eup %5886  ;;  %v4290_v44 = vpop.f32.mrf.mxu0  ;;  %p6121_p1 = por %p6120_p0, %p6119_p13 }
 0xffd   :  { %v4483_v45 = vpop.f32.mrf.mxu1  ;;  %v4065_v5 = vmul.f32 %v5887_v42, %v4055_v23  ;;  %4554 = vst [vmem:[#allocation19 + $0x8] sm:$0xff] %v4538_v40  ;;  %v4543_v18 = vadd.f32 %v7839_v20, %v4492_v41  ;;  %v4569_v47 = vpack.c.bf16 %v4538_v40, %v4537_v4 }
 0xffe   :  { %v4484_v46 = vadd.f32 %v4483_v45, %v4290_v44  ;;  %v5215_v54 = vpop.f32.mrf.mxu0  ;;  %p6122_p2 = pnand %p6121_p1, %p6115_p12 }
 0xfff   :  { %v5247_v49 = vpop.f32.mrf.mxu1  ;;  %4078 = vst [vmem:[#allocation18 + $0x70] sm:$0xff] %v4065_v5  ;;  %4559 = vst [vmem:[#allocation19 + $0x30] sm:$0xff] %v4543_v18  ;;  %5272 = vmatprep.mubr.bf16.mxu0 %v4569_v47 }
0x1000   :  { %v4541_v51 = vadd.f32 %v7839_v20, %v4484_v46  ;;  %v4495_v52 = vadd.f32 %v5247_v49, %v5215_v54  ;;  %v5889_v61 = vpop.eup %5888  ;;  %v4293_v35 = vpop.f32.mrf.mxu0  ;;  %5273 = vmatmul.mubr.bf16.vlgmr.msra.gmra.mxu0 %v4570_v48 }
0x1001   :  { %v4486_v53 = vpop.f32.mrf.mxu1  ;;  %v4066_v6 = vmul.f32 %v5889_v61, %v4056_v50 }
0x1002   :  { %4557 = vst [vmem:[#allocation19 + $0x20] sm:$0xff] %v4541_v51  ;;  %v4544_v55 = vadd.f32 %v7839_v20, %v4495_v52  ;;  %v4487_v56 = vadd.f32 %v4486_v53, %v4293_v35  ;;  %v5218_v58 = vpop.f32.mrf.mxu0 }
0x1003   :  { %v5250_v12 = vpop.f32.mrf.mxu1  ;;  %v5142_v31 = vpack.c.bf16 %v4066_v6, %v4065_v5  ;;  %4079 = vst [vmem:[#allocation18 + $0x78] sm:$0xff] %v4066_v6 }
0x1004   :  { %4560 = vst [vmem:[#allocation19 + $0x38] sm:$0xff] %v4544_v55  ;;  %v4542_v11 = vadd.f32 %v7839_v20, %v4487_v56  ;;  %v4508_v15 = vadd.f32 %v5250_v12, %v5218_v58  ;;  %v4306_v59 = vpop.f32.mrf.mxu0  ;;  %v4572_v22 = vpack.c.bf16 %v4544_v55, %v4543_v18 }
0x1005   :  { %v4499_v38 = vpop.f32.mrf.mxu1  ;;  %5143 = vst [vmem:[#allocation2 + $0x38] sm:$0xff] %v5142_v31  }
0x1006   :  { %4558 = vst [vmem:[#allocation19 + $0x28] sm:$0xff] %v4542_v11  ;;  %v4547_v9 = vadd.f32 %v7839_v20, %v4508_v15  ;;  %v4500_v63 = vadd.f32 %v4499_v38, %v4306_v59  ;;  %v4571_v17 = vpack.c.bf16 %v4542_v11, %v4541_v51  ;;  %v5219_v34 = vpop.f32.mrf.mxu0 }
0x1007   :  { %v5251_v27 = vpop.f32.mrf.mxu1 }
0x1008   :  { %4563 = vst [vmem:[#allocation19 + $0x50] sm:$0xff] %v4547_v9  ;;  %v4545_v32 = vadd.f32 %v7839_v20, %v4500_v63  ;;  %v4511_v60 = vadd.f32 %v5251_v27, %v5219_v34  ;;  %5276 = vmatprep.mubr.bf16.mxu0 %v4571_v17  ;;  %v4309_v7 = vpop.f32.mrf.mxu0 }
0x1009   :  { %v4502_v3 = vpop.f32.mrf.mxu1  ;;  %5277 = vmatmul.mubr.bf16.gmra.mxu0 %v4572_v22 }
0x100a   :  { %4561 = vst [vmem:[#allocation19 + $0x40] sm:$0xff] %v4545_v32  ;;  %v4548_v8 = vadd.f32 %v7839_v20, %v4511_v60  ;;  %v4503_v26 = vadd.f32 %v4502_v3, %v4309_v7  ;;  %v5222_v1 = vpop.f32.mrf.mxu0 }
0x100c   :  { %4564 = vst [vmem:[#allocation19 + $0x58] sm:$0xff] %v4548_v8  ;;  %v4546_v28 = vadd.f32 %v7839_v20, %v4503_v26  ;;  %v5569_v62 = vld [vmem:[#allocation2 + $0x38] sm:$0xff]   ;;  %v4574_v21 = vpack.c.bf16 %v4548_v8, %v4547_v9  ;;  %v4322_v24 = vpop.f32.mrf.mxu0 }
0x100d   :  { %5253 = vmatmul.mubr.bf16.gmra.mxu1 %v5569_v62 }
0x100e   :  { %4562 = vst [vmem:[#allocation19 + $0x48] sm:$0xff] %v4546_v28  ;;  %v4573_v29 = vpack.c.bf16 %v4546_v28, %v4545_v32  ;;  %v5223_v2 = vpop.f32.mrf.mxu0 }
0x1010   :  { %5280 = vmatprep.mubr.bf16.mxu1 %v4573_v29  ;;  %v4325_v43 = vpop.f32.mrf.mxu0 }
0x1015   :  { %5281 = vmatmul.mubr.bf16.vlgmr.msra.gmra.mxu1 %v4574_v21 }
0x10c0   :  { %v5274_v37 = vpop.f32.mrf.mxu0 }
0x10c1   :  { %v4691_v19 = vadd.f32 %v5274_v37, %v7856_v0 }
0x10c2   :  { %v4682_v10 = vpop.f32.mrf.mxu0 }
0x10c3   :  { %4747 = vst [vmem:[#allocation21 + $0x10] sm:$0xff] %v4691_v19  ;;  %v4683_v4 = vadd.f32 %v7856_v0, %v4682_v10 }
0x10c4   :  { %v5275_v57 = vpop.f32.mrf.mxu0 }
0x10c5   :  { %4745 = vst [vmem:[#allocation21] sm:$0xff] %v4683_v4  ;;  %v4694_v14 = vadd.f32 %v5275_v57, %v7856_v0 }
0x10c6   :  { %v4685_v33 = vpop.f32.mrf.mxu0 }
0x10c7   :  { %4748 = vst [vmem:[#allocation21 + $0x18] sm:$0xff] %v4694_v14  ;;  %v4686_v36 = vadd.f32 %v7856_v0, %v4685_v33 }
0x10c9   :  { %v5278_v16 = vpop.f32.mrf.mxu0  ;;  %4746 = vst [vmem:[#allocation21 + $0x8] sm:$0xff] %v4686_v36 }
0x10ca   :  { %v4707_v13 = vadd.f32 %v5278_v16, %v7856_v0 }
0x10cb   :  { %v4698_v30 = vpop.f32.mrf.mxu0 }
0x10cc   :  { %4751 = vst [vmem:[#allocation21 + $0x30] sm:$0xff] %v4707_v13  ;;  %v4699_v25 = vadd.f32 %v7856_v0, %v4698_v30 }
0x10cd   :  { %v5279_v23 = vpop.f32.mrf.mxu0  ;;  %v5254_v41 = vpop.f32.mrf.mxu1 }
0x10ce   :  { %4749 = vst [vmem:[#allocation21 + $0x20] sm:$0xff] %v4699_v25  ;;  %v4710_v39 = vadd.f32 %v5279_v23, %v7856_v0  ;;  %v4524_v44 = vadd.f32 %v5254_v41, %v5222_v1 }
0x10cf   :  { %v4701_v40 = vpop.f32.mrf.mxu0  ;;  %v4515_v45 = vpop.f32.mrf.mxu1 }
0x10d0   :  { %4752 = vst [vmem:[#allocation21 + $0x38] sm:$0xff] %v4710_v39  ;;  %v4702_v42 = vadd.f32 %v7856_v0, %v4701_v40  ;;  %v4551_v5 = vadd.f32 %v7839_v20, %v4524_v44  ;;  %v4516_v18 = vadd.f32 %v4515_v45, %v4322_v24 }
0x10d1   :  { %v5255_v46 = vpop.f32.mrf.mxu1 }
0x10d2   :  { %4750 = vst [vmem:[#allocation21 + $0x28] sm:$0xff] %v4702_v42  ;;  %4567 = vst [vmem:[#allocation19 + $0x70] sm:$0xff] %v4551_v5  ;;  %v4549_v47 = vadd.f32 %v7839_v20, %v4516_v18  ;;  %v4527_v48 = vadd.f32 %v5255_v46, %v5223_v2 }
0x10d3   :  { %v4518_v54 = vpop.f32.mrf.mxu1 }
0x10d4   :  { %4565 = vst [vmem:[#allocation19 + $0x60] sm:$0xff] %v4549_v47  ;;  %v4552_v49 = vadd.f32 %v7839_v20, %v4527_v48  ;;  %v4519_v50 = vadd.f32 %v4518_v54, %v4325_v43 }
0x10d5   :  { %v5282_v51 = vpop.f32.mrf.mxu1 }
0x10d6   :  { %4568 = vst [vmem:[#allocation19 + $0x78] sm:$0xff] %v4552_v49  ;;  %v4550_v52 = vadd.f32 %v7839_v20, %v4519_v50  ;;  %v4723_v61 = vadd.f32 %v5282_v51, %v7856_v0  ;;  %v4576_v55 = vpack.c.bf16 %v4552_v49, %v4551_v5 }
0x10d7   :  { %v4714_v35 = vpop.f32.mrf.mxu1 }
0x10d8   :  { %4566 = vst [vmem:[#allocation19 + $0x68] sm:$0xff] %v4550_v52  ;;  %4755 = vst [vmem:[#allocation21 + $0x50] sm:$0xff] %v4723_v61  ;;  %v4715_v53 = vadd.f32 %v7856_v0, %v4714_v35  ;;  %v4575_v6 = vpack.c.bf16 %v4550_v52, %v4549_v47 }
0x10d9   :  { %v5283_v56 = vpop.f32.mrf.mxu1 }
0x10da   :  { %4753 = vst [vmem:[#allocation21 + $0x40] sm:$0xff] %v4715_v53  ;;  %v4726_v58 = vadd.f32 %v5283_v56, %v7856_v0  ;;  %5284 = vmatprep.mubr.bf16.mxu1 %v4575_v6 }
0x10db   :  { %v4717_v12 = vpop.f32.mrf.mxu1  ;;  %5285 = vmatmul.mubr.bf16.gmra.mxu1 %v4576_v55 }
0x10dc   :  { %4756 = vst [vmem:[#allocation21 + $0x58] sm:$0xff] %v4726_v58  ;;  %v4718_v31 = vadd.f32 %v7856_v0, %v4717_v12 }
0x10de   :  { %4754 = vst [vmem:[#allocation21 + $0x48] sm:$0xff] %v4718_v31 }
0x10df   :  { %6125 = shalt.err (!%p6122_p2)
}
0x10e0   :  { %s6203_s19 = smov 128   ;;  %s6204_s22 = smov 8  }
0x10e1   :  { %4784 = dma.vmem_to_hbm [thread:$0]  %s4779_s16, 2048, %s7908_s12, [#allocation20], %s6203_s19, %s6203_s19, %s6204_s22  }
0x10e2   :  { %s6134_s1 = scalar_lea.vmem %s4767_s17, 2048  ;;  %p6139_p4 = scmp.lt.s32.totalorder %s4767_s17, %s4767_s17 }
0x10e3   :  { %p6135_p3 = scmp.ne.s32.totalorder %s4767_s17, %s6134_s1  ;;  %p6140_p5 = scmp.lt.s32.totalorder %s6134_s1, %s6134_s1 }
0x10e5   :  { %p6141_p6 = por %p6140_p5, %p6139_p4 }
0x10e7   :  { %p6142_p7 = pnand %p6141_p6, %p6135_p3 }
0x10e9   :  { %6145 = shalt.err (!%p6142_p7)
}
0x10ea   :  { %4772 = dma.vmem_to_hbm [thread:$0]  %s4767_s17, 2048, %s7907_s11, [#allocation6], %s6203_s19, %s6203_s19, %s6204_s22  }
0x10eb   :  { %s6205_s12 = smov [#allocation21]  }
0x10ec   :  { %s4790_s2 = sshll.u32 %s6205_s12, 4  ;;  %s4791_s2 = int_to_ptr.vmem [resolvable:$true] %s4790_s2 }
0x10ed   :  { %s6154_s11 = scalar_lea.vmem %s4791_s2, 2048  ;;  %p6159_p9 = scmp.lt.s32.totalorder %s4791_s2, %s4791_s2 }
0x10ee   :  { %p6155_p8 = scmp.ne.s32.totalorder %s4791_s2, %s6154_s11  ;;  %p6160_p10 = scmp.lt.s32.totalorder %s6154_s11, %s6154_s11 }
0x10f0   :  { %p6161_p11 = por %p6160_p10, %p6159_p9 }
0x10f2   :  { %p6162_p12 = pnand %p6161_p11, %p6155_p8 }
0x119b   :  { %v5286_v20 = vpop.f32.mrf.mxu1 }
0x119c   :  { %v4739_v11 = vadd.f32 %v5286_v20, %v7856_v0 }
0x119d   :  { %v4730_v15 = vpop.f32.mrf.mxu1 }
0x119e   :  { %4759 = vst [vmem:[#allocation21 + $0x70] sm:$0xff] %v4739_v11  ;;  %v4731_v59 = vadd.f32 %v7856_v0, %v4730_v15 }
0x119f   :  { %v5287_v38 = vpop.f32.mrf.mxu1 }
0x11a0   :  { %4757 = vst [vmem:[#allocation21 + $0x60] sm:$0xff] %v4731_v59  ;;  %v4742_v9 = vadd.f32 %v5287_v38, %v7856_v0 }
0x11a1   :  { %v4733_v63 = vpop.f32.mrf.mxu1 }
0x11a2   :  { %4760 = vst [vmem:[#allocation21 + $0x78] sm:$0xff] %v4742_v9  ;;  %v4734_v17 = vadd.f32 %v7856_v0, %v4733_v63 }
0x11a4   :  { %4758 = vst [vmem:[#allocation21 + $0x68] sm:$0xff] %v4734_v17 }
0x11a5   :  { %6165 = shalt.err (!%p6162_p12)
}
0x11a6   :  { %4796 = dma.vmem_to_hbm [thread:$0]  %s4791_s2, 2048, %s7909_s13, [#allocation20], %s6203_s19, %s6203_s19, %s6204_s22  }
0x11a7   :  { %6184 = dma.done.wait [#allocation6], 2048  }
0x11a8   :  { %6185 = vsyncadd [#allocation6], 4294965248 }
0x11a9   :  { %6186 = dma.done.wait [#allocation20], 4096  }
0x11aa   :  { %6187 = vsyncadd [#allocation20], 4294963200 }
0x11ab   :  { %4806 = vsyncpa [#allocation5], 1 }
0x11ac   :  { %4807 = vsyncpa [#allocation8], 1 }
0x11ad   :  { %4808 = vsyncpa [#allocation11], 1 }
0x11ae   :  { %4809 = vsyncpa [#allocation14], 1 }
0x11af   :  { %4810 = vsyncpa [#allocation17], 1 }
0x11b0   :  { %4811 = vsyncpa [#allocation6], 1 }
0x11b1   :  { %4812 = vsyncpa [#allocation20], 1 }

</bundles_post_ra>
